<compile_context>
chip_gen: v6e
topology: v6e:2x2x1
jax: 0.10.0
libtpu: 0.0.40
codegen_flags: <defaults>
</compile_context>

<pallas_src>
import functools

import jax
import jax.numpy as jnp
from jax.experimental import pallas as pl
from jax.experimental.pallas import tpu as pltpu

D_IN, D_H1, D_H2, D_H3, D_OUT = 3 * 32 * 32, 512, 256, 128, 10
D_OUT_PAD = 128  # lane-dense padded output width


def _round_up(x, m):
    return (x + m - 1) // m * m


def mlp_kernel(x_ref, w1_ref, b1_ref, w2_ref, b2_ref, w3_ref, b3_ref,
               w4_ref, b4_ref, o_ref):
    # Whole MLP hot path fused in VMEM: 4 bf16 MXU matmuls (f32 accumulation)
    # + VPU bias adds / relus. Weights are grid-resident; only x/out tiles move.
    x = x_ref[...]                                                    # (tb, D_IN) bf16
    h = jnp.dot(x, w1_ref[...], preferred_element_type=jnp.float32) + b1_ref[...]
    h = jnp.maximum(h, 0.0).astype(jnp.bfloat16)
    h = jnp.dot(h, w2_ref[...], preferred_element_type=jnp.float32) + b2_ref[...]
    h = jnp.maximum(h, 0.0).astype(jnp.bfloat16)
    h = jnp.dot(h, w3_ref[...], preferred_element_type=jnp.float32) + b3_ref[...]
    h = jnp.maximum(h, 0.0).astype(jnp.bfloat16)
    o_ref[...] = (jnp.dot(h, w4_ref[...], preferred_element_type=jnp.float32)
                  + b4_ref[...])                                      # (tb, 128) f32


@functools.partial(jax.jit, static_argnames=("tile_b",))
def mlp_forward(x, packed_params, tile_b=128):
    """x: (B, 3, 32, 32) float32 (NCHW). Returns logits (B, 10) float32."""
    b = x.shape[0]
    x2d = x.reshape(b, D_IN).astype(jnp.bfloat16)  # same layout as torch .view

    # Batch tile: multiple of 8 (sublane), capped at tile_b; pad batch to fit.
    tb = min(tile_b, _round_up(b, 8))
    b_pad = _round_up(b, tb)
    if b_pad != b:
        x2d = jnp.pad(x2d, ((0, b_pad - b), (0, 0)))
    nb = b_pad // tb

    w1, b1, w2, b2, w3, b3, w4, b4 = packed_params

    def resident(shape):  # weights/biases: constant block -> DMA'd once
        return pl.BlockSpec(shape, lambda i: (0, 0))

    out = pl.pallas_call(
        mlp_kernel,
        out_shape=jax.ShapeDtypeStruct((b_pad, D_OUT_PAD), jnp.float32),
        grid=(nb,),
        in_specs=[
            pl.BlockSpec((tb, D_IN), lambda i: (i, 0)),      # batch-tiled input
            resident((D_IN, D_H1)), resident((1, D_H1)),
            resident((D_H1, D_H2)), resident((1, D_H2)),
            resident((D_H2, D_H3)), resident((1, D_H3)),
            resident((D_H3, D_OUT_PAD)), resident((1, D_OUT_PAD)),
        ],
        out_specs=pl.BlockSpec((tb, D_OUT_PAD), lambda i: (i, 0)),
        compiler_params=pltpu.CompilerParams(
            dimension_semantics=("parallel",),
            vmem_limit_bytes=32 << 20,
        ),
    )(x2d, w1, b1, w2, b2, w3, b3, w4, b4)
    return out[:b, :D_OUT]


def init_params(key):
    """Deterministic init mimicking torch.nn.Linear default (U[-1/sqrt(fan_in), +])."""
    dims = [(D_IN, D_H1), (D_H1, D_H2), (D_H2, D_H3), (D_H3, D_OUT)]
    params = []
    for (fan_in, fan_out) in dims:
        key, kw, kb = jax.random.split(key, 3)
        bound = 1.0 / jnp.sqrt(float(fan_in))
        w = jax.random.uniform(kw, (fan_in, fan_out), jnp.float32, -bound, bound)
        bvec = jax.random.uniform(kb, (1, fan_out), jnp.float32, -bound, bound)
        params += [w, bvec]
    return tuple(params)


def pack_params(params):
    """Cast weights to bf16 (biases stay f32) and pad the final layer to 128 cols."""
    w1, b1, w2, b2, w3, b3, w4, b4 = params
    w4p = jnp.zeros((D_H3, D_OUT_PAD), jnp.float32).at[:, :D_OUT].set(w4)
    b4p = jnp.zeros((1, D_OUT_PAD), jnp.float32).at[:, :D_OUT].set(b4)
    return (w1.astype(jnp.bfloat16), b1,
            w2.astype(jnp.bfloat16), b2,
            w3.astype(jnp.bfloat16), b3,
            w4p.astype(jnp.bfloat16), b4p)


def ref_forward(x, packed_params):
    """Plain-JAX reference with identical dtype handling (bf16 MXU, f32 acc)."""
    b = x.shape[0]
    w1, b1, w2, b2, w3, b3, w4, b4 = packed_params
    h = x.reshape(b, D_IN).astype(jnp.bfloat16)
    h = jnp.maximum(jnp.dot(h, w1, preferred_element_type=jnp.float32) + b1, 0.0)
    h = h.astype(jnp.bfloat16)
    h = jnp.maximum(jnp.dot(h, w2, preferred_element_type=jnp.float32) + b2, 0.0)
    h = h.astype(jnp.bfloat16)
    h = jnp.maximum(jnp.dot(h, w3, preferred_element_type=jnp.float32) + b3, 0.0)
    h = h.astype(jnp.bfloat16)
    return (jnp.dot(h, w4, preferred_element_type=jnp.float32) + b4)[:, :D_OUT]


if __name__ == "__main__":
    key = jax.random.PRNGKey(0)
    key, kx = jax.random.split(key)
    # Small batch; spatial/channel dims fixed by the module (3*32*32 input features).
    x = jax.random.normal(kx, (2, 3, 32, 32), jnp.float32)
    params = init_params(key)
    packed = pack_params(params)

    out = mlp_forward(x, packed)
    jax.block_until_ready(out)

    ref = ref_forward(x, packed)
    assert out.shape == (2, D_OUT)
    assert jnp.allclose(out, ref, atol=1e-2, rtol=1e-2)
    print("KERNEL_OK")
</pallas_src>

<mosaic_0001>
module attributes {stable_mosaic.version = 11 : i64} {
  func.func @mlp_kernel(%arg0: i32, %arg1: memref<8x3072xbf16, #tpu.memory_space<vmem>>, %arg2: memref<3072x512xbf16, #tpu.memory_space<vmem>>, %arg3: memref<1x512xf32, #tpu.memory_space<vmem>>, %arg4: memref<512x256xbf16, #tpu.memory_space<vmem>>, %arg5: memref<1x256xf32, #tpu.memory_space<vmem>>, %arg6: memref<256x128xbf16, #tpu.memory_space<vmem>>, %arg7: memref<1x128xf32, #tpu.memory_space<vmem>>, %arg8: memref<128x128xbf16, #tpu.memory_space<vmem>>, %arg9: memref<1x128xf32, #tpu.memory_space<vmem>>, %arg10: memref<8x128xf32, #tpu.memory_space<vmem>>) attributes {dimension_semantics = [#tpu.dimension_semantics<parallel>], iteration_bounds = array<i64: 1>, scalar_prefetch = 0 : i64, scratch_operands = 0 : i64, tpu.core_type = #tpu.core_type<tc>, window_params = [{transform_indices = @transform_0, window_bounds = array<i64: 8, 3072>}, {pipeline_mode = #tpu.pipeline_mode<synchronous>, transform_indices = @transform_1, window_bounds = array<i64: 3072, 512>}, {pipeline_mode = #tpu.pipeline_mode<synchronous>, transform_indices = @transform_2, window_bounds = array<i64: 1, 512>}, {pipeline_mode = #tpu.pipeline_mode<synchronous>, transform_indices = @transform_3, window_bounds = array<i64: 512, 256>}, {pipeline_mode = #tpu.pipeline_mode<synchronous>, transform_indices = @transform_4, window_bounds = array<i64: 1, 256>}, {pipeline_mode = #tpu.pipeline_mode<synchronous>, transform_indices = @transform_5, window_bounds = array<i64: 256, 128>}, {pipeline_mode = #tpu.pipeline_mode<synchronous>, transform_indices = @transform_6, window_bounds = array<i64: 1, 128>}, {pipeline_mode = #tpu.pipeline_mode<synchronous>, transform_indices = @transform_7, window_bounds = array<i64: 128, 128>}, {pipeline_mode = #tpu.pipeline_mode<synchronous>, transform_indices = @transform_8, window_bounds = array<i64: 1, 128>}, {transform_indices = @transform_9, window_bounds = array<i64: 8, 128>}]} {
    %c0 = arith.constant 0 : index
    %c0_0 = arith.constant 0 : index
    %0 = vector.load %arg1[%c0, %c0_0] : memref<8x3072xbf16, #tpu.memory_space<vmem>>, vector<8x3072xbf16>
    %c0_1 = arith.constant 0 : index
    %c0_2 = arith.constant 0 : index
    %1 = vector.load %arg2[%c0_1, %c0_2] : memref<3072x512xbf16, #tpu.memory_space<vmem>>, vector<3072x512xbf16>
    %cst = arith.constant dense<0.000000e+00> : vector<8x512xf32>
    %2 = tpu.matmul %0, %1, %cst {dimension_numbers = #tpu.dot_dimension_numbers<[1], [0], [0], [1], [0, 0, 1, 1], [], []>} : vector<8x3072xbf16>, vector<3072x512xbf16>, vector<8x512xf32> -> vector<8x512xf32>
    %c0_3 = arith.constant 0 : index
    %c0_4 = arith.constant 0 : index
    %3 = vector.load %arg3[%c0_3, %c0_4] : memref<1x512xf32, #tpu.memory_space<vmem>>, vector<1x512xf32>
    %4 = vector.broadcast %3 : vector<1x512xf32> to vector<8x512xf32>
    %5 = arith.addf %2, %4 : vector<8x512xf32>
    %cst_5 = arith.constant 0.000000e+00 : f32
    %6 = vector.broadcast %cst_5 : f32 to vector<8x512xf32>
    %7 = arith.maximumf %5, %6 : vector<8x512xf32>
    %8 = arith.truncf %7 : vector<8x512xf32> to vector<8x512xbf16>
    %c0_6 = arith.constant 0 : index
    %c0_7 = arith.constant 0 : index
    %9 = vector.load %arg4[%c0_6, %c0_7] : memref<512x256xbf16, #tpu.memory_space<vmem>>, vector<512x256xbf16>
    %cst_8 = arith.constant dense<0.000000e+00> : vector<8x256xf32>
    %10 = tpu.matmul %8, %9, %cst_8 {dimension_numbers = #tpu.dot_dimension_numbers<[1], [0], [0], [1], [0, 0, 1, 1], [], []>} : vector<8x512xbf16>, vector<512x256xbf16>, vector<8x256xf32> -> vector<8x256xf32>
    %c0_9 = arith.constant 0 : index
    %c0_10 = arith.constant 0 : index
    %11 = vector.load %arg5[%c0_9, %c0_10] : memref<1x256xf32, #tpu.memory_space<vmem>>, vector<1x256xf32>
    %12 = vector.broadcast %11 : vector<1x256xf32> to vector<8x256xf32>
    %13 = arith.addf %10, %12 : vector<8x256xf32>
    %cst_11 = arith.constant 0.000000e+00 : f32
    %14 = vector.broadcast %cst_11 : f32 to vector<8x256xf32>
    %15 = arith.maximumf %13, %14 : vector<8x256xf32>
    %16 = arith.truncf %15 : vector<8x256xf32> to vector<8x256xbf16>
    %c0_12 = arith.constant 0 : index
    %c0_13 = arith.constant 0 : index
    %17 = vector.load %arg6[%c0_12, %c0_13] : memref<256x128xbf16, #tpu.memory_space<vmem>>, vector<256x128xbf16>
    %cst_14 = arith.constant dense<0.000000e+00> : vector<8x128xf32>
    %18 = tpu.matmul %16, %17, %cst_14 {dimension_numbers = #tpu.dot_dimension_numbers<[1], [0], [0], [1], [0, 0, 1, 1], [], []>} : vector<8x256xbf16>, vector<256x128xbf16>, vector<8x128xf32> -> vector<8x128xf32>
    %c0_15 = arith.constant 0 : index
    %c0_16 = arith.constant 0 : index
    %19 = vector.load %arg7[%c0_15, %c0_16] : memref<1x128xf32, #tpu.memory_space<vmem>>, vector<1x128xf32>
    %20 = vector.broadcast %19 : vector<1x128xf32> to vector<8x128xf32>
    %21 = arith.addf %18, %20 : vector<8x128xf32>
    %cst_17 = arith.constant 0.000000e+00 : f32
    %22 = vector.broadcast %cst_17 : f32 to vector<8x128xf32>
    %23 = arith.maximumf %21, %22 : vector<8x128xf32>
    %24 = arith.truncf %23 : vector<8x128xf32> to vector<8x128xbf16>
    %c0_18 = arith.constant 0 : index
    %c0_19 = arith.constant 0 : index
    %25 = vector.load %arg8[%c0_18, %c0_19] : memref<128x128xbf16, #tpu.memory_space<vmem>>, vector<128x128xbf16>
    %cst_20 = arith.constant dense<0.000000e+00> : vector<8x128xf32>
    %26 = tpu.matmul %24, %25, %cst_20 {dimension_numbers = #tpu.dot_dimension_numbers<[1], [0], [0], [1], [0, 0, 1, 1], [], []>} : vector<8x128xbf16>, vector<128x128xbf16>, vector<8x128xf32> -> vector<8x128xf32>
    %c0_21 = arith.constant 0 : index
    %c0_22 = arith.constant 0 : index
    %27 = vector.load %arg9[%c0_21, %c0_22] : memref<1x128xf32, #tpu.memory_space<vmem>>, vector<1x128xf32>
    %28 = vector.broadcast %27 : vector<1x128xf32> to vector<8x128xf32>
    %29 = arith.addf %26, %28 : vector<8x128xf32>
    %c0_23 = arith.constant 0 : index
    %c0_24 = arith.constant 0 : index
    %30 = vector.load %arg10[%c0_23, %c0_24] : memref<8x128xf32, #tpu.memory_space<vmem>>, vector<8x128xf32>
    tpu.vector_store %arg10[%c0_23, %c0_24], %29 {strides = array<i32>} : memref<8x128xf32, #tpu.memory_space<vmem>>, vector<8x128xf32>,
    return
  }
  func.func @transform_0(%arg0: i32) -> (i32, i32) {
    %c0_i32 = arith.constant 0 : i32
    %c0_i32_0 = arith.constant 0 : i32
    return %arg0, %c0_i32 : i32, i32
  }
  func.func @transform_1(%arg0: i32) -> (i32, i32) {
    %c0_i32 = arith.constant 0 : i32
    %c0_i32_0 = arith.constant 0 : i32
    %c0_i32_1 = arith.constant 0 : i32
    return %c0_i32, %c0_i32_0 : i32, i32
  }
  func.func @transform_2(%arg0: i32) -> (i32, i32) {
    %c0_i32 = arith.constant 0 : i32
    %c0_i32_0 = arith.constant 0 : i32
    %c0_i32_1 = arith.constant 0 : i32
    return %c0_i32, %c0_i32_0 : i32, i32
  }
  func.func @transform_3(%arg0: i32) -> (i32, i32) {
    %c0_i32 = arith.constant 0 : i32
    %c0_i32_0 = arith.constant 0 : i32
    %c0_i32_1 = arith.constant 0 : i32
    return %c0_i32, %c0_i32_0 : i32, i32
  }
  func.func @transform_4(%arg0: i32) -> (i32, i32) {
    %c0_i32 = arith.constant 0 : i32
    %c0_i32_0 = arith.constant 0 : i32
    %c0_i32_1 = arith.constant 0 : i32
    return %c0_i32, %c0_i32_0 : i32, i32
  }
  func.func @transform_5(%arg0: i32) -> (i32, i32) {
    %c0_i32 = arith.constant 0 : i32
    %c0_i32_0 = arith.constant 0 : i32
    %c0_i32_1 = arith.constant 0 : i32
    return %c0_i32, %c0_i32_0 : i32, i32
  }
  func.func @transform_6(%arg0: i32) -> (i32, i32) {
    %c0_i32 = arith.constant 0 : i32
    %c0_i32_0 = arith.constant 0 : i32
    %c0_i32_1 = arith.constant 0 : i32
    return %c0_i32, %c0_i32_0 : i32, i32
  }
  func.func @transform_7(%arg0: i32) -> (i32, i32) {
    %c0_i32 = arith.constant 0 : i32
    %c0_i32_0 = arith.constant 0 : i32
    %c0_i32_1 = arith.constant 0 : i32
    return %c0_i32, %c0_i32_0 : i32, i32
  }
  func.func @transform_8(%arg0: i32) -> (i32, i32) {
    %c0_i32 = arith.constant 0 : i32
    %c0_i32_0 = arith.constant 0 : i32
    %c0_i32_1 = arith.constant 0 : i32
    return %c0_i32, %c0_i32_0 : i32, i32
  }
  func.func @transform_9(%arg0: i32) -> (i32, i32) {
    %c0_i32 = arith.constant 0 : i32
    %c0_i32_0 = arith.constant 0 : i32
    return %arg0, %c0_i32 : i32, i32
  }
}

</mosaic_0001>

<bundles_post_ra>
// kernel: mlp_forward.1
= control target key start
LH: loop header
LB: loop body
LE: loop exit
PB: predicated region body
PF: predicated region fallthrough
CT: control target
= control target key end

     0   :  { %14 = vsyncpa [#allocation3], 0  ;;  %s9401_s0 = inlined_call_operand.vmem [shape: bf16[8,3072], index: 0, kind: input, shape index: {}]   ;;  %s9402_s1 = inlined_call_operand.hbm [shape: bf16[3072,512], index: 1, kind: input, shape index: {}]   ;;  %s9403_s2 = inlined_call_operand.hbm [shape: f32[1,512], index: 2, kind: input, shape index: {}]   ;;  %s9404_s3 = inlined_call_operand.hbm [shape: bf16[512,256], index: 3, kind: input, shape index: {}]   ;;  %s9405_s4 = inlined_call_operand.hbm [shape: f32[1,256], index: 4, kind: input, shape index: {}]   ;;  %s9406_s5 = inlined_call_operand.hbm [shape: bf16[256,128], index: 5, kind: input, shape index: {}]   ;;  %s9407_s6 = inlined_call_operand.hbm [shape: f32[1,128], index: 6, kind: input, shape index: {}]   ;;  %s9408_s7 = inlined_call_operand.hbm [shape: bf16[128,128], index: 7, kind: input, shape index: {}]   ;;  %s9409_s8 = inlined_call_operand.hbm [shape: f32[1,128], index: 8, kind: input, shape index: {}]   ;;  %s9410_s9 = inlined_call_operand.vmem [shape: f32[8,128], index: 9, kind: output, shape index: {}]  }
   0x1   :  { %15 = vsyncpa [#allocation5], 0 }
   0x2   :  { %16 = vsyncpa [#allocation8], 0 }
   0x3   :  { %17 = vsyncpa [#allocation11], 0 }
   0x4   :  { %18 = vsyncpa [#allocation14], 0  ;;  %s9048_s30 = smov [#allocation4]   ;;  %s9049_s11 = smov [#allocation7]  }
   0x5   :  { %s39_s10 = sshll.u32 %s9048_s30, 4  ;;  %s61_s12 = sshll.u32 %s9049_s11, 4  ;;  %s40_s10 = int_to_ptr.vmem [resolvable:$true] %s39_s10  ;;  %s62_s12 = int_to_ptr.vmem [resolvable:$true] %s61_s12 }
   0x6   :  { %s8886_s13 = scalar_lea.vmem %s40_s10, 64  ;;  %p8891_p1 = scmp.lt.s32.totalorder %s40_s10, %s40_s10 }
   0x7   :  { %p8887_p0 = scmp.ne.s32.totalorder %s40_s10, %s8886_s13  ;;  %p8892_p2 = scmp.lt.s32.totalorder %s8886_s13, %s8886_s13 }
   0x9   :  { %p8893_p3 = por %p8892_p2, %p8891_p1 }
   0xb   :  { %p8894_p4 = pnand %p8893_p3, %p8887_p0 }
   0xd   :  { %8897 = shalt.err (!%p8894_p4)
}
   0xe   :  { %42 = dma.hbm_to_vmem [thread:$0]  %s9403_s2, 64, %s40_s10, [#allocation5]  }
   0xf   :  { %s8906_s16 = scalar_lea.vmem %s62_s12, 32  ;;  %p8911_p6 = scmp.lt.s32.totalorder %s62_s12, %s62_s12 }
  0x10   :  { %p8907_p5 = scmp.ne.s32.totalorder %s62_s12, %s8906_s16  ;;  %p8912_p7 = scmp.lt.s32.totalorder %s8906_s16, %s8906_s16 }
  0x12   :  { %p8913_p8 = por %p8912_p7, %p8911_p6 }
  0x14   :  { %p8914_p9 = pnand %p8913_p8, %p8907_p5 }
  0x16   :  { %8917 = shalt.err (!%p8914_p9)
}
  0x17   :  { %64 = dma.hbm_to_vmem [thread:$0]  %s9405_s4, 32, %s62_s12, [#allocation8]  }
  0x18   :  { %s9050_s19 = smov [#allocation10]   ;;  %s9051_s21 = smov [#allocation2]  }
  0x19   :  { %s83_s20 = sshll.u32 %s9050_s19, 4  ;;  %s26_s22 = sshll.u32 %s9051_s21, 4  ;;  %s84_s20 = int_to_ptr.vmem [resolvable:$true] %s83_s20  ;;  %s27_s22 = int_to_ptr.vmem [resolvable:$true] %s26_s22 }
  0x1a   :  { %s8926_s23 = scalar_lea.vmem %s84_s20, 16  ;;  %s8930_s2 = scalar_lea.vmem %s84_s20, 32 }
  0x1b   :  { %p8927_p10 = scmp.ne.s32.totalorder %s84_s20, %s8926_s23  ;;  %p8931_p11 = scmp.lt.s32.totalorder %s84_s20, %s84_s20 }
  0x1c   :  { %p8932_p12 = scmp.lt.s32.totalorder %s8930_s2, %s8926_s23 }
  0x1e   :  { %p8933_p13 = por %p8932_p12, %p8931_p11 }
  0x20   :  { %p8934_p0 = pnand %p8933_p13, %p8927_p10 }
  0x22   :  { %8937 = shalt.err (!%p8934_p0)
}
  0x23   :  { %86 = dma.hbm_to_vmem [thread:$0]  %s9407_s6, 16, %s84_s20, [#allocation11]  }
  0x24   :  { %s8946_s26 = scalar_lea.vmem %s27_s22, 98304  ;;  %p8951_p2 = scmp.lt.s32.totalorder %s27_s22, %s27_s22 }
  0x25   :  { %p8947_p1 = scmp.ne.s32.totalorder %s27_s22, %s8946_s26  ;;  %p8952_p3 = scmp.lt.s32.totalorder %s8946_s26, %s8946_s26 }
  0x27   :  { %p8953_p4 = por %p8952_p3, %p8951_p2 }
  0x29   :  { %p8954_p5 = pnand %p8953_p4, %p8947_p1 }
  0x2b   :  { %8957 = shalt.err (!%p8954_p5)
}
  0x2c   :  { %s9052_s4 = smov 256   ;;  %s9053_s27 = smov 16  }
  0x2d   :  { %32 = dma.hbm_to_vmem [thread:$0]  %s9402_s1, 98304, %s27_s22, [#allocation3], %s9052_s4, %s9052_s4, %s9053_s27  }
  0x2e   :  { %s9054_s30 = smov [#allocation6]  }
  0x2f   :  { %s48_s10 = sshll.u32 %s9054_s30, 4  ;;  %s49_s10 = int_to_ptr.vmem [resolvable:$true] %s48_s10 }
  0x30   :  { %s8966_s11 = scalar_lea.vmem %s49_s10, 8192  ;;  %p8971_p7 = scmp.lt.s32.totalorder %s49_s10, %s49_s10 }
  0x31   :  { %p8967_p6 = scmp.ne.s32.totalorder %s49_s10, %s8966_s11  ;;  %p8972_p8 = scmp.lt.s32.totalorder %s8966_s11, %s8966_s11 }
  0x33   :  { %p8973_p9 = por %p8972_p8, %p8971_p7 }
  0x35   :  { %p8974_p10 = pnand %p8973_p9, %p8967_p6 }
  0x37   :  { %8977 = shalt.err (!%p8974_p10)
}
  0x38   :  { %s9055_s6 = smov 128   ;;  %s9056_s12 = smov 8  }
  0x39   :  { %54 = dma.hbm_to_vmem [thread:$0]  %s9404_s3, 8192, %s49_s10, [#allocation5], %s9055_s6, %s9055_s6, %s9056_s12  }
  0x3a   :  { %s9057_s15 = smov [#allocation9]  }
  0x3b   :  { %s70_s16 = sshll.u32 %s9057_s15, 4  ;;  %s71_s16 = int_to_ptr.vmem [resolvable:$true] %s70_s16 }
  0x3c   :  { %s8986_s1 = scalar_lea.vmem %s71_s16, 2048  ;;  %p8991_p12 = scmp.lt.s32.totalorder %s71_s16, %s71_s16 }
  0x3d   :  { %p8987_p11 = scmp.ne.s32.totalorder %s71_s16, %s8986_s1  ;;  %p8992_p13 = scmp.lt.s32.totalorder %s8986_s1, %s8986_s1 }
  0x3f   :  { %p8993_p0 = por %p8992_p13, %p8991_p12 }
  0x41   :  { %p8994_p1 = pnand %p8993_p0, %p8987_p11 }
  0x43   :  { %8997 = shalt.err (!%p8994_p1)
}
  0x44   :  { %s9058_s17 = smov 64   ;;  %s9059_s18 = smov 4  }
  0x45   :  { %76 = dma.hbm_to_vmem [thread:$0]  %s9406_s5, 2048, %s71_s16, [#allocation8], %s9058_s17, %s9058_s17, %s9059_s18  }
  0x46   :  { %s9060_s21 = smov [#allocation12]   ;;  %s9061_s23 = smov [#allocation13]  }
  0x47   :  { %s92_s22 = sshll.u32 %s9060_s21, 4  ;;  %s105_s3 = sshll.u32 %s9061_s23, 4  ;;  %s93_s22 = int_to_ptr.vmem [resolvable:$true] %s92_s22  ;;  %s106_s3 = int_to_ptr.vmem [resolvable:$true] %s105_s3 }
  0x48   :  { %s9006_s2 = scalar_lea.vmem %s93_s22, 1024  ;;  %p9011_p3 = scmp.lt.s32.totalorder %s93_s22, %s93_s22 }
  0x49   :  { %p9007_p2 = scmp.ne.s32.totalorder %s93_s22, %s9006_s2  ;;  %p9012_p4 = scmp.lt.s32.totalorder %s9006_s2, %s9006_s2 }
  0x4b   :  { %p9013_p5 = por %p9012_p4, %p9011_p3 }
  0x4d   :  { %p9014_p6 = pnand %p9013_p5, %p9007_p2 }
  0x4f   :  { %9017 = shalt.err (!%p9014_p6)
}
  0x50   :  { %98 = dma.hbm_to_vmem [thread:$0]  %s9408_s7, 1024, %s93_s22, [#allocation11], %s9058_s17, %s9058_s17, %s9059_s18  }
  0x51   :  { %s9026_s26 = scalar_lea.vmem %s106_s3, 16  ;;  %s9030_s5 = scalar_lea.vmem %s106_s3, 32 }
  0x52   :  { %p9027_p7 = scmp.ne.s32.totalorder %s106_s3, %s9026_s26  ;;  %p9031_p8 = scmp.lt.s32.totalorder %s106_s3, %s106_s3 }
  0x53   :  { %p9032_p9 = scmp.lt.s32.totalorder %s9030_s5, %s9026_s26 }
  0x55   :  { %p9033_p10 = por %p9032_p9, %p9031_p8 }
  0x57   :  { %p9034_p11 = pnand %p9033_p10, %p9027_p7 }
  0x59   :  { %9037 = shalt.err (!%p9034_p11)
}
  0x5a   :  { %108 = dma.hbm_to_vmem [thread:$0]  %s9409_s8, 16, %s106_s3, [#allocation14]  }
  0x5b   :  { %9038 = dma.done.wait [#allocation3], 98304  }
  0x5c   :  { %9039 = vsyncadd [#allocation3], 4294868992 }
  0x5d   :  { %9040 = dma.done.wait [#allocation5], 8256  }
  0x5e   :  { %9041 = vsyncadd [#allocation5], 4294959040 }
  0x5f   :  { %9042 = dma.done.wait [#allocation8], 2080  }
  0x60   :  { %9043 = vsyncadd [#allocation8], 4294965216 }
  0x61   :  { %9044 = dma.done.wait [#allocation11], 1040  }
  0x62   :  { %9045 = vsyncadd [#allocation11], 4294966256 }
  0x63   :  { %9046 = dma.done.wait [#allocation14], 16  }
  0x64   :  { %9047 = vsyncadd [#allocation14], 4294967280  ;;  %v7581_v0 = vld [vmem:[#allocation2 + $0xe4] ss:$16 sps:$4 sm:$0xff]   ;;  %v7585_v2 = vld [vmem:[#allocation2 + $0xe0] ss:$16 sps:$4 sm:$0xff]  }
  0x65   :  { %v7583_v1 = vld [vmem:[#allocation2 + $0x2e4] ss:$16 sps:$4 sm:$0xff]   ;;  %4860 = vmatprep.subr.bf16.mxu0 %v7581_v0  ;;  %v7586_v3 = vld [vmem:[#allocation2 + $0x2e0] ss:$16 sps:$4 sm:$0xff]   ;;  %v135_v48 = vld [vmem:[%s9401_s0 + $0x8] sm:$0xff]  ;;  %vm9063_vm0 = vmmov 0  }
  0x66   :  { %4901 = vmatprep.subr.bf16.mxu1 %v7583_v1  ;;  %v7587_v4 = vld [vmem:[#allocation2 + $0xc4] ss:$16 sps:$4 sm:$0xff]   ;;  %4861 = vmatpush1.bf16.msra.mxu0 %v7585_v2  ;;  %v7591_v6 = vld [vmem:[#allocation2 + $0xc0] ss:$16 sps:$4 sm:$0xff]   ;;  %v9146_v51 = vcombine.high %v135_v48, %v135_v48 }
  0x67   :  { %4902 = vmatpush1.bf16.msra.mxu1 %v7586_v3  ;;  %v7589_v5 = vld [vmem:[#allocation2 + $0x2c4] ss:$16 sps:$4 sm:$0xff]   ;;  %4862 = vmatprep.subr.bf16.mxu0 %v7587_v4  ;;  %v7592_v7 = vld [vmem:[#allocation2 + $0x2c0] ss:$16 sps:$4 sm:$0xff]  }
  0x68   :  { %4903 = vmatprep.subr.bf16.mxu1 %v7589_v5  ;;  %v7593_v8 = vld [vmem:[#allocation2 + $0xa4] ss:$16 sps:$4 sm:$0xff]   ;;  %v7597_v10 = vld [vmem:[#allocation2 + $0xa0] ss:$16 sps:$4 sm:$0xff]   ;;  %4933 = vmatprep.mubr.bf16.mxu1 %v9146_v51 }
  0x69   :  { %v7595_v9 = vld [vmem:[#allocation2 + $0x2a4] ss:$16 sps:$4 sm:$0xff]   ;;  %v7598_v11 = vld [vmem:[#allocation2 + $0x2a0] ss:$16 sps:$4 sm:$0xff]  }
  0x6a   :  { %4863 = vmatpush1.bf16.msra.mxu0 %v7591_v6  ;;  %v7599_v12 = vld [vmem:[#allocation2 + $0x84] ss:$16 sps:$4 sm:$0xff]   ;;  %v7603_v14 = vld [vmem:[#allocation2 + $0x80] ss:$16 sps:$4 sm:$0xff]  }
  0x6b   :  { %4904 = vmatpush1.bf16.msra.mxu1 %v7592_v7  ;;  %4864 = vmatprep.subr.bf16.mxu0 %v7593_v8  ;;  %v7601_v13 = vld [vmem:[#allocation2 + $0x284] ss:$16 sps:$4 sm:$0xff]   ;;  %v7604_v15 = vld [vmem:[#allocation2 + $0x280] ss:$16 sps:$4 sm:$0xff]   ;;  %v9152_v7 = vcombine.low %v135_v48, %v135_v48 }
  0x6c   :  { %4905 = vmatprep.subr.bf16.mxu1 %v7595_v9  ;;  %v7605_v16 = vld [vmem:[#allocation2 + $0x64] ss:$16 sps:$4 sm:$0xff]   ;;  %v7609_v18 = vld [vmem:[#allocation2 + $0x60] ss:$16 sps:$4 sm:$0xff]  }
  0x6d   :  { %v7607_v17 = vld [vmem:[#allocation2 + $0x264] ss:$16 sps:$4 sm:$0xff]   ;;  %v7610_v19 = vld [vmem:[#allocation2 + $0x260] ss:$16 sps:$4 sm:$0xff]  }
  0x6e   :  { %4865 = vmatpush1.bf16.msra.mxu0 %v7597_v10  ;;  %v7611_v20 = vld [vmem:[#allocation2 + $0x44] ss:$16 sps:$4 sm:$0xff]   ;;  %v7615_v22 = vld [vmem:[#allocation2 + $0x40] ss:$16 sps:$4 sm:$0xff]  }
  0x6f   :  { %4906 = vmatpush1.bf16.msra.mxu1 %v7598_v11  ;;  %4866 = vmatprep.subr.bf16.mxu0 %v7599_v12  ;;  %v7613_v21 = vld [vmem:[#allocation2 + $0x244] ss:$16 sps:$4 sm:$0xff]   ;;  %v7616_v23 = vld [vmem:[#allocation2 + $0x240] ss:$16 sps:$4 sm:$0xff]  }
  0x70   :  { %4907 = vmatprep.subr.bf16.mxu1 %v7601_v13  ;;  %v7617_v24 = vld [vmem:[#allocation2 + $0x24] ss:$16 sps:$4 sm:$0xff]   ;;  %v7621_v26 = vld [vmem:[#allocation2 + $0x20] ss:$16 sps:$4 sm:$0xff]  }
  0x71   :  { %v7619_v25 = vld [vmem:[#allocation2 + $0x224] ss:$16 sps:$4 sm:$0xff]   ;;  %v7622_v27 = vld [vmem:[#allocation2 + $0x220] ss:$16 sps:$4 sm:$0xff]  }
  0x72   :  { %4867 = vmatpush1.bf16.msra.mxu0 %v7603_v14  ;;  %v7623_v28 = vld [vmem:[#allocation2 + $0x4] ss:$16 sps:$4 sm:$0xff]   ;;  %v7627_v30 = vld [vmem:[#allocation2] ss:$16 sps:$4 sm:$0xff]  }
  0x73   :  { %4908 = vmatpush1.bf16.msra.mxu1 %v7604_v15  ;;  %4868 = vmatprep.subr.bf16.mxu0 %v7605_v16  ;;  %v7625_v29 = vld [vmem:[#allocation2 + $0x204] ss:$16 sps:$4 sm:$0xff]   ;;  %v7628_v31 = vld [vmem:[#allocation2 + $0x200] ss:$16 sps:$4 sm:$0xff]  }
  0x74   :  { %4909 = vmatprep.subr.bf16.mxu1 %v7607_v17  ;;  %v7629_v32 = vld [vmem:[#allocation2 + $0x1e4] ss:$16 sps:$4 sm:$0xff]   ;;  %v7633_v34 = vld [vmem:[#allocation2 + $0x1e0] ss:$16 sps:$4 sm:$0xff]  }
  0x75   :  { %v7631_v33 = vld [vmem:[#allocation2 + $0x3e4] ss:$16 sps:$4 sm:$0xff]   ;;  %v7634_v35 = vld [vmem:[#allocation2 + $0x3e0] ss:$16 sps:$4 sm:$0xff]  }
  0x76   :  { %4869 = vmatpush1.bf16.msra.mxu0 %v7609_v18  ;;  %v7635_v36 = vld [vmem:[#allocation2 + $0x1c4] ss:$16 sps:$4 sm:$0xff]   ;;  %v7639_v38 = vld [vmem:[#allocation2 + $0x1c0] ss:$16 sps:$4 sm:$0xff]  }
  0x77   :  { %4910 = vmatpush1.bf16.msra.mxu1 %v7610_v19  ;;  %4870 = vmatprep.subr.bf16.mxu0 %v7611_v20  ;;  %v7637_v37 = vld [vmem:[#allocation2 + $0x3c4] ss:$16 sps:$4 sm:$0xff]   ;;  %v7640_v39 = vld [vmem:[#allocation2 + $0x3c0] ss:$16 sps:$4 sm:$0xff]  }
  0x78   :  { %4911 = vmatprep.subr.bf16.mxu1 %v7613_v21  ;;  %v7641_v40 = vld [vmem:[#allocation2 + $0x1a4] ss:$16 sps:$4 sm:$0xff]   ;;  %v7645_v42 = vld [vmem:[#allocation2 + $0x1a0] ss:$16 sps:$4 sm:$0xff]  }
  0x79   :  { %v7643_v41 = vld [vmem:[#allocation2 + $0x3a4] ss:$16 sps:$4 sm:$0xff]   ;;  %v7646_v43 = vld [vmem:[#allocation2 + $0x3a0] ss:$16 sps:$4 sm:$0xff]  }
  0x7a   :  { %4871 = vmatpush1.bf16.msra.mxu0 %v7615_v22  ;;  %v7647_v44 = vld [vmem:[#allocation2 + $0x184] ss:$16 sps:$4 sm:$0xff]   ;;  %v7651_v49 = vld [vmem:[#allocation2 + $0x180] ss:$16 sps:$4 sm:$0xff]  }
  0x7b   :  { %4912 = vmatpush1.bf16.msra.mxu1 %v7616_v23  ;;  %4872 = vmatprep.subr.bf16.mxu0 %v7617_v24  ;;  %v7649_v45 = vld [vmem:[#allocation2 + $0x384] ss:$16 sps:$4 sm:$0xff]   ;;  %v7652_v50 = vld [vmem:[#allocation2 + $0x380] ss:$16 sps:$4 sm:$0xff]  }
  0x7c   :  { %4913 = vmatprep.subr.bf16.mxu1 %v7619_v25  ;;  %v134_v46 = vld [vmem:[%s9401_s0] sm:$0xff] }
  0x7d   :  { %v9141_v47 = vcombine.high %v134_v46, %v134_v46  ;;  %v7653_v52 = vld [vmem:[#allocation2 + $0x164] ss:$16 sps:$4 sm:$0xff]   ;;  %v7657_v54 = vld [vmem:[#allocation2 + $0x160] ss:$16 sps:$4 sm:$0xff]   ;;  %v9150_v6 = vcombine.low %v134_v46, %v134_v46 }
  0x7e   :  { %4873 = vmatpush1.bf16.msra.mxu0 %v7621_v26  ;;  %v7655_v53 = vld [vmem:[#allocation2 + $0x364] ss:$16 sps:$4 sm:$0xff]   ;;  %v7658_v55 = vld [vmem:[#allocation2 + $0x360] ss:$16 sps:$4 sm:$0xff]  }
  0x7f   :  { %4914 = vmatpush1.bf16.msra.mxu1 %v7622_v27  ;;  %4874 = vmatprep.subr.bf16.mxu0 %v7623_v28  ;;  %v7659_v56 = vld [vmem:[#allocation2 + $0x144] ss:$16 sps:$4 sm:$0xff]   ;;  %v7663_v58 = vld [vmem:[#allocation2 + $0x140] ss:$16 sps:$4 sm:$0xff]  }
  0x80   :  { %4915 = vmatprep.subr.bf16.mxu1 %v7625_v29  ;;  %4892 = vmatprep.mubr.bf16.mxu0 %v9141_v47  ;;  %v7661_v57 = vld [vmem:[#allocation2 + $0x344] ss:$16 sps:$4 sm:$0xff]   ;;  %v7664_v59 = vld [vmem:[#allocation2 + $0x340] ss:$16 sps:$4 sm:$0xff]  }
  0x81   :  { %v7665_v60 = vld [vmem:[#allocation2 + $0x124] ss:$16 sps:$4 sm:$0xff]   ;;  %v7669_v62 = vld [vmem:[#allocation2 + $0x120] ss:$16 sps:$4 sm:$0xff]  }
  0x82   :  { %4875 = vmatpush1.bf16.msra.mxu0 %v7627_v30  ;;  %v7667_v61 = vld [vmem:[#allocation2 + $0x324] ss:$16 sps:$4 sm:$0xff]   ;;  %v7670_v63 = vld [vmem:[#allocation2 + $0x320] ss:$16 sps:$4 sm:$0xff]  }
  0x83   :  { %4916 = vmatpush1.bf16.msra.mxu1 %v7628_v31  ;;  %4876 = vmatprep.subr.bf16.mxu0 %v7629_v32  ;;  %v7671_v0 = vld [vmem:[#allocation2 + $0x104] ss:$16 sps:$4 sm:$0xff]   ;;  %v7675_v2 = vld [vmem:[#allocation2 + $0x100] ss:$16 sps:$4 sm:$0xff]  }
  0x84   :  { %4917 = vmatprep.subr.bf16.mxu1 %v7631_v33  ;;  %v7673_v1 = vld [vmem:[#allocation2 + $0x304] ss:$16 sps:$4 sm:$0xff]   ;;  %v7676_v3 = vld [vmem:[#allocation2 + $0x300] ss:$16 sps:$4 sm:$0xff]   ;;  %v9164_v33 = vld [vmem:[%s9401_s0 + $0x18] sm:$0xff] }
  0x85   :  { %v7683_v4 = vld [vmem:[#allocation2 + $0x4e4] ss:$16 sps:$4 sm:$0xff]   ;;  %v7681_v8 = vld [vmem:[#allocation2 + $0x4e0] ss:$16 sps:$4 sm:$0xff]  }
  0x86   :  { %4877 = vmatpush2.bf16.msra.mxu0 %v7633_v34  ;;  %v7686_v5 = vld [vmem:[#allocation2 + $0x6e4] ss:$16 sps:$4 sm:$0xff]   ;;  %v7684_v9 = vld [vmem:[#allocation2 + $0x6e0] ss:$16 sps:$4 sm:$0xff]  }
  0x87   :  { %4918 = vmatpush2.bf16.msra.mxu1 %v7634_v35  ;;  %4878 = vmatprep.subr.bf16.mxu0 %v7635_v36  ;;  %v7689_v10 = vld [vmem:[#allocation2 + $0x4c4] ss:$16 sps:$4 sm:$0xff]   ;;  %v7687_v12 = vld [vmem:[#allocation2 + $0x4c0] ss:$16 sps:$4 sm:$0xff]  }
  0x88   :  { %4919 = vmatprep.subr.bf16.mxu1 %v7637_v37  ;;  %v7692_v11 = vld [vmem:[#allocation2 + $0x6c4] ss:$16 sps:$4 sm:$0xff]   ;;  %v7690_v13 = vld [vmem:[#allocation2 + $0x6c0] ss:$16 sps:$4 sm:$0xff]   ;;  %v9172_v37 = vcombine.high %v9164_v33, %v9164_v33 }
  0x89   :  { %v7695_v14 = vld [vmem:[#allocation2 + $0x4a4] ss:$16 sps:$4 sm:$0xff]   ;;  %v7693_v16 = vld [vmem:[#allocation2 + $0x4a0] ss:$16 sps:$4 sm:$0xff]  }
  0x8a   :  { %4879 = vmatpush2.bf16.msra.mxu0 %v7639_v38  ;;  %v7698_v15 = vld [vmem:[#allocation2 + $0x6a4] ss:$16 sps:$4 sm:$0xff]   ;;  %v7696_v17 = vld [vmem:[#allocation2 + $0x6a0] ss:$16 sps:$4 sm:$0xff]  }
  0x8b   :  { %4920 = vmatpush2.bf16.msra.mxu1 %v7640_v39  ;;  %4880 = vmatprep.subr.bf16.mxu0 %v7641_v40  ;;  %v7701_v18 = vld [vmem:[#allocation2 + $0x484] ss:$16 sps:$4 sm:$0xff]   ;;  %v7699_v20 = vld [vmem:[#allocation2 + $0x480] ss:$16 sps:$4 sm:$0xff]  }
  0x8c   :  { %4921 = vmatprep.subr.bf16.mxu1 %v7643_v41  ;;  %v7704_v19 = vld [vmem:[#allocation2 + $0x684] ss:$16 sps:$4 sm:$0xff]   ;;  %v7702_v21 = vld [vmem:[#allocation2 + $0x680] ss:$16 sps:$4 sm:$0xff]  }
  0x8d   :  { %v7707_v22 = vld [vmem:[#allocation2 + $0x464] ss:$16 sps:$4 sm:$0xff]   ;;  %v7705_v24 = vld [vmem:[#allocation2 + $0x460] ss:$16 sps:$4 sm:$0xff]  }
  0x8e   :  { %4881 = vmatpush2.bf16.msra.mxu0 %v7645_v42  ;;  %v7710_v23 = vld [vmem:[#allocation2 + $0x664] ss:$16 sps:$4 sm:$0xff]   ;;  %v7708_v25 = vld [vmem:[#allocation2 + $0x660] ss:$16 sps:$4 sm:$0xff]  }
  0x8f   :  { %4922 = vmatpush2.bf16.msra.mxu1 %v7646_v43  ;;  %4882 = vmatprep.subr.bf16.mxu0 %v7647_v44  ;;  %v7713_v26 = vld [vmem:[#allocation2 + $0x444] ss:$16 sps:$4 sm:$0xff]   ;;  %v7711_v28 = vld [vmem:[#allocation2 + $0x440] ss:$16 sps:$4 sm:$0xff]  }
  0x90   :  { %4923 = vmatprep.subr.bf16.mxu1 %v7649_v45  ;;  %v7716_v27 = vld [vmem:[#allocation2 + $0x644] ss:$16 sps:$4 sm:$0xff]   ;;  %v7714_v29 = vld [vmem:[#allocation2 + $0x640] ss:$16 sps:$4 sm:$0xff]  }
  0x91   :  { %v7719_v30 = vld [vmem:[#allocation2 + $0x424] ss:$16 sps:$4 sm:$0xff]   ;;  %v7717_v34 = vld [vmem:[#allocation2 + $0x420] ss:$16 sps:$4 sm:$0xff]  }
  0x92   :  { %4883 = vmatpush2.bf16.msra.mxu0 %v7651_v49  ;;  %v7722_v31 = vld [vmem:[#allocation2 + $0x624] ss:$16 sps:$4 sm:$0xff]   ;;  %v7720_v35 = vld [vmem:[#allocation2 + $0x620] ss:$16 sps:$4 sm:$0xff]  }
  0x93   :  { %4924 = vmatpush2.bf16.msra.mxu1 %v7652_v50  ;;  %4884 = vmatprep.subr.bf16.mxu0 %v7653_v52  ;;  %v9159_v32 = vld [vmem:[%s9401_s0 + $0x10] sm:$0xff] }
  0x94   :  { %4925 = vmatprep.subr.bf16.mxu1 %v7655_v53  ;;  %v9168_v36 = vcombine.high %v9159_v32, %v9159_v32  ;;  %v7725_v38 = vld [vmem:[#allocation2 + $0x404] ss:$16 sps:$4 sm:$0xff]   ;;  %v7723_v40 = vld [vmem:[#allocation2 + $0x400] ss:$16 sps:$4 sm:$0xff]  }
  0x95   :  { %v7728_v39 = vld [vmem:[#allocation2 + $0x604] ss:$16 sps:$4 sm:$0xff]   ;;  %v7726_v41 = vld [vmem:[#allocation2 + $0x600] ss:$16 sps:$4 sm:$0xff]  }
  0x96   :  { %4885 = vmatpush2.bf16.msra.mxu0 %v7657_v54  ;;  %v7731_v42 = vld [vmem:[#allocation2 + $0x5e4] ss:$16 sps:$4 sm:$0xff]   ;;  %v7729_v44 = vld [vmem:[#allocation2 + $0x5e0] ss:$16 sps:$4 sm:$0xff]  }
  0x97   :  { %4926 = vmatpush2.bf16.msra.mxu1 %v7658_v55  ;;  %4886 = vmatprep.subr.bf16.mxu0 %v7659_v56  ;;  %v7734_v43 = vld [vmem:[#allocation2 + $0x7e4] ss:$16 sps:$4 sm:$0xff]   ;;  %v7732_v45 = vld [vmem:[#allocation2 + $0x7e0] ss:$16 sps:$4 sm:$0xff]  }
  0x98   :  { %4927 = vmatprep.subr.bf16.mxu1 %v7661_v57  ;;  %v7737_v46 = vld [vmem:[#allocation2 + $0x5c4] ss:$16 sps:$4 sm:$0xff]   ;;  %v7735_v49 = vld [vmem:[#allocation2 + $0x5c0] ss:$16 sps:$4 sm:$0xff]  }
  0x99   :  { %v7740_v48 = vld [vmem:[#allocation2 + $0x7c4] ss:$16 sps:$4 sm:$0xff]   ;;  %v7738_v50 = vld [vmem:[#allocation2 + $0x7c0] ss:$16 sps:$4 sm:$0xff]  }
  0x9a   :  { %4887 = vmatpush2.bf16.msra.mxu0 %v7663_v58  ;;  %v7743_v52 = vld [vmem:[#allocation2 + $0x5a4] ss:$16 sps:$4 sm:$0xff]   ;;  %v7741_v54 = vld [vmem:[#allocation2 + $0x5a0] ss:$16 sps:$4 sm:$0xff]  }
  0x9b   :  { %4928 = vmatpush2.bf16.msra.mxu1 %v7664_v59  ;;  %4888 = vmatprep.subr.bf16.mxu0 %v7665_v60  ;;  %v7746_v53 = vld [vmem:[#allocation2 + $0x7a4] ss:$16 sps:$4 sm:$0xff]   ;;  %v7744_v55 = vld [vmem:[#allocation2 + $0x7a0] ss:$16 sps:$4 sm:$0xff]  }
  0x9c   :  { %4929 = vmatprep.subr.bf16.mxu1 %v7667_v61  ;;  %v7749_v56 = vld [vmem:[#allocation2 + $0x584] ss:$16 sps:$4 sm:$0xff]   ;;  %v7747_v58 = vld [vmem:[#allocation2 + $0x580] ss:$16 sps:$4 sm:$0xff]  }
  0x9d   :  { %v7752_v57 = vld [vmem:[#allocation2 + $0x784] ss:$16 sps:$4 sm:$0xff]   ;;  %v7750_v59 = vld [vmem:[#allocation2 + $0x780] ss:$16 sps:$4 sm:$0xff]  }
  0x9e   :  { %4889 = vmatpush2.bf16.msra.mxu0 %v7669_v62  ;;  %v7755_v60 = vld [vmem:[#allocation2 + $0x564] ss:$16 sps:$4 sm:$0xff]   ;;  %v7753_v62 = vld [vmem:[#allocation2 + $0x560] ss:$16 sps:$4 sm:$0xff]  }
  0x9f   :  { %4930 = vmatpush2.bf16.msra.mxu1 %v7670_v63  ;;  %4890 = vmatprep.subr.bf16.mxu0 %v7671_v0  ;;  %v7758_v61 = vld [vmem:[#allocation2 + $0x764] ss:$16 sps:$4 sm:$0xff]   ;;  %v7756_v63 = vld [vmem:[#allocation2 + $0x760] ss:$16 sps:$4 sm:$0xff]  }
  0xa0   :  { %4931 = vmatprep.subr.bf16.mxu1 %v7673_v1  ;;  %v7761_v0 = vld [vmem:[#allocation2 + $0x544] ss:$16 sps:$4 sm:$0xff]  }
  0xa1   :  { %v7764_v1 = vld [vmem:[#allocation2 + $0x744] ss:$16 sps:$4 sm:$0xff]  }
  0xa2   :  { %4891 = vmatpush2.bf16.msra.mxu0 %v7675_v2  ;;  %v7759_v2 = vld [vmem:[#allocation2 + $0x540] ss:$16 sps:$4 sm:$0xff]  }
  0xa3   :  { %4932 = vmatpush2.bf16.msra.mxu1 %v7676_v3  ;;  %4942 = vmatprep.subr.bf16.mxu0 %v7683_v4  ;;  %v7762_v3 = vld [vmem:[#allocation2 + $0x740] ss:$16 sps:$4 sm:$0xff]   ;;  %v7767_v4 = vld [vmem:[#allocation2 + $0x524] ss:$16 sps:$4 sm:$0xff]  }
  0xa4   :  { %4983 = vmatprep.subr.bf16.mxu1 %v7686_v5  ;;  %v7770_v5 = vld [vmem:[#allocation2 + $0x724] ss:$16 sps:$4 sm:$0xff]  }
  0xa5   :  { %4893 = vmatmul.mubr.bf16.vlgmr.msra.gmra.mxu0 %v9150_v6 }
  0xa6   :  { %4934 = vmatmul.mubr.bf16.vlgmr.msra.gmra.mxu1 %v9152_v7  ;;  %4943 = vmatpush1.bf16.msra.mxu0 %v7681_v8  ;;  %v7765_v8 = vld [vmem:[#allocation2 + $0x520] ss:$16 sps:$4 sm:$0xff]  }
  0xa7   :  { %4984 = vmatpush1.bf16.msra.mxu1 %v7684_v9  ;;  %4944 = vmatprep.subr.bf16.mxu0 %v7689_v10  ;;  %v7768_v9 = vld [vmem:[#allocation2 + $0x720] ss:$16 sps:$4 sm:$0xff]   ;;  %v7773_v10 = vld [vmem:[#allocation2 + $0x504] ss:$16 sps:$4 sm:$0xff]  }
  0xa8   :  { %4985 = vmatprep.subr.bf16.mxu1 %v7692_v11  ;;  %4974 = vmatprep.mubr.bf16.mxu0 %v9168_v36  ;;  %v7776_v11 = vld [vmem:[#allocation2 + $0x704] ss:$16 sps:$4 sm:$0xff]  }
  0xa9   :  { %5015 = vmatprep.mubr.bf16.mxu1 %v9172_v37 }
  0xaa   :  { %4945 = vmatpush1.bf16.msra.mxu0 %v7687_v12  ;;  %v7771_v12 = vld [vmem:[#allocation2 + $0x500] ss:$16 sps:$4 sm:$0xff]  }
  0xab   :  { %4986 = vmatpush1.bf16.msra.mxu1 %v7690_v13  ;;  %4946 = vmatprep.subr.bf16.mxu0 %v7695_v14  ;;  %v7774_v13 = vld [vmem:[#allocation2 + $0x700] ss:$16 sps:$4 sm:$0xff]   ;;  %v7783_v14 = vld [vmem:[#allocation2 + $0x8e4] ss:$16 sps:$4 sm:$0xff]  }
  0xac   :  { %4987 = vmatprep.subr.bf16.mxu1 %v7698_v15  ;;  %v7786_v15 = vld [vmem:[#allocation2 + $0xae4] ss:$16 sps:$4 sm:$0xff]  }
  0xae   :  { %4947 = vmatpush1.bf16.msra.mxu0 %v7693_v16  ;;  %v9178_v16 = vcombine.low %v9159_v32, %v9159_v32  ;;  %v7801_v32 = vld [vmem:[#allocation2 + $0x884] ss:$16 sps:$4 sm:$0xff]  }
  0xaf   :  { %4988 = vmatpush1.bf16.msra.mxu1 %v7696_v17  ;;  %4948 = vmatprep.subr.bf16.mxu0 %v7701_v18  ;;  %v9182_v17 = vcombine.low %v9164_v33, %v9164_v33  ;;  %v7781_v18 = vld [vmem:[#allocation2 + $0x8e0] ss:$16 sps:$4 sm:$0xff]   ;;  %v7804_v33 = vld [vmem:[#allocation2 + $0xa84] ss:$16 sps:$4 sm:$0xff]  }
  0xb0   :  { %4989 = vmatprep.subr.bf16.mxu1 %v7704_v19  ;;  %v7784_v19 = vld [vmem:[#allocation2 + $0xae0] ss:$16 sps:$4 sm:$0xff]  }
  0xb2   :  { %4949 = vmatpush1.bf16.msra.mxu0 %v7699_v20  ;;  %v7789_v20 = vld [vmem:[#allocation2 + $0x8c4] ss:$16 sps:$4 sm:$0xff]  }
  0xb3   :  { %4990 = vmatpush1.bf16.msra.mxu1 %v7702_v21  ;;  %4950 = vmatprep.subr.bf16.mxu0 %v7707_v22  ;;  %v7792_v21 = vld [vmem:[#allocation2 + $0xac4] ss:$16 sps:$4 sm:$0xff]  }
  0xb4   :  { %4991 = vmatprep.subr.bf16.mxu1 %v7710_v23  ;;  %v9187_v22 = vld [vmem:[%s9401_s0 + $0x20] sm:$0xff]  ;;  %v9192_v23 = vld [vmem:[%s9401_s0 + $0x28] sm:$0xff] }
  0xb6   :  { %4951 = vmatpush1.bf16.msra.mxu0 %v7705_v24  ;;  %v9196_v24 = vcombine.high %v9187_v22, %v9187_v22 }
  0xb7   :  { %4992 = vmatpush1.bf16.msra.mxu1 %v7708_v25  ;;  %4952 = vmatprep.subr.bf16.mxu0 %v7713_v26  ;;  %v9200_v25 = vcombine.high %v9192_v23, %v9192_v23  ;;  %v7787_v26 = vld [vmem:[#allocation2 + $0x8c0] ss:$16 sps:$4 sm:$0xff]  }
  0xb8   :  { %4993 = vmatprep.subr.bf16.mxu1 %v7716_v27  ;;  %v7790_v27 = vld [vmem:[#allocation2 + $0xac0] ss:$16 sps:$4 sm:$0xff]  }
  0xba   :  { %4953 = vmatpush1.bf16.msra.mxu0 %v7711_v28  ;;  %v7795_v28 = vld [vmem:[#allocation2 + $0x8a4] ss:$16 sps:$4 sm:$0xff]  }
  0xbb   :  { %4994 = vmatpush1.bf16.msra.mxu1 %v7714_v29  ;;  %4954 = vmatprep.subr.bf16.mxu0 %v7719_v30  ;;  %v7798_v29 = vld [vmem:[#allocation2 + $0xaa4] ss:$16 sps:$4 sm:$0xff]   ;;  %v7793_v30 = vld [vmem:[#allocation2 + $0x8a0] ss:$16 sps:$4 sm:$0xff]  }
  0xbc   :  { %4995 = vmatprep.subr.bf16.mxu1 %v7722_v31  ;;  %v7796_v31 = vld [vmem:[#allocation2 + $0xaa0] ss:$16 sps:$4 sm:$0xff]  }
  0xbe   :  { %4955 = vmatpush1.bf16.msra.mxu0 %v7717_v34  ;;  %v7799_v34 = vld [vmem:[#allocation2 + $0x880] ss:$16 sps:$4 sm:$0xff]  }
  0xbf   :  { %4996 = vmatpush1.bf16.msra.mxu1 %v7720_v35  ;;  %4956 = vmatprep.subr.bf16.mxu0 %v7725_v38  ;;  %v7802_v35 = vld [vmem:[#allocation2 + $0xa80] ss:$16 sps:$4 sm:$0xff]   ;;  %v7807_v38 = vld [vmem:[#allocation2 + $0x864] ss:$16 sps:$4 sm:$0xff]  }
  0xc0   :  { %4997 = vmatprep.subr.bf16.mxu1 %v7728_v39  ;;  %v7810_v39 = vld [vmem:[#allocation2 + $0xa64] ss:$16 sps:$4 sm:$0xff]  }
  0xc2   :  { %4957 = vmatpush1.bf16.msra.mxu0 %v7723_v40  ;;  %v7805_v40 = vld [vmem:[#allocation2 + $0x860] ss:$16 sps:$4 sm:$0xff]  }
  0xc3   :  { %4998 = vmatpush1.bf16.msra.mxu1 %v7726_v41  ;;  %4958 = vmatprep.subr.bf16.mxu0 %v7731_v42  ;;  %v7808_v41 = vld [vmem:[#allocation2 + $0xa60] ss:$16 sps:$4 sm:$0xff]   ;;  %v7813_v42 = vld [vmem:[#allocation2 + $0x844] ss:$16 sps:$4 sm:$0xff]  }
  0xc4   :  { %4999 = vmatprep.subr.bf16.mxu1 %v7734_v43  ;;  %v7816_v43 = vld [vmem:[#allocation2 + $0xa44] ss:$16 sps:$4 sm:$0xff]  }
  0xc6   :  { %4959 = vmatpush2.bf16.msra.mxu0 %v7729_v44  ;;  %v7811_v44 = vld [vmem:[#allocation2 + $0x840] ss:$16 sps:$4 sm:$0xff]  }
  0xc7   :  { %5000 = vmatpush2.bf16.msra.mxu1 %v7732_v45  ;;  %4960 = vmatprep.subr.bf16.mxu0 %v7737_v46  ;;  %v7814_v45 = vld [vmem:[#allocation2 + $0xa40] ss:$16 sps:$4 sm:$0xff]   ;;  %v7819_v46 = vld [vmem:[#allocation2 + $0x824] ss:$16 sps:$4 sm:$0xff]  }
  0xc8   :  { %5001 = vmatprep.subr.bf16.mxu1 %v7740_v48  ;;  %v7822_v48 = vld [vmem:[#allocation2 + $0xa24] ss:$16 sps:$4 sm:$0xff]  }
  0xca   :  { %4961 = vmatpush2.bf16.msra.mxu0 %v7735_v49  ;;  %v7817_v49 = vld [vmem:[#allocation2 + $0x820] ss:$16 sps:$4 sm:$0xff]  }
  0xcb   :  { %5002 = vmatpush2.bf16.msra.mxu1 %v7738_v50  ;;  %4962 = vmatprep.subr.bf16.mxu0 %v7743_v52  ;;  %v7820_v50 = vld [vmem:[#allocation2 + $0xa20] ss:$16 sps:$4 sm:$0xff]   ;;  %v7825_v52 = vld [vmem:[#allocation2 + $0x804] ss:$16 sps:$4 sm:$0xff]  }
  0xcc   :  { %5003 = vmatprep.subr.bf16.mxu1 %v7746_v53  ;;  %v7828_v53 = vld [vmem:[#allocation2 + $0xa04] ss:$16 sps:$4 sm:$0xff]  }
  0xce   :  { %4963 = vmatpush2.bf16.msra.mxu0 %v7741_v54  ;;  %v7823_v54 = vld [vmem:[#allocation2 + $0x800] ss:$16 sps:$4 sm:$0xff]  }
  0xcf   :  { %5004 = vmatpush2.bf16.msra.mxu1 %v7744_v55  ;;  %4964 = vmatprep.subr.bf16.mxu0 %v7749_v56  ;;  %v7826_v55 = vld [vmem:[#allocation2 + $0xa00] ss:$16 sps:$4 sm:$0xff]   ;;  %v7831_v56 = vld [vmem:[#allocation2 + $0x9e4] ss:$16 sps:$4 sm:$0xff]  }
  0xd0   :  { %5005 = vmatprep.subr.bf16.mxu1 %v7752_v57  ;;  %v7834_v57 = vld [vmem:[#allocation2 + $0xbe4] ss:$16 sps:$4 sm:$0xff]  }
  0xd2   :  { %4965 = vmatpush2.bf16.msra.mxu0 %v7747_v58  ;;  %v7829_v58 = vld [vmem:[#allocation2 + $0x9e0] ss:$16 sps:$4 sm:$0xff]  }
  0xd3   :  { %5006 = vmatpush2.bf16.msra.mxu1 %v7750_v59  ;;  %4966 = vmatprep.subr.bf16.mxu0 %v7755_v60  ;;  %v7832_v59 = vld [vmem:[#allocation2 + $0xbe0] ss:$16 sps:$4 sm:$0xff]   ;;  %v7837_v60 = vld [vmem:[#allocation2 + $0x9c4] ss:$16 sps:$4 sm:$0xff]  }
  0xd4   :  { %5007 = vmatprep.subr.bf16.mxu1 %v7758_v61  ;;  %v7840_v61 = vld [vmem:[#allocation2 + $0xbc4] ss:$16 sps:$4 sm:$0xff]  }
  0xd6   :  { %4967 = vmatpush2.bf16.msra.mxu0 %v7753_v62  ;;  %v7835_v62 = vld [vmem:[#allocation2 + $0x9c0] ss:$16 sps:$4 sm:$0xff]  }
  0xd7   :  { %5008 = vmatpush2.bf16.msra.mxu1 %v7756_v63  ;;  %4968 = vmatprep.subr.bf16.mxu0 %v7761_v0  ;;  %v7838_v63 = vld [vmem:[#allocation2 + $0xbc0] ss:$16 sps:$4 sm:$0xff]   ;;  %v7843_v0 = vld [vmem:[#allocation2 + $0x9a4] ss:$16 sps:$4 sm:$0xff]  }
  0xd8   :  { %5009 = vmatprep.subr.bf16.mxu1 %v7764_v1  ;;  %v7846_v1 = vld [vmem:[#allocation2 + $0xba4] ss:$16 sps:$4 sm:$0xff]  }
  0xda   :  { %4969 = vmatpush2.bf16.msra.mxu0 %v7759_v2  ;;  %v7841_v2 = vld [vmem:[#allocation2 + $0x9a0] ss:$16 sps:$4 sm:$0xff]  }
  0xdb   :  { %5010 = vmatpush2.bf16.msra.mxu1 %v7762_v3  ;;  %4970 = vmatprep.subr.bf16.mxu0 %v7767_v4  ;;  %v7844_v3 = vld [vmem:[#allocation2 + $0xba0] ss:$16 sps:$4 sm:$0xff]   ;;  %v7849_v4 = vld [vmem:[#allocation2 + $0x984] ss:$16 sps:$4 sm:$0xff]  }
  0xdc   :  { %5011 = vmatprep.subr.bf16.mxu1 %v7770_v5  ;;  %v7852_v5 = vld [vmem:[#allocation2 + $0xb84] ss:$16 sps:$4 sm:$0xff]  }
  0xde   :  { %4971 = vmatpush2.bf16.msra.mxu0 %v7765_v8  ;;  %v7847_v8 = vld [vmem:[#allocation2 + $0x980] ss:$16 sps:$4 sm:$0xff]  }
  0xdf   :  { %5012 = vmatpush2.bf16.msra.mxu1 %v7768_v9  ;;  %4972 = vmatprep.subr.bf16.mxu0 %v7773_v10  ;;  %v7850_v9 = vld [vmem:[#allocation2 + $0xb80] ss:$16 sps:$4 sm:$0xff]   ;;  %v7855_v10 = vld [vmem:[#allocation2 + $0x964] ss:$16 sps:$4 sm:$0xff]  }
  0xe0   :  { %5013 = vmatprep.subr.bf16.mxu1 %v7776_v11  ;;  %v7858_v11 = vld [vmem:[#allocation2 + $0xb64] ss:$16 sps:$4 sm:$0xff]  }
  0xe2   :  { %4973 = vmatpush2.bf16.msra.mxu0 %v7771_v12  ;;  %v7853_v12 = vld [vmem:[#allocation2 + $0x960] ss:$16 sps:$4 sm:$0xff]  }
  0xe3   :  { %5014 = vmatpush2.bf16.msra.mxu1 %v7774_v13  ;;  %5024 = vmatprep.subr.bf16.mxu0 %v7783_v14  ;;  %v7856_v13 = vld [vmem:[#allocation2 + $0xb60] ss:$16 sps:$4 sm:$0xff]   ;;  %v7861_v14 = vld [vmem:[#allocation2 + $0x944] ss:$16 sps:$4 sm:$0xff]  }
  0xe4   :  { %5065 = vmatprep.subr.bf16.mxu1 %v7786_v15  ;;  %v7864_v15 = vld [vmem:[#allocation2 + $0xb44] ss:$16 sps:$4 sm:$0xff]  }
  0xe5   :  { %4975 = vmatmul.mubr.bf16.vlgmr.msra.gmra.mxu0 %v9178_v16 }
  0xe6   :  { %5016 = vmatmul.mubr.bf16.vlgmr.msra.gmra.mxu1 %v9182_v17  ;;  %5025 = vmatpush1.bf16.msra.mxu0 %v7781_v18  ;;  %v7859_v18 = vld [vmem:[#allocation2 + $0x940] ss:$16 sps:$4 sm:$0xff]  }
  0xe7   :  { %5066 = vmatpush1.bf16.msra.mxu1 %v7784_v19  ;;  %5026 = vmatprep.subr.bf16.mxu0 %v7789_v20  ;;  %v7862_v19 = vld [vmem:[#allocation2 + $0xb40] ss:$16 sps:$4 sm:$0xff]   ;;  %v7867_v20 = vld [vmem:[#allocation2 + $0x924] ss:$16 sps:$4 sm:$0xff]  }
  0xe8   :  { %5067 = vmatprep.subr.bf16.mxu1 %v7792_v21  ;;  %5056 = vmatprep.mubr.bf16.mxu0 %v9196_v24  ;;  %v7870_v21 = vld [vmem:[#allocation2 + $0xb24] ss:$16 sps:$4 sm:$0xff]  }
  0xe9   :  { %5097 = vmatprep.mubr.bf16.mxu1 %v9200_v25 }
  0xea   :  { %5027 = vmatpush1.bf16.msra.mxu0 %v7787_v26  ;;  %v7865_v26 = vld [vmem:[#allocation2 + $0x920] ss:$16 sps:$4 sm:$0xff]  }
  0xeb   :  { %5068 = vmatpush1.bf16.msra.mxu1 %v7790_v27  ;;  %5028 = vmatprep.subr.bf16.mxu0 %v7795_v28  ;;  %v7868_v27 = vld [vmem:[#allocation2 + $0xb20] ss:$16 sps:$4 sm:$0xff]   ;;  %v7873_v28 = vld [vmem:[#allocation2 + $0x904] ss:$16 sps:$4 sm:$0xff]  }
  0xec   :  { %5069 = vmatprep.subr.bf16.mxu1 %v7798_v29  ;;  %v7876_v29 = vld [vmem:[#allocation2 + $0xb04] ss:$16 sps:$4 sm:$0xff]  }
  0xee   :  { %5029 = vmatpush1.bf16.msra.mxu0 %v7793_v30  ;;  %v7871_v30 = vld [vmem:[#allocation2 + $0x900] ss:$16 sps:$4 sm:$0xff]  }
  0xef   :  { %5070 = vmatpush1.bf16.msra.mxu1 %v7796_v31  ;;  %5030 = vmatprep.subr.bf16.mxu0 %v7801_v32  ;;  %v7874_v31 = vld [vmem:[#allocation2 + $0xb00] ss:$16 sps:$4 sm:$0xff]   ;;  %v7883_v32 = vld [vmem:[#allocation2 + $0xce4] ss:$16 sps:$4 sm:$0xff]  }
  0xf0   :  { %5071 = vmatprep.subr.bf16.mxu1 %v7804_v33  ;;  %v7886_v33 = vld [vmem:[#allocation2 + $0xee4] ss:$16 sps:$4 sm:$0xff]  }
  0xf2   :  { %5031 = vmatpush1.bf16.msra.mxu0 %v7799_v34  ;;  %v7881_v34 = vld [vmem:[#allocation2 + $0xce0] ss:$16 sps:$4 sm:$0xff]  }
  0xf3   :  { %5072 = vmatpush1.bf16.msra.mxu1 %v7802_v35  ;;  %5032 = vmatprep.subr.bf16.mxu0 %v7807_v38  ;;  %v9209_v35 = vld [vmem:[%s9401_s0 + $0x30] sm:$0xff]  ;;  %v9213_v38 = vcombine.low %v9187_v22, %v9187_v22 }
  0xf4   :  { %5073 = vmatprep.subr.bf16.mxu1 %v7810_v39  ;;  %v9217_v39 = vcombine.low %v9192_v23, %v9192_v23  ;;  %v9226_v22 = vcombine.high %v9209_v35, %v9209_v35 }
  0xf6   :  { %5033 = vmatpush1.bf16.msra.mxu0 %v7805_v40  ;;  %v9222_v40 = vld [vmem:[%s9401_s0 + $0x38] sm:$0xff] }
  0xf7   :  { %5074 = vmatpush1.bf16.msra.mxu1 %v7808_v41  ;;  %5034 = vmatprep.subr.bf16.mxu0 %v7813_v42  ;;  %v7884_v41 = vld [vmem:[#allocation2 + $0xee0] ss:$16 sps:$4 sm:$0xff]   ;;  %v7889_v42 = vld [vmem:[#allocation2 + $0xcc4] ss:$16 sps:$4 sm:$0xff]   ;;  %v9230_v23 = vcombine.high %v9222_v40, %v9222_v40 }
  0xf8   :  { %5075 = vmatprep.subr.bf16.mxu1 %v7816_v43  ;;  %v7892_v43 = vld [vmem:[#allocation2 + $0xec4] ss:$16 sps:$4 sm:$0xff]  }
  0xfa   :  { %5035 = vmatpush1.bf16.msra.mxu0 %v7811_v44  ;;  %v7887_v44 = vld [vmem:[#allocation2 + $0xcc0] ss:$16 sps:$4 sm:$0xff]  }
  0xfb   :  { %5076 = vmatpush1.bf16.msra.mxu1 %v7814_v45  ;;  %5036 = vmatprep.subr.bf16.mxu0 %v7819_v46  ;;  %v7890_v45 = vld [vmem:[#allocation2 + $0xec0] ss:$16 sps:$4 sm:$0xff]   ;;  %v7895_v46 = vld [vmem:[#allocation2 + $0xca4] ss:$16 sps:$4 sm:$0xff]  }
  0xfc   :  { %5077 = vmatprep.subr.bf16.mxu1 %v7822_v48  ;;  %v7898_v48 = vld [vmem:[#allocation2 + $0xea4] ss:$16 sps:$4 sm:$0xff]  }
  0xfe   :  { %5037 = vmatpush1.bf16.msra.mxu0 %v7817_v49  ;;  %v7893_v49 = vld [vmem:[#allocation2 + $0xca0] ss:$16 sps:$4 sm:$0xff]  }
  0xff   :  { %5078 = vmatpush1.bf16.msra.mxu1 %v7820_v50  ;;  %5038 = vmatprep.subr.bf16.mxu0 %v7825_v52  ;;  %v7896_v50 = vld [vmem:[#allocation2 + $0xea0] ss:$16 sps:$4 sm:$0xff]   ;;  %v7901_v52 = vld [vmem:[#allocation2 + $0xc84] ss:$16 sps:$4 sm:$0xff]  }
 0x100   :  { %5079 = vmatprep.subr.bf16.mxu1 %v7828_v53  ;;  %v7904_v53 = vld [vmem:[#allocation2 + $0xe84] ss:$16 sps:$4 sm:$0xff]  }
 0x102   :  { %5039 = vmatpush1.bf16.msra.mxu0 %v7823_v54  ;;  %v7899_v54 = vld [vmem:[#allocation2 + $0xc80] ss:$16 sps:$4 sm:$0xff]  }
 0x103   :  { %5080 = vmatpush1.bf16.msra.mxu1 %v7826_v55  ;;  %5040 = vmatprep.subr.bf16.mxu0 %v7831_v56  ;;  %v7902_v55 = vld [vmem:[#allocation2 + $0xe80] ss:$16 sps:$4 sm:$0xff]   ;;  %v7907_v56 = vld [vmem:[#allocation2 + $0xc64] ss:$16 sps:$4 sm:$0xff]  }
 0x104   :  { %5081 = vmatprep.subr.bf16.mxu1 %v7834_v57  ;;  %v7910_v57 = vld [vmem:[#allocation2 + $0xe64] ss:$16 sps:$4 sm:$0xff]  }
 0x106   :  { %5041 = vmatpush2.bf16.msra.mxu0 %v7829_v58  ;;  %v7905_v58 = vld [vmem:[#allocation2 + $0xc60] ss:$16 sps:$4 sm:$0xff]  }
 0x107   :  { %5082 = vmatpush2.bf16.msra.mxu1 %v7832_v59  ;;  %5042 = vmatprep.subr.bf16.mxu0 %v7837_v60  ;;  %v7908_v59 = vld [vmem:[#allocation2 + $0xe60] ss:$16 sps:$4 sm:$0xff]   ;;  %v7913_v60 = vld [vmem:[#allocation2 + $0xc44] ss:$16 sps:$4 sm:$0xff]  }
 0x108   :  { %5083 = vmatprep.subr.bf16.mxu1 %v7840_v61  ;;  %v7916_v61 = vld [vmem:[#allocation2 + $0xe44] ss:$16 sps:$4 sm:$0xff]  }
 0x10a   :  { %5043 = vmatpush2.bf16.msra.mxu0 %v7835_v62  ;;  %v7911_v62 = vld [vmem:[#allocation2 + $0xc40] ss:$16 sps:$4 sm:$0xff]  }
 0x10b   :  { %5084 = vmatpush2.bf16.msra.mxu1 %v7838_v63  ;;  %5044 = vmatprep.subr.bf16.mxu0 %v7843_v0  ;;  %v7914_v63 = vld [vmem:[#allocation2 + $0xe40] ss:$16 sps:$4 sm:$0xff]   ;;  %v7919_v0 = vld [vmem:[#allocation2 + $0xc24] ss:$16 sps:$4 sm:$0xff]  }
 0x10c   :  { %5085 = vmatprep.subr.bf16.mxu1 %v7846_v1  ;;  %v7922_v1 = vld [vmem:[#allocation2 + $0xe24] ss:$16 sps:$4 sm:$0xff]  }
 0x10e   :  { %5045 = vmatpush2.bf16.msra.mxu0 %v7841_v2  ;;  %v7917_v2 = vld [vmem:[#allocation2 + $0xc20] ss:$16 sps:$4 sm:$0xff]  }
 0x10f   :  { %5086 = vmatpush2.bf16.msra.mxu1 %v7844_v3  ;;  %5046 = vmatprep.subr.bf16.mxu0 %v7849_v4  ;;  %v7920_v3 = vld [vmem:[#allocation2 + $0xe20] ss:$16 sps:$4 sm:$0xff]   ;;  %v7925_v4 = vld [vmem:[#allocation2 + $0xc04] ss:$16 sps:$4 sm:$0xff]  }
 0x110   :  { %5087 = vmatprep.subr.bf16.mxu1 %v7852_v5  ;;  %v7928_v5 = vld [vmem:[#allocation2 + $0xe04] ss:$16 sps:$4 sm:$0xff]  }
 0x112   :  { %5047 = vmatpush2.bf16.msra.mxu0 %v7847_v8  ;;  %v7923_v8 = vld [vmem:[#allocation2 + $0xc00] ss:$16 sps:$4 sm:$0xff]  }
 0x113   :  { %5088 = vmatpush2.bf16.msra.mxu1 %v7850_v9  ;;  %5048 = vmatprep.subr.bf16.mxu0 %v7855_v10  ;;  %v7926_v9 = vld [vmem:[#allocation2 + $0xe00] ss:$16 sps:$4 sm:$0xff]   ;;  %v7931_v10 = vld [vmem:[#allocation2 + $0xde4] ss:$16 sps:$4 sm:$0xff]  }
 0x114   :  { %5089 = vmatprep.subr.bf16.mxu1 %v7858_v11  ;;  %v7934_v11 = vld [vmem:[#allocation2 + $0xfe4] ss:$16 sps:$4 sm:$0xff]  }
 0x116   :  { %5049 = vmatpush2.bf16.msra.mxu0 %v7853_v12  ;;  %v7929_v12 = vld [vmem:[#allocation2 + $0xde0] ss:$16 sps:$4 sm:$0xff]  }
 0x117   :  { %5090 = vmatpush2.bf16.msra.mxu1 %v7856_v13  ;;  %5050 = vmatprep.subr.bf16.mxu0 %v7861_v14  ;;  %v7932_v13 = vld [vmem:[#allocation2 + $0xfe0] ss:$16 sps:$4 sm:$0xff]   ;;  %v7937_v14 = vld [vmem:[#allocation2 + $0xdc4] ss:$16 sps:$4 sm:$0xff]  }
 0x118   :  { %5091 = vmatprep.subr.bf16.mxu1 %v7864_v15  ;;  %v7940_v15 = vld [vmem:[#allocation2 + $0xfc4] ss:$16 sps:$4 sm:$0xff]  }
 0x11a   :  { %5051 = vmatpush2.bf16.msra.mxu0 %v7859_v18  ;;  %v7935_v18 = vld [vmem:[#allocation2 + $0xdc0] ss:$16 sps:$4 sm:$0xff]  }
 0x11b   :  { %5092 = vmatpush2.bf16.msra.mxu1 %v7862_v19  ;;  %5052 = vmatprep.subr.bf16.mxu0 %v7867_v20  ;;  %v7938_v19 = vld [vmem:[#allocation2 + $0xfc0] ss:$16 sps:$4 sm:$0xff]   ;;  %v7943_v20 = vld [vmem:[#allocation2 + $0xda4] ss:$16 sps:$4 sm:$0xff]  }
 0x11c   :  { %5093 = vmatprep.subr.bf16.mxu1 %v7870_v21  ;;  %v7946_v21 = vld [vmem:[#allocation2 + $0xfa4] ss:$16 sps:$4 sm:$0xff]  }
 0x11e   :  { %5053 = vmatpush2.bf16.msra.mxu0 %v7865_v26  ;;  %v7941_v26 = vld [vmem:[#allocation2 + $0xda0] ss:$16 sps:$4 sm:$0xff]  }
 0x11f   :  { %5094 = vmatpush2.bf16.msra.mxu1 %v7868_v27  ;;  %5054 = vmatprep.subr.bf16.mxu0 %v7873_v28  ;;  %v7944_v27 = vld [vmem:[#allocation2 + $0xfa0] ss:$16 sps:$4 sm:$0xff]   ;;  %v7949_v28 = vld [vmem:[#allocation2 + $0xd84] ss:$16 sps:$4 sm:$0xff]  }
 0x120   :  { %5095 = vmatprep.subr.bf16.mxu1 %v7876_v29  ;;  %v7952_v29 = vld [vmem:[#allocation2 + $0xf84] ss:$16 sps:$4 sm:$0xff]  }
 0x122   :  { %5055 = vmatpush2.bf16.msra.mxu0 %v7871_v30  ;;  %v7947_v30 = vld [vmem:[#allocation2 + $0xd80] ss:$16 sps:$4 sm:$0xff]  }
 0x123   :  { %5096 = vmatpush2.bf16.msra.mxu1 %v7874_v31  ;;  %5106 = vmatprep.subr.bf16.mxu0 %v7883_v32  ;;  %v7950_v31 = vld [vmem:[#allocation2 + $0xf80] ss:$16 sps:$4 sm:$0xff]   ;;  %v7955_v32 = vld [vmem:[#allocation2 + $0xd64] ss:$16 sps:$4 sm:$0xff]  }
 0x124   :  { %5147 = vmatprep.subr.bf16.mxu1 %v7886_v33  ;;  %v7958_v33 = vld [vmem:[#allocation2 + $0xf64] ss:$16 sps:$4 sm:$0xff]  }
 0x125   :  { %5057 = vmatmul.mubr.bf16.vlgmr.msra.gmra.mxu0 %v9213_v38 }
 0x126   :  { %5098 = vmatmul.mubr.bf16.vlgmr.msra.gmra.mxu1 %v9217_v39  ;;  %5107 = vmatpush1.bf16.msra.mxu0 %v7881_v34  ;;  %v7953_v34 = vld [vmem:[#allocation2 + $0xd60] ss:$16 sps:$4 sm:$0xff]  }
 0x127   :  { %5148 = vmatpush1.bf16.msra.mxu1 %v7884_v41  ;;  %5108 = vmatprep.subr.bf16.mxu0 %v7889_v42  ;;  %v7956_v41 = vld [vmem:[#allocation2 + $0xf60] ss:$16 sps:$4 sm:$0xff]   ;;  %v7961_v42 = vld [vmem:[#allocation2 + $0xd44] ss:$16 sps:$4 sm:$0xff]  }
 0x128   :  { %5149 = vmatprep.subr.bf16.mxu1 %v7892_v43  ;;  %5138 = vmatprep.mubr.bf16.mxu0 %v9226_v22  ;;  %v7964_v43 = vld [vmem:[#allocation2 + $0xf44] ss:$16 sps:$4 sm:$0xff]  }
 0x129   :  { %5179 = vmatprep.mubr.bf16.mxu1 %v9230_v23 }
 0x12a   :  { %5109 = vmatpush1.bf16.msra.mxu0 %v7887_v44  ;;  %v7959_v44 = vld [vmem:[#allocation2 + $0xd40] ss:$16 sps:$4 sm:$0xff]  }
 0x12b   :  { %5150 = vmatpush1.bf16.msra.mxu1 %v7890_v45  ;;  %5110 = vmatprep.subr.bf16.mxu0 %v7895_v46  ;;  %v7962_v45 = vld [vmem:[#allocation2 + $0xf40] ss:$16 sps:$4 sm:$0xff]   ;;  %v7967_v46 = vld [vmem:[#allocation2 + $0xd24] ss:$16 sps:$4 sm:$0xff]  }
 0x12c   :  { %5151 = vmatprep.subr.bf16.mxu1 %v7898_v48  ;;  %v916_v48 = vlaneseq }
 0x12e   :  { %5111 = vmatpush1.bf16.msra.mxu0 %v7893_v49  ;;  %v7970_v49 = vld [vmem:[#allocation2 + $0xf24] ss:$16 sps:$4 sm:$0xff]  }
 0x12f   :  { %5152 = vmatpush1.bf16.msra.mxu1 %v7896_v50  ;;  %5112 = vmatprep.subr.bf16.mxu0 %v7901_v52  ;;  %v7965_v50 = vld [vmem:[#allocation2 + $0xd20] ss:$16 sps:$4 sm:$0xff]  }
 0x130   :  { %5153 = vmatprep.subr.bf16.mxu1 %v7904_v53  ;;  %v7968_v52 = vld [vmem:[#allocation2 + $0xf20] ss:$16 sps:$4 sm:$0xff]   ;;  %v7973_v53 = vld [vmem:[#allocation2 + $0xd04] ss:$16 sps:$4 sm:$0xff]  }
 0x132   :  { %5113 = vmatpush1.bf16.msra.mxu0 %v7899_v54  ;;  %v9236_v54 = vshrl.u32 %v916_v48, 7  ;;  %v8005_v48 = vld [vmem:[#allocation2 + $0x1060] ss:$16 sps:$4 sm:$0xff]  }
 0x133   :  { %5154 = vmatpush1.bf16.msra.mxu1 %v7902_v55  ;;  %5114 = vmatprep.subr.bf16.mxu0 %v7907_v56  ;;  %v7976_v55 = vld [vmem:[#allocation2 + $0xf04] ss:$16 sps:$4 sm:$0xff]   ;;  %v7971_v56 = vld [vmem:[#allocation2 + $0xd00] ss:$16 sps:$4 sm:$0xff]  }
 0x134   :  { %5155 = vmatprep.subr.bf16.mxu1 %v7910_v57  ;;  %v7974_v57 = vld [vmem:[#allocation2 + $0xf00] ss:$16 sps:$4 sm:$0xff]  }
 0x136   :  { %5115 = vmatpush1.bf16.msra.mxu0 %v7905_v58  ;;  %v914_v58 = vld [vmem:[#allocation4] sm:$0xf] }
 0x137   :  { %5156 = vmatpush1.bf16.msra.mxu1 %v7908_v59  ;;  %5116 = vmatprep.subr.bf16.mxu0 %v7913_v60  ;;  %v918_v59 = vsub.s32 0, %v9236_v54  ;;  %v7983_v60 = vld [vmem:[#allocation2 + $0x10e4] ss:$16 sps:$4 sm:$0xff]  }
 0x138   :  { %5157 = vmatprep.subr.bf16.mxu1 %v7916_v61  ;;  %v7986_v61 = vld [vmem:[#allocation2 + $0x12e4] ss:$16 sps:$4 sm:$0xff]  }
 0x13a   :  { %5117 = vmatpush1.bf16.msra.mxu0 %v7911_v62  ;;  %v7981_v62 = vld [vmem:[#allocation2 + $0x10e0] ss:$16 sps:$4 sm:$0xff]  }
 0x13b   :  { %5158 = vmatpush1.bf16.msra.mxu1 %v7914_v63  ;;  %5118 = vmatprep.subr.bf16.mxu0 %v7919_v0  ;;  %v922_v63 = vsub.s32 1, %v9236_v54  ;;  %v9242_v0 = vcombine.low %v9209_v35, %v9209_v35  ;;  %v919_v35 = vrot.slane %v914_v58, %v918_v59 }
 0x13c   :  { %5159 = vmatprep.subr.bf16.mxu1 %v7922_v1  ;;  %v9246_v1 = vcombine.low %v9222_v40, %v9222_v40  ;;  %v7992_v40 = vld [vmem:[#allocation2 + $0x12c4] ss:$16 sps:$4 sm:$0xff]  }
 0x13e   :  { %5119 = vmatpush1.bf16.msra.mxu0 %v7917_v2  ;;  %v9251_v2 = vld [vmem:[%s9401_s0 + $0x40] sm:$0xff] }
 0x13f   :  { %5160 = vmatpush1.bf16.msra.mxu1 %v7920_v3  ;;  %5120 = vmatprep.subr.bf16.mxu0 %v7925_v4  ;;  %v9256_v3 = vld [vmem:[%s9401_s0 + $0x48] sm:$0xff]  ;;  %v7984_v4 = vld [vmem:[#allocation2 + $0x12e0] ss:$16 sps:$4 sm:$0xff]  }
 0x140   :  { %5161 = vmatprep.subr.bf16.mxu1 %v7928_v5  ;;  %v7989_v5 = vld [vmem:[#allocation2 + $0x10c4] ss:$16 sps:$4 sm:$0xff]  }
 0x142   :  { %5121 = vmatpush1.bf16.msra.mxu0 %v7923_v8  ;;  %v923_v8 = vrot.slane %v914_v58, %v922_v63  ;;  %v8017_v58 = vld [vmem:[#allocation2 + $0x1020] ss:$16 sps:$4 sm:$0xff]  }
 0x143   :  { %5162 = vmatpush1.bf16.msra.mxu1 %v7926_v9  ;;  %5122 = vmatprep.subr.bf16.mxu0 %v7931_v10  ;;  %v9264_v9 = vcombine.high %v9251_v2, %v9251_v2  ;;  %v9268_v10 = vcombine.high %v9256_v3, %v9256_v3 }
 0x144   :  { %5163 = vmatprep.subr.bf16.mxu1 %v7934_v11 }
 0x146   :  { %5123 = vmatpush2.bf16.msra.mxu0 %v7929_v12 }
 0x147   :  { %5164 = vmatpush2.bf16.msra.mxu1 %v7932_v13  ;;  %5124 = vmatprep.subr.bf16.mxu0 %v7937_v14  ;;  %v7987_v13 = vld [vmem:[#allocation2 + $0x10c0] ss:$16 sps:$4 sm:$0xff]  }
 0x148   :  { %5165 = vmatprep.subr.bf16.mxu1 %v7940_v15  ;;  %v7990_v15 = vld [vmem:[#allocation2 + $0x12c0] ss:$16 sps:$4 sm:$0xff]  }
 0x14a   :  { %5125 = vmatpush2.bf16.msra.mxu0 %v7935_v18 }
 0x14b   :  { %5166 = vmatpush2.bf16.msra.mxu1 %v7938_v19  ;;  %5126 = vmatprep.subr.bf16.mxu0 %v7943_v20  ;;  %v7995_v20 = vld [vmem:[#allocation2 + $0x10a4] ss:$16 sps:$4 sm:$0xff]  }
 0x14c   :  { %5167 = vmatprep.subr.bf16.mxu1 %v7946_v21  ;;  %v7998_v21 = vld [vmem:[#allocation2 + $0x12a4] ss:$16 sps:$4 sm:$0xff]  }
 0x14e   :  { %5127 = vmatpush2.bf16.msra.mxu0 %v7941_v26 }
 0x14f   :  { %5168 = vmatpush2.bf16.msra.mxu1 %v7944_v27  ;;  %5128 = vmatprep.subr.bf16.mxu0 %v7949_v28 }
 0x150   :  { %5169 = vmatprep.subr.bf16.mxu1 %v7952_v29 }
 0x152   :  { %5129 = vmatpush2.bf16.msra.mxu0 %v7947_v30  ;;  %v7993_v30 = vld [vmem:[#allocation2 + $0x10a0] ss:$16 sps:$4 sm:$0xff]  }
 0x153   :  { %5170 = vmatpush2.bf16.msra.mxu1 %v7950_v31  ;;  %5130 = vmatprep.subr.bf16.mxu0 %v7955_v32  ;;  %v7996_v32 = vld [vmem:[#allocation2 + $0x12a0] ss:$16 sps:$4 sm:$0xff]  }
 0x154   :  { %5171 = vmatprep.subr.bf16.mxu1 %v7958_v33 }
 0x156   :  { %5131 = vmatpush2.bf16.msra.mxu0 %v7953_v34 }
 0x157   :  { %5172 = vmatpush2.bf16.msra.mxu1 %v7956_v41  ;;  %5132 = vmatprep.subr.bf16.mxu0 %v7961_v42  ;;  %v8001_v41 = vld [vmem:[#allocation2 + $0x1084] ss:$16 sps:$4 sm:$0xff]  }
 0x158   :  { %5173 = vmatprep.subr.bf16.mxu1 %v7964_v43  ;;  %v8004_v42 = vld [vmem:[#allocation2 + $0x1284] ss:$16 sps:$4 sm:$0xff]   ;;  %v7999_v43 = vld [vmem:[#allocation2 + $0x1080] ss:$16 sps:$4 sm:$0xff]  }
 0x15a   :  { %5133 = vmatpush2.bf16.msra.mxu0 %v7959_v44  ;;  %v8002_v44 = vld [vmem:[#allocation2 + $0x1280] ss:$16 sps:$4 sm:$0xff]  }
 0x15b   :  { %5174 = vmatpush2.bf16.msra.mxu1 %v7962_v45  ;;  %5134 = vmatprep.subr.bf16.mxu0 %v7967_v46  ;;  %v8007_v45 = vld [vmem:[#allocation2 + $0x1064] ss:$16 sps:$4 sm:$0xff]  }
 0x15c   :  { %5175 = vmatprep.subr.bf16.mxu1 %v7970_v49  ;;  %v8010_v46 = vld [vmem:[#allocation2 + $0x1264] ss:$16 sps:$4 sm:$0xff]   ;;  %v8008_v49 = vld [vmem:[#allocation2 + $0x1260] ss:$16 sps:$4 sm:$0xff]  }
 0x15e   :  { %5135 = vmatpush2.bf16.msra.mxu0 %v7965_v50  ;;  %v8013_v50 = vld [vmem:[#allocation2 + $0x1044] ss:$16 sps:$4 sm:$0xff]  }
 0x15f   :  { %5176 = vmatpush2.bf16.msra.mxu1 %v7968_v52  ;;  %5136 = vmatprep.subr.bf16.mxu0 %v7973_v53  ;;  %v8016_v52 = vld [vmem:[#allocation2 + $0x1244] ss:$16 sps:$4 sm:$0xff]   ;;  %v8011_v53 = vld [vmem:[#allocation2 + $0x1040] ss:$16 sps:$4 sm:$0xff]  }
 0x160   :  { %5177 = vmatprep.subr.bf16.mxu1 %v7976_v55  ;;  %v8014_v55 = vld [vmem:[#allocation2 + $0x1240] ss:$16 sps:$4 sm:$0xff]  }
 0x162   :  { %5137 = vmatpush2.bf16.msra.mxu0 %v7971_v56  ;;  %v8019_v56 = vld [vmem:[#allocation2 + $0x1024] ss:$16 sps:$4 sm:$0xff]  }
 0x163   :  { %5178 = vmatpush2.bf16.msra.mxu1 %v7974_v57  ;;  %5188 = vmatprep.subr.bf16.mxu0 %v7983_v60  ;;  %v8022_v57 = vld [vmem:[#allocation2 + $0x1224] ss:$16 sps:$4 sm:$0xff]   ;;  %v8020_v60 = vld [vmem:[#allocation2 + $0x1220] ss:$16 sps:$4 sm:$0xff]  }
 0x164   :  { %5229 = vmatprep.subr.bf16.mxu1 %v7986_v61  ;;  %v8025_v61 = vld [vmem:[#allocation2 + $0x1004] ss:$16 sps:$4 sm:$0xff]  }
 0x165   :  { %v4894_v11 = vpop.f32.mrf.mxu0  ;;  %5139 = vmatmul.mubr.bf16.vlgmr.msra.gmra.mxu0 %v9242_v0 }
 0x166   :  { %v4935_v12 = vpop.f32.mrf.mxu1  ;;  %5180 = vmatmul.mubr.bf16.vlgmr.msra.gmra.mxu1 %v9246_v1  ;;  %v4895_v14 = vadd.f32 %v4894_v11, %v919_v35  ;;  %5189 = vmatpush1.bf16.msra.mxu0 %v7981_v62  ;;  %v8028_v62 = vld [vmem:[#allocation2 + $0x1204] ss:$16 sps:$4 sm:$0xff]   ;;  %v8023_v35 = vld [vmem:[#allocation2 + $0x1000] ss:$16 sps:$4 sm:$0xff]  }
 0x167   :  { %5230 = vmatpush1.bf16.msra.mxu1 %v7984_v4  ;;  %v4896_v18 = vpop.f32.mrf.mxu0  ;;  %5190 = vmatprep.subr.bf16.mxu0 %v7989_v5  ;;  %v8026_v4 = vld [vmem:[#allocation2 + $0x1200] ss:$16 sps:$4 sm:$0xff]   ;;  %v8031_v5 = vld [vmem:[#allocation2 + $0x11e4] ss:$16 sps:$4 sm:$0xff]  }
 0x168   :  { %v4937_v19 = vpop.f32.mrf.mxu1  ;;  %5231 = vmatprep.subr.bf16.mxu1 %v7992_v40  ;;  %v9272_v26 = vadd.f32 %v4935_v12, %v4895_v14  ;;  %v4897_v27 = vadd.f32 %v4896_v18, %v923_v8  ;;  %5220 = vmatprep.mubr.bf16.mxu0 %v9264_v9  ;;  %v8034_v40 = vld [vmem:[#allocation2 + $0x13e4] ss:$16 sps:$4 sm:$0xff]   ;;  %v8029_v8 = vld [vmem:[#allocation2 + $0x11e0] ss:$16 sps:$4 sm:$0xff]  }
 0x169   :  { %5261 = vmatprep.mubr.bf16.mxu1 %v9268_v10  ;;  %v4898_v28 = vpop.f32.mrf.mxu0  ;;  %v8032_v11 = vld [vmem:[#allocation2 + $0x13e0] ss:$16 sps:$4 sm:$0xff]   ;;  %v8037_v12 = vld [vmem:[#allocation2 + $0x11c4] ss:$16 sps:$4 sm:$0xff]  }
 0x16a   :  { %v4939_v29 = vpop.f32.mrf.mxu1  ;;  %v9276_v31 = vadd.f32 %v4937_v19, %v4897_v27  ;;  %5191 = vmatpush1.bf16.msra.mxu0 %v7987_v13  ;;  %v8040_v13 = vld [vmem:[#allocation2 + $0x13c4] ss:$16 sps:$4 sm:$0xff]   ;;  %v8035_v14 = vld [vmem:[#allocation2 + $0x11c0] ss:$16 sps:$4 sm:$0xff]  }
 0x16b   :  { %5232 = vmatpush1.bf16.msra.mxu1 %v7990_v15  ;;  %v4899_v33 = vpop.f32.mrf.mxu0  ;;  %5192 = vmatprep.subr.bf16.mxu0 %v7995_v20  ;;  %v8038_v15 = vld [vmem:[#allocation2 + $0x13c0] ss:$16 sps:$4 sm:$0xff]   ;;  %v8043_v18 = vld [vmem:[#allocation2 + $0x11a4] ss:$16 sps:$4 sm:$0xff]  }
 0x16c   :  { %v4940_v34 = vpop.f32.mrf.mxu1  ;;  %5233 = vmatprep.subr.bf16.mxu1 %v7998_v21  ;;  %v8046_v19 = vld [vmem:[#allocation2 + $0x13a4] ss:$16 sps:$4 sm:$0xff]   ;;  %v8041_v20 = vld [vmem:[#allocation2 + $0x11a0] ss:$16 sps:$4 sm:$0xff]  }
 0x16d   :  { %v8044_v21 = vld [vmem:[#allocation2 + $0x13a0] ss:$16 sps:$4 sm:$0xff]   ;;  %v8049_v27 = vld [vmem:[#allocation2 + $0x1184] ss:$16 sps:$4 sm:$0xff]  }
 0x16e   :  { %5193 = vmatpush1.bf16.msra.mxu0 %v7993_v30  ;;  %v8052_v28 = vld [vmem:[#allocation2 + $0x1384] ss:$16 sps:$4 sm:$0xff]   ;;  %v8047_v29 = vld [vmem:[#allocation2 + $0x1180] ss:$16 sps:$4 sm:$0xff]  }
 0x16f   :  { %5234 = vmatpush1.bf16.msra.mxu1 %v7996_v32  ;;  %5194 = vmatprep.subr.bf16.mxu0 %v8001_v41  ;;  %v8050_v30 = vld [vmem:[#allocation2 + $0x1380] ss:$16 sps:$4 sm:$0xff]   ;;  %v8055_v32 = vld [vmem:[#allocation2 + $0x1164] ss:$16 sps:$4 sm:$0xff]  }
 0x170   :  { %5235 = vmatprep.subr.bf16.mxu1 %v8004_v42  ;;  %v8058_v33 = vld [vmem:[#allocation2 + $0x1364] ss:$16 sps:$4 sm:$0xff]   ;;  %v8053_v34 = vld [vmem:[#allocation2 + $0x1160] ss:$16 sps:$4 sm:$0xff]  }
 0x171   :  { %v8056_v41 = vld [vmem:[#allocation2 + $0x1360] ss:$16 sps:$4 sm:$0xff]   ;;  %v8061_v42 = vld [vmem:[#allocation2 + $0x1144] ss:$16 sps:$4 sm:$0xff]  }
 0x172   :  { %5195 = vmatpush1.bf16.msra.mxu0 %v7999_v43  ;;  %v8064_v43 = vld [vmem:[#allocation2 + $0x1344] ss:$16 sps:$4 sm:$0xff]  }
 0x173   :  { %5236 = vmatpush1.bf16.msra.mxu1 %v8002_v44  ;;  %5196 = vmatprep.subr.bf16.mxu0 %v8007_v45  ;;  %v8059_v44 = vld [vmem:[#allocation2 + $0x1140] ss:$16 sps:$4 sm:$0xff]  }
 0x174   :  { %5237 = vmatprep.subr.bf16.mxu1 %v8010_v46  ;;  %v8062_v45 = vld [vmem:[#allocation2 + $0x1340] ss:$16 sps:$4 sm:$0xff]   ;;  %v8067_v46 = vld [vmem:[#allocation2 + $0x1124] ss:$16 sps:$4 sm:$0xff]  }
 0x176   :  { %5197 = vmatpush1.bf16.msra.mxu0 %v8005_v48  ;;  %v8070_v48 = vld [vmem:[#allocation2 + $0x1324] ss:$16 sps:$4 sm:$0xff]  }
 0x177   :  { %5238 = vmatpush1.bf16.msra.mxu1 %v8008_v49  ;;  %5198 = vmatprep.subr.bf16.mxu0 %v8013_v50  ;;  %v8065_v49 = vld [vmem:[#allocation2 + $0x1120] ss:$16 sps:$4 sm:$0xff]  }
 0x178   :  { %5239 = vmatprep.subr.bf16.mxu1 %v8016_v52  ;;  %v8068_v50 = vld [vmem:[#allocation2 + $0x1320] ss:$16 sps:$4 sm:$0xff]   ;;  %v8073_v52 = vld [vmem:[#allocation2 + $0x1104] ss:$16 sps:$4 sm:$0xff]  }
 0x17a   :  { %5199 = vmatpush1.bf16.msra.mxu0 %v8011_v53  ;;  %v8076_v53 = vld [vmem:[#allocation2 + $0x1304] ss:$16 sps:$4 sm:$0xff]  }
 0x17b   :  { %5240 = vmatpush1.bf16.msra.mxu1 %v8014_v55  ;;  %5200 = vmatprep.subr.bf16.mxu0 %v8019_v56  ;;  %v8071_v55 = vld [vmem:[#allocation2 + $0x1100] ss:$16 sps:$4 sm:$0xff]  }
 0x17c   :  { %5241 = vmatprep.subr.bf16.mxu1 %v8022_v57  ;;  %v8074_v56 = vld [vmem:[#allocation2 + $0x1300] ss:$16 sps:$4 sm:$0xff]   ;;  %v8083_v57 = vld [vmem:[#allocation2 + $0x14e4] ss:$16 sps:$4 sm:$0xff]  }
 0x17e   :  { %5201 = vmatpush1.bf16.msra.mxu0 %v8017_v58  ;;  %v8086_v58 = vld [vmem:[#allocation2 + $0x16e4] ss:$16 sps:$4 sm:$0xff]  }
 0x17f   :  { %5242 = vmatpush1.bf16.msra.mxu1 %v8020_v60  ;;  %5202 = vmatprep.subr.bf16.mxu0 %v8025_v61  ;;  %v9281_v60 = vld [vmem:[%s9401_s0 + $0x50] sm:$0xff]  ;;  %v9286_v61 = vld [vmem:[%s9401_s0 + $0x58] sm:$0xff] }
 0x180   :  { %5243 = vmatprep.subr.bf16.mxu1 %v8028_v62  ;;  %v8081_v62 = vld [vmem:[#allocation2 + $0x14e0] ss:$16 sps:$4 sm:$0xff]  }
 0x182   :  { %5203 = vmatpush1.bf16.msra.mxu0 %v8023_v35  ;;  %v8084_v35 = vld [vmem:[#allocation2 + $0x16e0] ss:$16 sps:$4 sm:$0xff]  }
 0x183   :  { %5244 = vmatpush1.bf16.msra.mxu1 %v8026_v4  ;;  %5204 = vmatprep.subr.bf16.mxu0 %v8031_v5  ;;  %v9290_v4 = vcombine.low %v9251_v2, %v9251_v2  ;;  %v9294_v5 = vcombine.low %v9256_v3, %v9256_v3  ;;  %v9302_v2 = vcombine.high %v9286_v61, %v9286_v61 }
 0x184   :  { %5245 = vmatprep.subr.bf16.mxu1 %v8034_v40  ;;  %v8089_v40 = vld [vmem:[#allocation2 + $0x14c4] ss:$16 sps:$4 sm:$0xff]  }
 0x186   :  { %5205 = vmatpush2.bf16.msra.mxu0 %v8029_v8  ;;  %v8092_v8 = vld [vmem:[#allocation2 + $0x16c4] ss:$16 sps:$4 sm:$0xff]  }
 0x187   :  { %5246 = vmatpush2.bf16.msra.mxu1 %v8032_v11  ;;  %5206 = vmatprep.subr.bf16.mxu0 %v8037_v12  ;;  %v8087_v11 = vld [vmem:[#allocation2 + $0x14c0] ss:$16 sps:$4 sm:$0xff]  }
 0x188   :  { %5247 = vmatprep.subr.bf16.mxu1 %v8040_v13  ;;  %v8090_v12 = vld [vmem:[#allocation2 + $0x16c0] ss:$16 sps:$4 sm:$0xff]   ;;  %v9298_v13 = vcombine.high %v9281_v60, %v9281_v60 }
 0x18a   :  { %5207 = vmatpush2.bf16.msra.mxu0 %v8035_v14 }
 0x18b   :  { %5248 = vmatpush2.bf16.msra.mxu1 %v8038_v15  ;;  %5208 = vmatprep.subr.bf16.mxu0 %v8043_v18 }
 0x18c   :  { %5249 = vmatprep.subr.bf16.mxu1 %v8046_v19 }
 0x18e   :  { %5209 = vmatpush2.bf16.msra.mxu0 %v8041_v20  ;;  %v8095_v20 = vld [vmem:[#allocation2 + $0x14a4] ss:$16 sps:$4 sm:$0xff]  }
 0x18f   :  { %5250 = vmatpush2.bf16.msra.mxu1 %v8044_v21  ;;  %5210 = vmatprep.subr.bf16.mxu0 %v8049_v27  ;;  %v8098_v21 = vld [vmem:[#allocation2 + $0x16a4] ss:$16 sps:$4 sm:$0xff]  }
 0x190   :  { %5251 = vmatprep.subr.bf16.mxu1 %v8052_v28 }
 0x192   :  { %5211 = vmatpush2.bf16.msra.mxu0 %v8047_v29  ;;  %v8093_v29 = vld [vmem:[#allocation2 + $0x14a0] ss:$16 sps:$4 sm:$0xff]  }
 0x193   :  { %5252 = vmatpush2.bf16.msra.mxu1 %v8050_v30  ;;  %5212 = vmatprep.subr.bf16.mxu0 %v8055_v32  ;;  %v8096_v30 = vld [vmem:[#allocation2 + $0x16a0] ss:$16 sps:$4 sm:$0xff]  }
 0x194   :  { %5253 = vmatprep.subr.bf16.mxu1 %v8058_v33 }
 0x196   :  { %5213 = vmatpush2.bf16.msra.mxu0 %v8053_v34 }
 0x197   :  { %5254 = vmatpush2.bf16.msra.mxu1 %v8056_v41  ;;  %5214 = vmatprep.subr.bf16.mxu0 %v8061_v42  ;;  %v8101_v42 = vld [vmem:[#allocation2 + $0x1484] ss:$16 sps:$4 sm:$0xff]  }
 0x198   :  { %5255 = vmatprep.subr.bf16.mxu1 %v8064_v43  ;;  %v8104_v43 = vld [vmem:[#allocation2 + $0x1684] ss:$16 sps:$4 sm:$0xff]  }
 0x19a   :  { %5215 = vmatpush2.bf16.msra.mxu0 %v8059_v44  ;;  %v8102_v44 = vld [vmem:[#allocation2 + $0x1680] ss:$16 sps:$4 sm:$0xff]  }
 0x19b   :  { %5256 = vmatpush2.bf16.msra.mxu1 %v8062_v45  ;;  %5216 = vmatprep.subr.bf16.mxu0 %v8067_v46  ;;  %v8107_v45 = vld [vmem:[#allocation2 + $0x1464] ss:$16 sps:$4 sm:$0xff]  }
 0x19c   :  { %5257 = vmatprep.subr.bf16.mxu1 %v8070_v48  ;;  %v8110_v46 = vld [vmem:[#allocation2 + $0x1664] ss:$16 sps:$4 sm:$0xff]   ;;  %v8105_v48 = vld [vmem:[#allocation2 + $0x1460] ss:$16 sps:$4 sm:$0xff]  }
 0x19e   :  { %5217 = vmatpush2.bf16.msra.mxu0 %v8065_v49  ;;  %v8108_v49 = vld [vmem:[#allocation2 + $0x1660] ss:$16 sps:$4 sm:$0xff]  }
 0x19f   :  { %5258 = vmatpush2.bf16.msra.mxu1 %v8068_v50  ;;  %5218 = vmatprep.subr.bf16.mxu0 %v8073_v52  ;;  %v8113_v50 = vld [vmem:[#allocation2 + $0x1444] ss:$16 sps:$4 sm:$0xff]  }
 0x1a0   :  { %5259 = vmatprep.subr.bf16.mxu1 %v8076_v53  ;;  %v8116_v52 = vld [vmem:[#allocation2 + $0x1644] ss:$16 sps:$4 sm:$0xff]   ;;  %v8111_v53 = vld [vmem:[#allocation2 + $0x1440] ss:$16 sps:$4 sm:$0xff]  }
 0x1a2   :  { %5219 = vmatpush2.bf16.msra.mxu0 %v8071_v55  ;;  %v8114_v55 = vld [vmem:[#allocation2 + $0x1640] ss:$16 sps:$4 sm:$0xff]  }
 0x1a3   :  { %5260 = vmatpush2.bf16.msra.mxu1 %v8074_v56  ;;  %5270 = vmatprep.subr.bf16.mxu0 %v8083_v57  ;;  %v8119_v56 = vld [vmem:[#allocation2 + $0x1424] ss:$16 sps:$4 sm:$0xff]  }
 0x1a4   :  { %5311 = vmatprep.subr.bf16.mxu1 %v8086_v58  ;;  %v8122_v57 = vld [vmem:[#allocation2 + $0x1624] ss:$16 sps:$4 sm:$0xff]   ;;  %v8117_v58 = vld [vmem:[#allocation2 + $0x1420] ss:$16 sps:$4 sm:$0xff]  }
 0x1a5   :  { %v4976_v14 = vpop.f32.mrf.mxu0  ;;  %5221 = vmatmul.mubr.bf16.vlgmr.msra.gmra.mxu0 %v9290_v4 }
 0x1a6   :  { %v5017_v15 = vpop.f32.mrf.mxu1  ;;  %5262 = vmatmul.mubr.bf16.vlgmr.msra.gmra.mxu1 %v9294_v5  ;;  %v4977_v3 = vadd.f32 %v4976_v14, %v9272_v26  ;;  %5271 = vmatpush1.bf16.msra.mxu0 %v8081_v62  ;;  %v8120_v62 = vld [vmem:[#allocation2 + $0x1620] ss:$16 sps:$4 sm:$0xff]   ;;  %v8134_v14 = vld [vmem:[#allocation2 + $0x17e4] ss:$16 sps:$4 sm:$0xff]  }
 0x1a7   :  { %5312 = vmatpush1.bf16.msra.mxu1 %v8084_v35  ;;  %v4978_v18 = vpop.f32.mrf.mxu0  ;;  %5272 = vmatprep.subr.bf16.mxu0 %v8089_v40  ;;  %v8125_v35 = vld [vmem:[#allocation2 + $0x1404] ss:$16 sps:$4 sm:$0xff]  }
 0x1a8   :  { %v5019_v19 = vpop.f32.mrf.mxu1  ;;  %5313 = vmatprep.subr.bf16.mxu1 %v8092_v8  ;;  %v9307_v27 = vadd.f32 %v5017_v15, %v4977_v3  ;;  %v4979_v28 = vadd.f32 %v4978_v18, %v9276_v31  ;;  %5302 = vmatprep.mubr.bf16.mxu0 %v9298_v13  ;;  %v8099_v31 = vld [vmem:[#allocation2 + $0x1480] ss:$16 sps:$4 sm:$0xff]   ;;  %v8128_v40 = vld [vmem:[#allocation2 + $0x1604] ss:$16 sps:$4 sm:$0xff]  }
 0x1a9   :  { %5343 = vmatprep.mubr.bf16.mxu1 %v9302_v2  ;;  %v4980_v32 = vpop.f32.mrf.mxu0  ;;  %v8123_v8 = vld [vmem:[#allocation2 + $0x1400] ss:$16 sps:$4 sm:$0xff]   ;;  %v8137_v18 = vld [vmem:[#allocation2 + $0x15c4] ss:$16 sps:$4 sm:$0xff]  }
 0x1aa   :  { %v5021_v26 = vpop.f32.mrf.mxu1  ;;  %v9312_v33 = vadd.f32 %v5019_v19, %v4979_v28  ;;  %5273 = vmatpush1.bf16.msra.mxu0 %v8087_v11  ;;  %v8126_v11 = vld [vmem:[#allocation2 + $0x1600] ss:$16 sps:$4 sm:$0xff]   ;;  %v8140_v19 = vld [vmem:[#allocation2 + $0x17c4] ss:$16 sps:$4 sm:$0xff]  }
 0x1ab   :  { %5314 = vmatpush1.bf16.msra.mxu1 %v8090_v12  ;;  %v4981_v34 = vpop.f32.mrf.mxu0  ;;  %5274 = vmatprep.subr.bf16.mxu0 %v8095_v20  ;;  %v8131_v12 = vld [vmem:[#allocation2 + $0x15e4] ss:$16 sps:$4 sm:$0xff]   ;;  %v8129_v15 = vld [vmem:[#allocation2 + $0x15e0] ss:$16 sps:$4 sm:$0xff]  }
 0x1ac   :  { %v5022_v41 = vpop.f32.mrf.mxu1  ;;  %5315 = vmatprep.subr.bf16.mxu1 %v8098_v21  ;;  %v8132_v3 = vld [vmem:[#allocation2 + $0x17e0] ss:$16 sps:$4 sm:$0xff]   ;;  %v8143_v28 = vld [vmem:[#allocation2 + $0x15a4] ss:$16 sps:$4 sm:$0xff]  }
 0x1ad   :  { %v8135_v20 = vld [vmem:[#allocation2 + $0x15c0] ss:$16 sps:$4 sm:$0xff]   ;;  %v8149_v26 = vld [vmem:[#allocation2 + $0x1584] ss:$16 sps:$4 sm:$0xff]  }
 0x1ae   :  { %5275 = vmatpush1.bf16.msra.mxu0 %v8093_v29  ;;  %v8138_v21 = vld [vmem:[#allocation2 + $0x17c0] ss:$16 sps:$4 sm:$0xff]   ;;  %v8146_v29 = vld [vmem:[#allocation2 + $0x17a4] ss:$16 sps:$4 sm:$0xff]  }
 0x1af   :  { %5316 = vmatpush1.bf16.msra.mxu1 %v8096_v30  ;;  %5276 = vmatprep.subr.bf16.mxu0 %v8101_v42  ;;  %v8141_v30 = vld [vmem:[#allocation2 + $0x15a0] ss:$16 sps:$4 sm:$0xff]   ;;  %v8152_v34 = vld [vmem:[#allocation2 + $0x1784] ss:$16 sps:$4 sm:$0xff]  }
 0x1b0   :  { %5317 = vmatprep.subr.bf16.mxu1 %v8104_v43  ;;  %v8144_v32 = vld [vmem:[#allocation2 + $0x17a0] ss:$16 sps:$4 sm:$0xff]   ;;  %v8155_v43 = vld [vmem:[#allocation2 + $0x1564] ss:$16 sps:$4 sm:$0xff]  }
 0x1b1   :  { %v8147_v41 = vld [vmem:[#allocation2 + $0x1580] ss:$16 sps:$4 sm:$0xff]  }
 0x1b2   :  { %5277 = vmatpush1.bf16.msra.mxu0 %v8099_v31  ;;  %v8150_v42 = vld [vmem:[#allocation2 + $0x1780] ss:$16 sps:$4 sm:$0xff]   ;;  %v8158_v31 = vld [vmem:[#allocation2 + $0x1764] ss:$16 sps:$4 sm:$0xff]  }
 0x1b3   :  { %5318 = vmatpush1.bf16.msra.mxu1 %v8102_v44  ;;  %5278 = vmatprep.subr.bf16.mxu0 %v8107_v45  ;;  %v8153_v44 = vld [vmem:[#allocation2 + $0x1560] ss:$16 sps:$4 sm:$0xff]  }
 0x1b4   :  { %5319 = vmatprep.subr.bf16.mxu1 %v8110_v46  ;;  %v8156_v45 = vld [vmem:[#allocation2 + $0x1760] ss:$16 sps:$4 sm:$0xff]   ;;  %v8161_v46 = vld [vmem:[#allocation2 + $0x1544] ss:$16 sps:$4 sm:$0xff]  }
 0x1b6   :  { %5279 = vmatpush1.bf16.msra.mxu0 %v8105_v48  ;;  %v8164_v48 = vld [vmem:[#allocation2 + $0x1744] ss:$16 sps:$4 sm:$0xff]  }
 0x1b7   :  { %5320 = vmatpush1.bf16.msra.mxu1 %v8108_v49  ;;  %5280 = vmatprep.subr.bf16.mxu0 %v8113_v50  ;;  %v8159_v49 = vld [vmem:[#allocation2 + $0x1540] ss:$16 sps:$4 sm:$0xff]  }
 0x1b8   :  { %5321 = vmatprep.subr.bf16.mxu1 %v8116_v52  ;;  %v8162_v50 = vld [vmem:[#allocation2 + $0x1740] ss:$16 sps:$4 sm:$0xff]   ;;  %v8167_v52 = vld [vmem:[#allocation2 + $0x1524] ss:$16 sps:$4 sm:$0xff]  }
 0x1ba   :  { %5281 = vmatpush1.bf16.msra.mxu0 %v8111_v53  ;;  %v8170_v53 = vld [vmem:[#allocation2 + $0x1724] ss:$16 sps:$4 sm:$0xff]  }
 0x1bb   :  { %5322 = vmatpush1.bf16.msra.mxu1 %v8114_v55  ;;  %5282 = vmatprep.subr.bf16.mxu0 %v8119_v56  ;;  %v8165_v55 = vld [vmem:[#allocation2 + $0x1520] ss:$16 sps:$4 sm:$0xff]  }
 0x1bc   :  { %5323 = vmatprep.subr.bf16.mxu1 %v8122_v57  ;;  %v8168_v56 = vld [vmem:[#allocation2 + $0x1720] ss:$16 sps:$4 sm:$0xff]   ;;  %v8173_v57 = vld [vmem:[#allocation2 + $0x1504] ss:$16 sps:$4 sm:$0xff]  }
 0x1be   :  { %5283 = vmatpush1.bf16.msra.mxu0 %v8117_v58  ;;  %v8176_v58 = vld [vmem:[#allocation2 + $0x1704] ss:$16 sps:$4 sm:$0xff]  }
 0x1bf   :  { %5324 = vmatpush1.bf16.msra.mxu1 %v8120_v62  ;;  %5284 = vmatprep.subr.bf16.mxu0 %v8125_v35  ;;  %v8171_v62 = vld [vmem:[#allocation2 + $0x1500] ss:$16 sps:$4 sm:$0xff]  }
 0x1c0   :  { %5325 = vmatprep.subr.bf16.mxu1 %v8128_v40  ;;  %v8174_v35 = vld [vmem:[#allocation2 + $0x1700] ss:$16 sps:$4 sm:$0xff]   ;;  %v8183_v40 = vld [vmem:[#allocation2 + $0xec] ss:$16 sps:$4 sm:$0xff]  }
 0x1c2   :  { %5285 = vmatpush1.bf16.msra.mxu0 %v8123_v8  ;;  %v8186_v8 = vld [vmem:[#allocation2 + $0x2ec] ss:$16 sps:$4 sm:$0xff]  }
 0x1c3   :  { %5326 = vmatpush1.bf16.msra.mxu1 %v8126_v11  ;;  %5286 = vmatprep.subr.bf16.mxu0 %v8131_v12  ;;  %v8181_v11 = vld [vmem:[#allocation2 + $0xe8] ss:$16 sps:$4 sm:$0xff]  }
 0x1c4   :  { %5327 = vmatprep.subr.bf16.mxu1 %v8134_v14  ;;  %v8184_v12 = vld [vmem:[#allocation2 + $0x2e8] ss:$16 sps:$4 sm:$0xff]   ;;  %v9316_v14 = vcombine.low %v9281_v60, %v9281_v60 }
 0x1c6   :  { %5287 = vmatpush2.bf16.msra.mxu0 %v8129_v15  ;;  %v9320_v15 = vcombine.low %v9286_v61, %v9286_v61 }
 0x1c7   :  { %5328 = vmatpush2.bf16.msra.mxu1 %v8132_v3  ;;  %5288 = vmatprep.subr.bf16.mxu0 %v8137_v18  ;;  %v8189_v3 = vld [vmem:[#allocation2 + $0xcc] ss:$16 sps:$4 sm:$0xff]  }
 0x1c8   :  { %5329 = vmatprep.subr.bf16.mxu1 %v8140_v19  ;;  %v8192_v18 = vld [vmem:[#allocation2 + $0x2cc] ss:$16 sps:$4 sm:$0xff]   ;;  %v8187_v19 = vld [vmem:[#allocation2 + $0xc8] ss:$16 sps:$4 sm:$0xff]  }
 0x1ca   :  { %5289 = vmatpush2.bf16.msra.mxu0 %v8135_v20  ;;  %v8190_v20 = vld [vmem:[#allocation2 + $0x2c8] ss:$16 sps:$4 sm:$0xff]  }
 0x1cb   :  { %5330 = vmatpush2.bf16.msra.mxu1 %v8138_v21  ;;  %5290 = vmatprep.subr.bf16.mxu0 %v8143_v28 }
 0x1cc   :  { %5331 = vmatprep.subr.bf16.mxu1 %v8146_v29 }
 0x1ce   :  { %5291 = vmatpush2.bf16.msra.mxu0 %v8141_v30  ;;  %v8195_v30 = vld [vmem:[#allocation2 + $0xac] ss:$16 sps:$4 sm:$0xff]  }
 0x1cf   :  { %5332 = vmatpush2.bf16.msra.mxu1 %v8144_v32  ;;  %5292 = vmatprep.subr.bf16.mxu0 %v8149_v26  ;;  %v8198_v32 = vld [vmem:[#allocation2 + $0x2ac] ss:$16 sps:$4 sm:$0xff]  }
 0x1d0   :  { %5333 = vmatprep.subr.bf16.mxu1 %v8152_v34 }
 0x1d2   :  { %5293 = vmatpush2.bf16.msra.mxu0 %v8147_v41  ;;  %v8193_v41 = vld [vmem:[#allocation2 + $0xa8] ss:$16 sps:$4 sm:$0xff]  }
 0x1d3   :  { %5334 = vmatpush2.bf16.msra.mxu1 %v8150_v42  ;;  %5294 = vmatprep.subr.bf16.mxu0 %v8155_v43  ;;  %v8196_v42 = vld [vmem:[#allocation2 + $0x2a8] ss:$16 sps:$4 sm:$0xff]  }
 0x1d4   :  { %5335 = vmatprep.subr.bf16.mxu1 %v8158_v31 }
 0x1d6   :  { %5295 = vmatpush2.bf16.msra.mxu0 %v8153_v44 }
 0x1d7   :  { %5336 = vmatpush2.bf16.msra.mxu1 %v8156_v45  ;;  %5296 = vmatprep.subr.bf16.mxu0 %v8161_v46  ;;  %v8201_v46 = vld [vmem:[#allocation2 + $0x8c] ss:$16 sps:$4 sm:$0xff]  }
 0x1d8   :  { %5337 = vmatprep.subr.bf16.mxu1 %v8164_v48  ;;  %v8204_v48 = vld [vmem:[#allocation2 + $0x28c] ss:$16 sps:$4 sm:$0xff]  }
 0x1da   :  { %5297 = vmatpush2.bf16.msra.mxu0 %v8159_v49  ;;  %v8202_v49 = vld [vmem:[#allocation2 + $0x288] ss:$16 sps:$4 sm:$0xff]  }
 0x1db   :  { %5338 = vmatpush2.bf16.msra.mxu1 %v8162_v50  ;;  %5298 = vmatprep.subr.bf16.mxu0 %v8167_v52  ;;  %v8205_v50 = vld [vmem:[#allocation2 + $0x68] ss:$16 sps:$4 sm:$0xff]  }
 0x1dc   :  { %5339 = vmatprep.subr.bf16.mxu1 %v8170_v53  ;;  %v8208_v52 = vld [vmem:[#allocation2 + $0x268] ss:$16 sps:$4 sm:$0xff]   ;;  %v8213_v53 = vld [vmem:[#allocation2 + $0x4c] ss:$16 sps:$4 sm:$0xff]  }
 0x1de   :  { %5299 = vmatpush2.bf16.msra.mxu0 %v8165_v55  ;;  %v8216_v55 = vld [vmem:[#allocation2 + $0x24c] ss:$16 sps:$4 sm:$0xff]  }
 0x1df   :  { %5340 = vmatpush2.bf16.msra.mxu1 %v8168_v56  ;;  %5300 = vmatprep.subr.bf16.mxu0 %v8173_v57  ;;  %v8211_v56 = vld [vmem:[#allocation2 + $0x48] ss:$16 sps:$4 sm:$0xff]  }
 0x1e0   :  { %5341 = vmatprep.subr.bf16.mxu1 %v8176_v58  ;;  %v8214_v57 = vld [vmem:[#allocation2 + $0x248] ss:$16 sps:$4 sm:$0xff]   ;;  %v8219_v58 = vld [vmem:[#allocation2 + $0x2c] ss:$16 sps:$4 sm:$0xff]  }
 0x1e2   :  { %5301 = vmatpush2.bf16.msra.mxu0 %v8171_v62  ;;  %v8222_v62 = vld [vmem:[#allocation2 + $0x22c] ss:$16 sps:$4 sm:$0xff]  }
 0x1e3   :  { %5342 = vmatpush2.bf16.msra.mxu1 %v8174_v35  ;;  %5352 = vmatprep.subr.bf16.mxu0 %v8183_v40  ;;  %v8217_v35 = vld [vmem:[#allocation2 + $0x28] ss:$16 sps:$4 sm:$0xff]  }
 0x1e4   :  { %5393 = vmatprep.subr.bf16.mxu1 %v8186_v8  ;;  %v8220_v40 = vld [vmem:[#allocation2 + $0x228] ss:$16 sps:$4 sm:$0xff]   ;;  %v8225_v8 = vld [vmem:[#allocation2 + $0xc] ss:$16 sps:$4 sm:$0xff]  }
 0x1e5   :  { %v5058_v21 = vpop.f32.mrf.mxu0  ;;  %5303 = vmatmul.mubr.bf16.vlgmr.msra.gmra.mxu0 %v9316_v14 }
 0x1e6   :  { %v5099_v28 = vpop.f32.mrf.mxu1  ;;  %5344 = vmatmul.mubr.bf16.vlgmr.msra.gmra.mxu1 %v9320_v15  ;;  %v5059_v60 = vadd.f32 %v5058_v21, %v9307_v27  ;;  %5353 = vmatpush1.bf16.msra.mxu0 %v8181_v11  ;;  %v8228_v11 = vld [vmem:[#allocation2 + $0x20c] ss:$16 sps:$4 sm:$0xff]   ;;  %v8232_v21 = vld [vmem:[#allocation2 + $0x3e8] ss:$16 sps:$4 sm:$0xff]  }
 0x1e7   :  { %5394 = vmatpush1.bf16.msra.mxu1 %v8184_v12  ;;  %v5060_v61 = vpop.f32.mrf.mxu0  ;;  %5354 = vmatprep.subr.bf16.mxu0 %v8189_v3  ;;  %v8223_v12 = vld [vmem:[#allocation2 + $0x8] ss:$16 sps:$4 sm:$0xff]  }
 0x1e8   :  { %v5101_v29 = vpop.f32.mrf.mxu1  ;;  %5395 = vmatprep.subr.bf16.mxu1 %v8192_v18  ;;  %v9325_v26 = vadd.f32 %v5099_v28, %v5059_v60  ;;  %v5061_v34 = vadd.f32 %v5060_v61, %v9312_v33  ;;  %5384 = vmatprep.mubr.bf16.mxu0 %v9141_v47  ;;  %v8199_v33 = vld [vmem:[#allocation2 + $0x88] ss:$16 sps:$4 sm:$0xff]   ;;  %v8207_v47 = vld [vmem:[#allocation2 + $0x6c] ss:$16 sps:$4 sm:$0xff]  }
 0x1e9   :  { %5425 = vmatprep.mubr.bf16.mxu1 %v9146_v51  ;;  %v5062_v43 = vpop.f32.mrf.mxu0  ;;  %v8210_v51 = vld [vmem:[#allocation2 + $0x26c] ss:$16 sps:$4 sm:$0xff]   ;;  %v8226_v3 = vld [vmem:[#allocation2 + $0x208] ss:$16 sps:$4 sm:$0xff]  }
 0x1ea   :  { %v5103_v27 = vpop.f32.mrf.mxu1  ;;  %v9330_v31 = vadd.f32 %v5101_v29, %v5061_v34  ;;  %5355 = vmatpush1.bf16.msra.mxu0 %v8187_v19  ;;  %v8231_v18 = vld [vmem:[#allocation2 + $0x1ec] ss:$16 sps:$4 sm:$0xff]   ;;  %v8235_v61 = vld [vmem:[#allocation2 + $0x1c8] ss:$16 sps:$4 sm:$0xff]  }
 0x1eb   :  { %5396 = vmatpush1.bf16.msra.mxu1 %v8190_v20  ;;  %v5063_v44 = vpop.f32.mrf.mxu0  ;;  %5356 = vmatprep.subr.bf16.mxu0 %v8195_v30  ;;  %v8234_v19 = vld [vmem:[#allocation2 + $0x3ec] ss:$16 sps:$4 sm:$0xff]   ;;  %v8229_v20 = vld [vmem:[#allocation2 + $0x1e8] ss:$16 sps:$4 sm:$0xff]  }
 0x1ec   :  { %v5104_v45 = vpop.f32.mrf.mxu1  ;;  %5397 = vmatprep.subr.bf16.mxu1 %v8198_v32  ;;  %v8237_v28 = vld [vmem:[#allocation2 + $0x1cc] ss:$16 sps:$4 sm:$0xff]   ;;  %v8238_v29 = vld [vmem:[#allocation2 + $0x3c8] ss:$16 sps:$4 sm:$0xff]  }
 0x1ed   :  { %v8240_v60 = vld [vmem:[#allocation2 + $0x3cc] ss:$16 sps:$4 sm:$0xff]   ;;  %v8241_v34 = vld [vmem:[#allocation2 + $0x1a8] ss:$16 sps:$4 sm:$0xff]  }
 0x1ee   :  { %5357 = vmatpush1.bf16.msra.mxu0 %v8193_v41  ;;  %v8243_v30 = vld [vmem:[#allocation2 + $0x1ac] ss:$16 sps:$4 sm:$0xff]   ;;  %v8244_v41 = vld [vmem:[#allocation2 + $0x3a8] ss:$16 sps:$4 sm:$0xff]  }
 0x1ef   :  { %5398 = vmatpush1.bf16.msra.mxu1 %v8196_v42  ;;  %5358 = vmatprep.subr.bf16.mxu0 %v8201_v46  ;;  %v8246_v32 = vld [vmem:[#allocation2 + $0x3ac] ss:$16 sps:$4 sm:$0xff]   ;;  %v8247_v27 = vld [vmem:[#allocation2 + $0x188] ss:$16 sps:$4 sm:$0xff]  }
 0x1f0   :  { %5399 = vmatprep.subr.bf16.mxu1 %v8204_v48  ;;  %v8249_v42 = vld [vmem:[#allocation2 + $0x18c] ss:$16 sps:$4 sm:$0xff]   ;;  %v8250_v44 = vld [vmem:[#allocation2 + $0x388] ss:$16 sps:$4 sm:$0xff]  }
 0x1f1   :  { %v8252_v43 = vld [vmem:[#allocation2 + $0x38c] ss:$16 sps:$4 sm:$0xff]   ;;  %v8253_v48 = vld [vmem:[#allocation2 + $0x168] ss:$16 sps:$4 sm:$0xff]  }
 0x1f2   :  { %5359 = vmatpush1.bf16.msra.mxu0 %v8199_v33  ;;  %v8255_v45 = vld [vmem:[#allocation2 + $0x16c] ss:$16 sps:$4 sm:$0xff]   ;;  %v8256_v33 = vld [vmem:[#allocation2 + $0x368] ss:$16 sps:$4 sm:$0xff]  }
 0x1f3   :  { %5400 = vmatpush1.bf16.msra.mxu1 %v8202_v49  ;;  %5360 = vmatprep.subr.bf16.mxu0 %v8207_v47  ;;  %v8258_v46 = vld [vmem:[#allocation2 + $0x36c] ss:$16 sps:$4 sm:$0xff]  }
 0x1f4   :  { %5401 = vmatprep.subr.bf16.mxu1 %v8210_v51  ;;  %v8261_v49 = vld [vmem:[#allocation2 + $0x14c] ss:$16 sps:$4 sm:$0xff]   ;;  %v8259_v51 = vld [vmem:[#allocation2 + $0x148] ss:$16 sps:$4 sm:$0xff]  }
 0x1f5   :  { %v8264_v47 = vld [vmem:[#allocation2 + $0x34c] ss:$16 sps:$4 sm:$0xff]  }
 0x1f6   :  { %5361 = vmatpush1.bf16.msra.mxu0 %v8205_v50  ;;  %v8262_v50 = vld [vmem:[#allocation2 + $0x348] ss:$16 sps:$4 sm:$0xff]  }
 0x1f7   :  { %5402 = vmatpush1.bf16.msra.mxu1 %v8208_v52  ;;  %5362 = vmatprep.subr.bf16.mxu0 %v8213_v53  ;;  %v8267_v52 = vld [vmem:[#allocation2 + $0x12c] ss:$16 sps:$4 sm:$0xff]  }
 0x1f8   :  { %5403 = vmatprep.subr.bf16.mxu1 %v8216_v55  ;;  %v8270_v53 = vld [vmem:[#allocation2 + $0x32c] ss:$16 sps:$4 sm:$0xff]   ;;  %v8265_v55 = vld [vmem:[#allocation2 + $0x128] ss:$16 sps:$4 sm:$0xff]  }
 0x1fa   :  { %5363 = vmatpush1.bf16.msra.mxu0 %v8211_v56  ;;  %v8268_v56 = vld [vmem:[#allocation2 + $0x328] ss:$16 sps:$4 sm:$0xff]  }
 0x1fb   :  { %5404 = vmatpush1.bf16.msra.mxu1 %v8214_v57  ;;  %5364 = vmatprep.subr.bf16.mxu0 %v8219_v58  ;;  %v8273_v57 = vld [vmem:[#allocation2 + $0x10c] ss:$16 sps:$4 sm:$0xff]  }
 0x1fc   :  { %5405 = vmatprep.subr.bf16.mxu1 %v8222_v62  ;;  %v8276_v58 = vld [vmem:[#allocation2 + $0x30c] ss:$16 sps:$4 sm:$0xff]   ;;  %v8271_v62 = vld [vmem:[#allocation2 + $0x108] ss:$16 sps:$4 sm:$0xff]  }
 0x1fe   :  { %5365 = vmatpush1.bf16.msra.mxu0 %v8217_v35  ;;  %v8274_v35 = vld [vmem:[#allocation2 + $0x308] ss:$16 sps:$4 sm:$0xff]  }
 0x1ff   :  { %5406 = vmatpush1.bf16.msra.mxu1 %v8220_v40  ;;  %5366 = vmatprep.subr.bf16.mxu0 %v8225_v8  ;;  %v8279_v40 = vld [vmem:[#allocation2 + $0x4ec] ss:$16 sps:$4 sm:$0xff]  }
 0x200   :  { %5407 = vmatprep.subr.bf16.mxu1 %v8228_v11  ;;  %v8282_v8 = vld [vmem:[#allocation2 + $0x6ec] ss:$16 sps:$4 sm:$0xff]   ;;  %v8277_v11 = vld [vmem:[#allocation2 + $0x4e8] ss:$16 sps:$4 sm:$0xff]  }
 0x202   :  { %5367 = vmatpush1.bf16.msra.mxu0 %v8223_v12  ;;  %v8280_v12 = vld [vmem:[#allocation2 + $0x6e8] ss:$16 sps:$4 sm:$0xff]  }
 0x203   :  { %5408 = vmatpush1.bf16.msra.mxu1 %v8226_v3  ;;  %5368 = vmatprep.subr.bf16.mxu0 %v8231_v18  ;;  %v8285_v3 = vld [vmem:[#allocation2 + $0x4cc] ss:$16 sps:$4 sm:$0xff]  }
 0x204   :  { %5409 = vmatprep.subr.bf16.mxu1 %v8234_v19  ;;  %v8288_v18 = vld [vmem:[#allocation2 + $0x6cc] ss:$16 sps:$4 sm:$0xff]   ;;  %v8283_v19 = vld [vmem:[#allocation2 + $0x4c8] ss:$16 sps:$4 sm:$0xff]  }
 0x206   :  { %5369 = vmatpush2.bf16.msra.mxu0 %v8229_v20  ;;  %v8286_v20 = vld [vmem:[#allocation2 + $0x6c8] ss:$16 sps:$4 sm:$0xff]  }
 0x207   :  { %5410 = vmatpush2.bf16.msra.mxu1 %v8232_v21  ;;  %5370 = vmatprep.subr.bf16.mxu0 %v8237_v28 }
 0x208   :  { %5411 = vmatprep.subr.bf16.mxu1 %v8240_v60 }
 0x20a   :  { %5371 = vmatpush2.bf16.msra.mxu0 %v8235_v61 }
 0x20b   :  { %5412 = vmatpush2.bf16.msra.mxu1 %v8238_v29  ;;  %5372 = vmatprep.subr.bf16.mxu0 %v8243_v30  ;;  %v8291_v30 = vld [vmem:[#allocation2 + $0x4ac] ss:$16 sps:$4 sm:$0xff]  }
 0x20c   :  { %5413 = vmatprep.subr.bf16.mxu1 %v8246_v32  ;;  %v8294_v32 = vld [vmem:[#allocation2 + $0x6ac] ss:$16 sps:$4 sm:$0xff]  }
 0x20e   :  { %5373 = vmatpush2.bf16.msra.mxu0 %v8241_v34 }
 0x20f   :  { %5414 = vmatpush2.bf16.msra.mxu1 %v8244_v41  ;;  %5374 = vmatprep.subr.bf16.mxu0 %v8249_v42  ;;  %v8289_v42 = vld [vmem:[#allocation2 + $0x4a8] ss:$16 sps:$4 sm:$0xff]  }
 0x210   :  { %5415 = vmatprep.subr.bf16.mxu1 %v8252_v43  ;;  %v8292_v43 = vld [vmem:[#allocation2 + $0x6a8] ss:$16 sps:$4 sm:$0xff]  }
 0x212   :  { %5375 = vmatpush2.bf16.msra.mxu0 %v8247_v27 }
 0x213   :  { %5416 = vmatpush2.bf16.msra.mxu1 %v8250_v44  ;;  %5376 = vmatprep.subr.bf16.mxu0 %v8255_v45  ;;  %v8297_v45 = vld [vmem:[#allocation2 + $0x48c] ss:$16 sps:$4 sm:$0xff]  }
 0x214   :  { %5417 = vmatprep.subr.bf16.mxu1 %v8258_v46  ;;  %v8300_v46 = vld [vmem:[#allocation2 + $0x68c] ss:$16 sps:$4 sm:$0xff]  }
 0x216   :  { %5377 = vmatpush2.bf16.msra.mxu0 %v8253_v48  ;;  %v8298_v48 = vld [vmem:[#allocation2 + $0x688] ss:$16 sps:$4 sm:$0xff]  }
 0x217   :  { %5418 = vmatpush2.bf16.msra.mxu1 %v8256_v33  ;;  %5378 = vmatprep.subr.bf16.mxu0 %v8261_v49  ;;  %v8301_v33 = vld [vmem:[#allocation2 + $0x468] ss:$16 sps:$4 sm:$0xff]  }
 0x218   :  { %5419 = vmatprep.subr.bf16.mxu1 %v8264_v47  ;;  %v8304_v49 = vld [vmem:[#allocation2 + $0x668] ss:$16 sps:$4 sm:$0xff]   ;;  %v8309_v47 = vld [vmem:[#allocation2 + $0x44c] ss:$16 sps:$4 sm:$0xff]  }
 0x21a   :  { %5379 = vmatpush2.bf16.msra.mxu0 %v8259_v51  ;;  %v8312_v51 = vld [vmem:[#allocation2 + $0x64c] ss:$16 sps:$4 sm:$0xff]  }
 0x21b   :  { %5420 = vmatpush2.bf16.msra.mxu1 %v8262_v50  ;;  %5380 = vmatprep.subr.bf16.mxu0 %v8267_v52  ;;  %v8307_v50 = vld [vmem:[#allocation2 + $0x448] ss:$16 sps:$4 sm:$0xff]  }
 0x21c   :  { %5421 = vmatprep.subr.bf16.mxu1 %v8270_v53  ;;  %v8310_v52 = vld [vmem:[#allocation2 + $0x648] ss:$16 sps:$4 sm:$0xff]   ;;  %v8315_v53 = vld [vmem:[#allocation2 + $0x42c] ss:$16 sps:$4 sm:$0xff]  }
 0x21e   :  { %5381 = vmatpush2.bf16.msra.mxu0 %v8265_v55  ;;  %v8318_v55 = vld [vmem:[#allocation2 + $0x62c] ss:$16 sps:$4 sm:$0xff]  }
 0x21f   :  { %5422 = vmatpush2.bf16.msra.mxu1 %v8268_v56  ;;  %5382 = vmatprep.subr.bf16.mxu0 %v8273_v57  ;;  %v8313_v56 = vld [vmem:[#allocation2 + $0x428] ss:$16 sps:$4 sm:$0xff]  }
 0x220   :  { %5423 = vmatprep.subr.bf16.mxu1 %v8276_v58  ;;  %v8316_v57 = vld [vmem:[#allocation2 + $0x628] ss:$16 sps:$4 sm:$0xff]   ;;  %v8321_v58 = vld [vmem:[#allocation2 + $0x40c] ss:$16 sps:$4 sm:$0xff]  }
 0x222   :  { %5383 = vmatpush2.bf16.msra.mxu0 %v8271_v62  ;;  %v8324_v62 = vld [vmem:[#allocation2 + $0x60c] ss:$16 sps:$4 sm:$0xff]  }
 0x223   :  { %5424 = vmatpush2.bf16.msra.mxu1 %v8274_v35  ;;  %5434 = vmatprep.subr.bf16.mxu0 %v8279_v40  ;;  %v8319_v35 = vld [vmem:[#allocation2 + $0x408] ss:$16 sps:$4 sm:$0xff]  }
 0x224   :  { %5475 = vmatprep.subr.bf16.mxu1 %v8282_v8  ;;  %v8322_v40 = vld [vmem:[#allocation2 + $0x608] ss:$16 sps:$4 sm:$0xff]   ;;  %v8327_v8 = vld [vmem:[#allocation2 + $0x5ec] ss:$16 sps:$4 sm:$0xff]  }
 0x225   :  { %v5140_v21 = vpop.f32.mrf.mxu0  ;;  %5385 = vmatmul.mubr.bf16.vlgmr.msra.gmra.mxu0 %v9150_v6 }
 0x226   :  { %v5181_v28 = vpop.f32.mrf.mxu1  ;;  %5426 = vmatmul.mubr.bf16.vlgmr.msra.gmra.mxu1 %v9152_v7  ;;  %v5141_v60 = vadd.f32 %v5140_v21, %v9325_v26  ;;  %5435 = vmatpush1.bf16.msra.mxu0 %v8277_v11  ;;  %v8330_v11 = vld [vmem:[#allocation2 + $0x7ec] ss:$16 sps:$4 sm:$0xff]   ;;  %v8334_v21 = vld [vmem:[#allocation2 + $0x7c8] ss:$16 sps:$4 sm:$0xff]  }
 0x227   :  { %5476 = vmatpush1.bf16.msra.mxu1 %v8280_v12  ;;  %v5142_v61 = vpop.f32.mrf.mxu0  ;;  %5436 = vmatprep.subr.bf16.mxu0 %v8285_v3  ;;  %v8325_v12 = vld [vmem:[#allocation2 + $0x5e8] ss:$16 sps:$4 sm:$0xff]  }
 0x228   :  { %v5183_v29 = vpop.f32.mrf.mxu1  ;;  %5477 = vmatprep.subr.bf16.mxu1 %v8288_v18  ;;  %v9335_v34 = vadd.f32 %v5181_v28, %v5141_v60  ;;  %v5143_v41 = vadd.f32 %v5142_v61, %v9330_v31  ;;  %5466 = vmatprep.mubr.bf16.mxu0 %v9168_v36  ;;  %v8295_v31 = vld [vmem:[#allocation2 + $0x488] ss:$16 sps:$4 sm:$0xff]   ;;  %v8303_v36 = vld [vmem:[#allocation2 + $0x46c] ss:$16 sps:$4 sm:$0xff]  }
 0x229   :  { %5507 = vmatprep.mubr.bf16.mxu1 %v9172_v37  ;;  %v5144_v6 = vpop.f32.mrf.mxu0  ;;  %v8306_v37 = vld [vmem:[#allocation2 + $0x66c] ss:$16 sps:$4 sm:$0xff]   ;;  %v8328_v3 = vld [vmem:[#allocation2 + $0x7e8] ss:$16 sps:$4 sm:$0xff]  }
 0x22a   :  { %v5185_v7 = vpop.f32.mrf.mxu1  ;;  %v9340_v26 = vadd.f32 %v5183_v29, %v5143_v41  ;;  %5437 = vmatpush1.bf16.msra.mxu0 %v8283_v19  ;;  %v8333_v18 = vld [vmem:[#allocation2 + $0x5cc] ss:$16 sps:$4 sm:$0xff]   ;;  %v8337_v61 = vld [vmem:[#allocation2 + $0x5a8] ss:$16 sps:$4 sm:$0xff]  }
 0x22b   :  { %5478 = vmatpush1.bf16.msra.mxu1 %v8286_v20  ;;  %v5145_v27 = vpop.f32.mrf.mxu0  ;;  %5438 = vmatprep.subr.bf16.mxu0 %v8291_v30  ;;  %v8336_v19 = vld [vmem:[#allocation2 + $0x7cc] ss:$16 sps:$4 sm:$0xff]   ;;  %v8331_v20 = vld [vmem:[#allocation2 + $0x5c8] ss:$16 sps:$4 sm:$0xff]  }
 0x22c   :  { %v5186_v44 = vpop.f32.mrf.mxu1  ;;  %5479 = vmatprep.subr.bf16.mxu1 %v8294_v32  ;;  %v8339_v28 = vld [vmem:[#allocation2 + $0x5ac] ss:$16 sps:$4 sm:$0xff]   ;;  %v8340_v29 = vld [vmem:[#allocation2 + $0x7a8] ss:$16 sps:$4 sm:$0xff]  }
 0x22d   :  { %v8342_v60 = vld [vmem:[#allocation2 + $0x7ac] ss:$16 sps:$4 sm:$0xff]   ;;  %v8343_v41 = vld [vmem:[#allocation2 + $0x588] ss:$16 sps:$4 sm:$0xff]  }
 0x22e   :  { %5439 = vmatpush1.bf16.msra.mxu0 %v8289_v42  ;;  %v8345_v30 = vld [vmem:[#allocation2 + $0x58c] ss:$16 sps:$4 sm:$0xff]   ;;  %v8346_v42 = vld [vmem:[#allocation2 + $0x788] ss:$16 sps:$4 sm:$0xff]  }
 0x22f   :  { %5480 = vmatpush1.bf16.msra.mxu1 %v8292_v43  ;;  %5440 = vmatprep.subr.bf16.mxu0 %v8297_v45  ;;  %v8348_v32 = vld [vmem:[#allocation2 + $0x78c] ss:$16 sps:$4 sm:$0xff]   ;;  %v8349_v7 = vld [vmem:[#allocation2 + $0x568] ss:$16 sps:$4 sm:$0xff]  }
 0x230   :  { %5481 = vmatprep.subr.bf16.mxu1 %v8300_v46  ;;  %v8351_v43 = vld [vmem:[#allocation2 + $0x56c] ss:$16 sps:$4 sm:$0xff]   ;;  %v8352_v27 = vld [vmem:[#allocation2 + $0x768] ss:$16 sps:$4 sm:$0xff]  }
 0x231   :  { %v8354_v6 = vld [vmem:[#allocation2 + $0x76c] ss:$16 sps:$4 sm:$0xff]   ;;  %v8355_v46 = vld [vmem:[#allocation2 + $0x548] ss:$16 sps:$4 sm:$0xff]  }
 0x232   :  { %5441 = vmatpush1.bf16.msra.mxu0 %v8295_v31  ;;  %v8357_v44 = vld [vmem:[#allocation2 + $0x54c] ss:$16 sps:$4 sm:$0xff]   ;;  %v8358_v31 = vld [vmem:[#allocation2 + $0x748] ss:$16 sps:$4 sm:$0xff]  }
 0x233   :  { %5482 = vmatpush1.bf16.msra.mxu1 %v8298_v48  ;;  %5442 = vmatprep.subr.bf16.mxu0 %v8303_v36  ;;  %v8360_v45 = vld [vmem:[#allocation2 + $0x74c] ss:$16 sps:$4 sm:$0xff]  }
 0x234   :  { %5483 = vmatprep.subr.bf16.mxu1 %v8306_v37  ;;  %v8363_v48 = vld [vmem:[#allocation2 + $0x52c] ss:$16 sps:$4 sm:$0xff]   ;;  %v8361_v37 = vld [vmem:[#allocation2 + $0x528] ss:$16 sps:$4 sm:$0xff]  }
 0x235   :  { %v8366_v36 = vld [vmem:[#allocation2 + $0x72c] ss:$16 sps:$4 sm:$0xff]  }
 0x236   :  { %5443 = vmatpush1.bf16.msra.mxu0 %v8301_v33  ;;  %v8364_v33 = vld [vmem:[#allocation2 + $0x728] ss:$16 sps:$4 sm:$0xff]  }
 0x237   :  { %5484 = vmatpush1.bf16.msra.mxu1 %v8304_v49  ;;  %5444 = vmatprep.subr.bf16.mxu0 %v8309_v47  ;;  %v8369_v49 = vld [vmem:[#allocation2 + $0x50c] ss:$16 sps:$4 sm:$0xff]  }
 0x238   :  { %5485 = vmatprep.subr.bf16.mxu1 %v8312_v51  ;;  %v8372_v47 = vld [vmem:[#allocation2 + $0x70c] ss:$16 sps:$4 sm:$0xff]   ;;  %v8367_v51 = vld [vmem:[#allocation2 + $0x508] ss:$16 sps:$4 sm:$0xff]  }
 0x23a   :  { %5445 = vmatpush1.bf16.msra.mxu0 %v8307_v50  ;;  %v8370_v50 = vld [vmem:[#allocation2 + $0x708] ss:$16 sps:$4 sm:$0xff]  }
 0x23b   :  { %5486 = vmatpush1.bf16.msra.mxu1 %v8310_v52  ;;  %5446 = vmatprep.subr.bf16.mxu0 %v8315_v53  ;;  %v8375_v52 = vld [vmem:[#allocation2 + $0x8ec] ss:$16 sps:$4 sm:$0xff]  }
 0x23c   :  { %5487 = vmatprep.subr.bf16.mxu1 %v8318_v55  ;;  %v8378_v53 = vld [vmem:[#allocation2 + $0xaec] ss:$16 sps:$4 sm:$0xff]   ;;  %v8373_v55 = vld [vmem:[#allocation2 + $0x8e8] ss:$16 sps:$4 sm:$0xff]  }
 0x23e   :  { %5447 = vmatpush1.bf16.msra.mxu0 %v8313_v56  ;;  %v8376_v56 = vld [vmem:[#allocation2 + $0xae8] ss:$16 sps:$4 sm:$0xff]  }
 0x23f   :  { %5488 = vmatpush1.bf16.msra.mxu1 %v8316_v57  ;;  %5448 = vmatprep.subr.bf16.mxu0 %v8321_v58  ;;  %v8381_v57 = vld [vmem:[#allocation2 + $0x8cc] ss:$16 sps:$4 sm:$0xff]  }
 0x240   :  { %5489 = vmatprep.subr.bf16.mxu1 %v8324_v62  ;;  %v8384_v58 = vld [vmem:[#allocation2 + $0xacc] ss:$16 sps:$4 sm:$0xff]  }
 0x242   :  { %5449 = vmatpush1.bf16.msra.mxu0 %v8319_v35 }
 0x243   :  { %5490 = vmatpush1.bf16.msra.mxu1 %v8322_v40  ;;  %5450 = vmatprep.subr.bf16.mxu0 %v8327_v8  ;;  %v8379_v8 = vld [vmem:[#allocation2 + $0x8c8] ss:$16 sps:$4 sm:$0xff]  }
 0x244   :  { %5491 = vmatprep.subr.bf16.mxu1 %v8330_v11  ;;  %v8382_v11 = vld [vmem:[#allocation2 + $0xac8] ss:$16 sps:$4 sm:$0xff]  }
 0x246   :  { %5451 = vmatpush2.bf16.msra.mxu0 %v8325_v12 }
 0x247   :  { %5492 = vmatpush2.bf16.msra.mxu1 %v8328_v3  ;;  %5452 = vmatprep.subr.bf16.mxu0 %v8333_v18  ;;  %v8387_v18 = vld [vmem:[#allocation2 + $0x8ac] ss:$16 sps:$4 sm:$0xff]  }
 0x248   :  { %5493 = vmatprep.subr.bf16.mxu1 %v8336_v19  ;;  %v8390_v19 = vld [vmem:[#allocation2 + $0xaac] ss:$16 sps:$4 sm:$0xff]  }
 0x24a   :  { %5453 = vmatpush2.bf16.msra.mxu0 %v8331_v20 }
 0x24b   :  { %5494 = vmatpush2.bf16.msra.mxu1 %v8334_v21  ;;  %5454 = vmatprep.subr.bf16.mxu0 %v8339_v28  ;;  %v8385_v28 = vld [vmem:[#allocation2 + $0x8a8] ss:$16 sps:$4 sm:$0xff]  }
 0x24c   :  { %5495 = vmatprep.subr.bf16.mxu1 %v8342_v60  ;;  %v8388_v60 = vld [vmem:[#allocation2 + $0xaa8] ss:$16 sps:$4 sm:$0xff]  }
 0x24e   :  { %5455 = vmatpush2.bf16.msra.mxu0 %v8337_v61 }
 0x24f   :  { %5496 = vmatpush2.bf16.msra.mxu1 %v8340_v29  ;;  %5456 = vmatprep.subr.bf16.mxu0 %v8345_v30  ;;  %v8393_v30 = vld [vmem:[#allocation2 + $0x88c] ss:$16 sps:$4 sm:$0xff]  }
 0x250   :  { %5497 = vmatprep.subr.bf16.mxu1 %v8348_v32  ;;  %v8396_v32 = vld [vmem:[#allocation2 + $0xa8c] ss:$16 sps:$4 sm:$0xff]  }
 0x252   :  { %5457 = vmatpush2.bf16.msra.mxu0 %v8343_v41  ;;  %v8402_v41 = vld [vmem:[#allocation2 + $0xa6c] ss:$16 sps:$4 sm:$0xff]  }
 0x253   :  { %5498 = vmatpush2.bf16.msra.mxu1 %v8346_v42  ;;  %5458 = vmatprep.subr.bf16.mxu0 %v8351_v43  ;;  %v8397_v42 = vld [vmem:[#allocation2 + $0x868] ss:$16 sps:$4 sm:$0xff]  }
 0x254   :  { %5499 = vmatprep.subr.bf16.mxu1 %v8354_v6  ;;  %v8400_v43 = vld [vmem:[#allocation2 + $0xa68] ss:$16 sps:$4 sm:$0xff]   ;;  %v8405_v6 = vld [vmem:[#allocation2 + $0x84c] ss:$16 sps:$4 sm:$0xff]  }
 0x256   :  { %5459 = vmatpush2.bf16.msra.mxu0 %v8349_v7  ;;  %v8408_v7 = vld [vmem:[#allocation2 + $0xa4c] ss:$16 sps:$4 sm:$0xff]  }
 0x257   :  { %5500 = vmatpush2.bf16.msra.mxu1 %v8352_v27  ;;  %5460 = vmatprep.subr.bf16.mxu0 %v8357_v44  ;;  %v8403_v27 = vld [vmem:[#allocation2 + $0x848] ss:$16 sps:$4 sm:$0xff]  }
 0x258   :  { %5501 = vmatprep.subr.bf16.mxu1 %v8360_v45  ;;  %v8406_v44 = vld [vmem:[#allocation2 + $0xa48] ss:$16 sps:$4 sm:$0xff]   ;;  %v8411_v45 = vld [vmem:[#allocation2 + $0x82c] ss:$16 sps:$4 sm:$0xff]  }
 0x25a   :  { %5461 = vmatpush2.bf16.msra.mxu0 %v8355_v46  ;;  %v8414_v46 = vld [vmem:[#allocation2 + $0xa2c] ss:$16 sps:$4 sm:$0xff]  }
 0x25b   :  { %5502 = vmatpush2.bf16.msra.mxu1 %v8358_v31  ;;  %5462 = vmatprep.subr.bf16.mxu0 %v8363_v48  ;;  %v8409_v31 = vld [vmem:[#allocation2 + $0x828] ss:$16 sps:$4 sm:$0xff]  }
 0x25c   :  { %5503 = vmatprep.subr.bf16.mxu1 %v8366_v36  ;;  %v8412_v48 = vld [vmem:[#allocation2 + $0xa28] ss:$16 sps:$4 sm:$0xff]   ;;  %v8417_v36 = vld [vmem:[#allocation2 + $0x80c] ss:$16 sps:$4 sm:$0xff]  }
 0x25e   :  { %5463 = vmatpush2.bf16.msra.mxu0 %v8361_v37  ;;  %v8420_v37 = vld [vmem:[#allocation2 + $0xa0c] ss:$16 sps:$4 sm:$0xff]  }
 0x25f   :  { %5504 = vmatpush2.bf16.msra.mxu1 %v8364_v33  ;;  %5464 = vmatprep.subr.bf16.mxu0 %v8369_v49  ;;  %v8415_v33 = vld [vmem:[#allocation2 + $0x808] ss:$16 sps:$4 sm:$0xff]  }
 0x260   :  { %5505 = vmatprep.subr.bf16.mxu1 %v8372_v47  ;;  %v8418_v49 = vld [vmem:[#allocation2 + $0xa08] ss:$16 sps:$4 sm:$0xff]   ;;  %v8423_v47 = vld [vmem:[#allocation2 + $0x9ec] ss:$16 sps:$4 sm:$0xff]  }
 0x262   :  { %5465 = vmatpush2.bf16.msra.mxu0 %v8367_v51  ;;  %v8426_v51 = vld [vmem:[#allocation2 + $0xbec] ss:$16 sps:$4 sm:$0xff]  }
 0x263   :  { %5506 = vmatpush2.bf16.msra.mxu1 %v8370_v50  ;;  %5516 = vmatprep.subr.bf16.mxu0 %v8375_v52  ;;  %v8421_v50 = vld [vmem:[#allocation2 + $0x9e8] ss:$16 sps:$4 sm:$0xff]  }
 0x264   :  { %5557 = vmatprep.subr.bf16.mxu1 %v8378_v53  ;;  %v8424_v52 = vld [vmem:[#allocation2 + $0xbe8] ss:$16 sps:$4 sm:$0xff]   ;;  %v8429_v53 = vld [vmem:[#allocation2 + $0x9cc] ss:$16 sps:$4 sm:$0xff]  }
 0x265   :  { %v5222_v62 = vpop.f32.mrf.mxu0  ;;  %5467 = vmatmul.mubr.bf16.vlgmr.msra.gmra.mxu0 %v9178_v16 }
 0x266   :  { %v5263_v35 = vpop.f32.mrf.mxu1  ;;  %5508 = vmatmul.mubr.bf16.vlgmr.msra.gmra.mxu1 %v9182_v17  ;;  %v5223_v40 = vadd.f32 %v5222_v62, %v9335_v34  ;;  %5517 = vmatpush1.bf16.msra.mxu0 %v8373_v55  ;;  %v8432_v55 = vld [vmem:[#allocation2 + $0xbcc] ss:$16 sps:$4 sm:$0xff]  }
 0x267   :  { %5558 = vmatpush1.bf16.msra.mxu1 %v8376_v56  ;;  %v5224_v12 = vpop.f32.mrf.mxu0  ;;  %5518 = vmatprep.subr.bf16.mxu0 %v8381_v57  ;;  %v8427_v56 = vld [vmem:[#allocation2 + $0x9c8] ss:$16 sps:$4 sm:$0xff]   ;;  %v8438_v62 = vld [vmem:[#allocation2 + $0xbac] ss:$16 sps:$4 sm:$0xff]  }
 0x268   :  { %v5265_v3 = vpop.f32.mrf.mxu1  ;;  %5559 = vmatprep.subr.bf16.mxu1 %v8384_v58  ;;  %v9345_v20 = vadd.f32 %v5263_v35, %v5223_v40  ;;  %v5225_v21 = vadd.f32 %v5224_v12, %v9340_v26  ;;  %5548 = vmatprep.mubr.bf16.mxu0 %v9196_v24  ;;  %v8391_v26 = vld [vmem:[#allocation2 + $0x888] ss:$16 sps:$4 sm:$0xff]   ;;  %v8435_v58 = vld [vmem:[#allocation2 + $0x9ac] ss:$16 sps:$4 sm:$0xff]  }
 0x269   :  { %5589 = vmatprep.mubr.bf16.mxu1 %v9200_v25  ;;  %v5226_v16 = vpop.f32.mrf.mxu0  ;;  %v8394_v24 = vld [vmem:[#allocation2 + $0xa88] ss:$16 sps:$4 sm:$0xff]   ;;  %v8399_v25 = vld [vmem:[#allocation2 + $0x86c] ss:$16 sps:$4 sm:$0xff]  }
 0x26a   :  { %v5267_v17 = vpop.f32.mrf.mxu1  ;;  %v9350_v34 = vadd.f32 %v5265_v3, %v5225_v21  ;;  %5519 = vmatpush1.bf16.msra.mxu0 %v8379_v8  ;;  %v8430_v57 = vld [vmem:[#allocation2 + $0xbc8] ss:$16 sps:$4 sm:$0xff]   ;;  %v8441_v8 = vld [vmem:[#allocation2 + $0x98c] ss:$16 sps:$4 sm:$0xff]  }
 0x26b   :  { %5560 = vmatpush1.bf16.msra.mxu1 %v8382_v11  ;;  %v5227_v61 = vpop.f32.mrf.mxu0  ;;  %5520 = vmatprep.subr.bf16.mxu0 %v8387_v18  ;;  %v8433_v35 = vld [vmem:[#allocation2 + $0x9a8] ss:$16 sps:$4 sm:$0xff]   ;;  %v8444_v11 = vld [vmem:[#allocation2 + $0xb8c] ss:$16 sps:$4 sm:$0xff]  }
 0x26c   :  { %v5268_v29 = vpop.f32.mrf.mxu1  ;;  %5561 = vmatprep.subr.bf16.mxu1 %v8390_v19  ;;  %v8436_v40 = vld [vmem:[#allocation2 + $0xba8] ss:$16 sps:$4 sm:$0xff]   ;;  %v8447_v18 = vld [vmem:[#allocation2 + $0x96c] ss:$16 sps:$4 sm:$0xff]  }
 0x26d   :  { %v8439_v12 = vld [vmem:[#allocation2 + $0x988] ss:$16 sps:$4 sm:$0xff]   ;;  %v8450_v19 = vld [vmem:[#allocation2 + $0xb6c] ss:$16 sps:$4 sm:$0xff]  }
 0x26e   :  { %5521 = vmatpush1.bf16.msra.mxu0 %v8385_v28  ;;  %v8442_v3 = vld [vmem:[#allocation2 + $0xb88] ss:$16 sps:$4 sm:$0xff]   ;;  %v8453_v17 = vld [vmem:[#allocation2 + $0x94c] ss:$16 sps:$4 sm:$0xff]  }
 0x26f   :  { %5562 = vmatpush1.bf16.msra.mxu1 %v8388_v60  ;;  %5522 = vmatprep.subr.bf16.mxu0 %v8393_v30  ;;  %v8445_v21 = vld [vmem:[#allocation2 + $0x968] ss:$16 sps:$4 sm:$0xff]   ;;  %v8456_v28 = vld [vmem:[#allocation2 + $0xb4c] ss:$16 sps:$4 sm:$0xff]  }
 0x270   :  { %5563 = vmatprep.subr.bf16.mxu1 %v8396_v32  ;;  %v8448_v16 = vld [vmem:[#allocation2 + $0xb68] ss:$16 sps:$4 sm:$0xff]   ;;  %v8459_v29 = vld [vmem:[#allocation2 + $0x92c] ss:$16 sps:$4 sm:$0xff]  }
 0x271   :  { %v8451_v60 = vld [vmem:[#allocation2 + $0x948] ss:$16 sps:$4 sm:$0xff]   ;;  %v8462_v30 = vld [vmem:[#allocation2 + $0xb2c] ss:$16 sps:$4 sm:$0xff]  }
 0x272   :  { %5523 = vmatpush1.bf16.msra.mxu0 %v8391_v26  ;;  %v8454_v61 = vld [vmem:[#allocation2 + $0xb48] ss:$16 sps:$4 sm:$0xff]  }
 0x273   :  { %5564 = vmatpush1.bf16.msra.mxu1 %v8394_v24  ;;  %5524 = vmatprep.subr.bf16.mxu0 %v8399_v25  ;;  %v8457_v32 = vld [vmem:[#allocation2 + $0x928] ss:$16 sps:$4 sm:$0xff]   ;;  %v8465_v24 = vld [vmem:[#allocation2 + $0x90c] ss:$16 sps:$4 sm:$0xff]  }
 0x274   :  { %5565 = vmatprep.subr.bf16.mxu1 %v8402_v41  ;;  %v8460_v26 = vld [vmem:[#allocation2 + $0xb28] ss:$16 sps:$4 sm:$0xff]   ;;  %v8468_v25 = vld [vmem:[#allocation2 + $0xb0c] ss:$16 sps:$4 sm:$0xff]  }
 0x275   :  { %v8463_v41 = vld [vmem:[#allocation2 + $0x908] ss:$16 sps:$4 sm:$0xff]  }
 0x276   :  { %5525 = vmatpush1.bf16.msra.mxu0 %v8397_v42  ;;  %v8466_v42 = vld [vmem:[#allocation2 + $0xb08] ss:$16 sps:$4 sm:$0xff]  }
 0x277   :  { %5566 = vmatpush1.bf16.msra.mxu1 %v8400_v43  ;;  %5526 = vmatprep.subr.bf16.mxu0 %v8405_v6  ;;  %v8471_v43 = vld [vmem:[#allocation2 + $0xcec] ss:$16 sps:$4 sm:$0xff]  }
 0x278   :  { %5567 = vmatprep.subr.bf16.mxu1 %v8408_v7  ;;  %v8474_v6 = vld [vmem:[#allocation2 + $0xeec] ss:$16 sps:$4 sm:$0xff]   ;;  %v8469_v7 = vld [vmem:[#allocation2 + $0xce8] ss:$16 sps:$4 sm:$0xff]  }
 0x27a   :  { %5527 = vmatpush1.bf16.msra.mxu0 %v8403_v27  ;;  %v8472_v27 = vld [vmem:[#allocation2 + $0xee8] ss:$16 sps:$4 sm:$0xff]  }
 0x27b   :  { %5568 = vmatpush1.bf16.msra.mxu1 %v8406_v44  ;;  %5528 = vmatprep.subr.bf16.mxu0 %v8411_v45  ;;  %v8477_v44 = vld [vmem:[#allocation2 + $0xccc] ss:$16 sps:$4 sm:$0xff]  }
 0x27c   :  { %5569 = vmatprep.subr.bf16.mxu1 %v8414_v46  ;;  %v8480_v45 = vld [vmem:[#allocation2 + $0xecc] ss:$16 sps:$4 sm:$0xff]  }
 0x27e   :  { %5529 = vmatpush1.bf16.msra.mxu0 %v8409_v31 }
 0x27f   :  { %5570 = vmatpush1.bf16.msra.mxu1 %v8412_v48  ;;  %5530 = vmatprep.subr.bf16.mxu0 %v8417_v36  ;;  %v8475_v36 = vld [vmem:[#allocation2 + $0xcc8] ss:$16 sps:$4 sm:$0xff]  }
 0x280   :  { %5571 = vmatprep.subr.bf16.mxu1 %v8420_v37  ;;  %v8478_v37 = vld [vmem:[#allocation2 + $0xec8] ss:$16 sps:$4 sm:$0xff]  }
 0x282   :  { %5531 = vmatpush1.bf16.msra.mxu0 %v8415_v33 }
 0x283   :  { %5572 = vmatpush1.bf16.msra.mxu1 %v8418_v49  ;;  %5532 = vmatprep.subr.bf16.mxu0 %v8423_v47  ;;  %v8483_v47 = vld [vmem:[#allocation2 + $0xcac] ss:$16 sps:$4 sm:$0xff]  }
 0x284   :  { %5573 = vmatprep.subr.bf16.mxu1 %v8426_v51  ;;  %v8486_v51 = vld [vmem:[#allocation2 + $0xeac] ss:$16 sps:$4 sm:$0xff]  }
 0x286   :  { %5533 = vmatpush2.bf16.msra.mxu0 %v8421_v50 }
 0x287   :  { %5574 = vmatpush2.bf16.msra.mxu1 %v8424_v52  ;;  %5534 = vmatprep.subr.bf16.mxu0 %v8429_v53  ;;  %v8481_v53 = vld [vmem:[#allocation2 + $0xca8] ss:$16 sps:$4 sm:$0xff]  }
 0x288   :  { %5575 = vmatprep.subr.bf16.mxu1 %v8432_v55  ;;  %v8484_v55 = vld [vmem:[#allocation2 + $0xea8] ss:$16 sps:$4 sm:$0xff]  }
 0x28a   :  { %5535 = vmatpush2.bf16.msra.mxu0 %v8427_v56 }
 0x28b   :  { %5576 = vmatpush2.bf16.msra.mxu1 %v8430_v57  ;;  %5536 = vmatprep.subr.bf16.mxu0 %v8435_v58  ;;  %v8489_v58 = vld [vmem:[#allocation2 + $0xc8c] ss:$16 sps:$4 sm:$0xff]  }
 0x28c   :  { %5577 = vmatprep.subr.bf16.mxu1 %v8438_v62  ;;  %v8492_v62 = vld [vmem:[#allocation2 + $0xe8c] ss:$16 sps:$4 sm:$0xff]  }
 0x28e   :  { %5537 = vmatpush2.bf16.msra.mxu0 %v8433_v35  ;;  %v8498_v35 = vld [vmem:[#allocation2 + $0xe6c] ss:$16 sps:$4 sm:$0xff]  }
 0x28f   :  { %5578 = vmatpush2.bf16.msra.mxu1 %v8436_v40  ;;  %5538 = vmatprep.subr.bf16.mxu0 %v8441_v8  ;;  %v8493_v40 = vld [vmem:[#allocation2 + $0xc68] ss:$16 sps:$4 sm:$0xff]  }
 0x290   :  { %5579 = vmatprep.subr.bf16.mxu1 %v8444_v11  ;;  %v8496_v8 = vld [vmem:[#allocation2 + $0xe68] ss:$16 sps:$4 sm:$0xff]   ;;  %v8501_v11 = vld [vmem:[#allocation2 + $0xc4c] ss:$16 sps:$4 sm:$0xff]  }
 0x292   :  { %5539 = vmatpush2.bf16.msra.mxu0 %v8439_v12  ;;  %v8504_v12 = vld [vmem:[#allocation2 + $0xe4c] ss:$16 sps:$4 sm:$0xff]  }
 0x293   :  { %5580 = vmatpush2.bf16.msra.mxu1 %v8442_v3  ;;  %5540 = vmatprep.subr.bf16.mxu0 %v8447_v18  ;;  %v8499_v3 = vld [vmem:[#allocation2 + $0xc48] ss:$16 sps:$4 sm:$0xff]  }
 0x294   :  { %5581 = vmatprep.subr.bf16.mxu1 %v8450_v19  ;;  %v8502_v18 = vld [vmem:[#allocation2 + $0xe48] ss:$16 sps:$4 sm:$0xff]   ;;  %v8507_v19 = vld [vmem:[#allocation2 + $0xc2c] ss:$16 sps:$4 sm:$0xff]  }
 0x296   :  { %5541 = vmatpush2.bf16.msra.mxu0 %v8445_v21  ;;  %v8510_v21 = vld [vmem:[#allocation2 + $0xe2c] ss:$16 sps:$4 sm:$0xff]  }
 0x297   :  { %5582 = vmatpush2.bf16.msra.mxu1 %v8448_v16  ;;  %5542 = vmatprep.subr.bf16.mxu0 %v8453_v17  ;;  %v8505_v16 = vld [vmem:[#allocation2 + $0xc28] ss:$16 sps:$4 sm:$0xff]  }
 0x298   :  { %5583 = vmatprep.subr.bf16.mxu1 %v8456_v28  ;;  %v8508_v17 = vld [vmem:[#allocation2 + $0xe28] ss:$16 sps:$4 sm:$0xff]   ;;  %v8513_v28 = vld [vmem:[#allocation2 + $0xc0c] ss:$16 sps:$4 sm:$0xff]  }
 0x29a   :  { %5543 = vmatpush2.bf16.msra.mxu0 %v8451_v60  ;;  %v8516_v60 = vld [vmem:[#allocation2 + $0xe0c] ss:$16 sps:$4 sm:$0xff]  }
 0x29b   :  { %5584 = vmatpush2.bf16.msra.mxu1 %v8454_v61  ;;  %5544 = vmatprep.subr.bf16.mxu0 %v8459_v29  ;;  %v8511_v61 = vld [vmem:[#allocation2 + $0xc08] ss:$16 sps:$4 sm:$0xff]  }
 0x29c   :  { %5585 = vmatprep.subr.bf16.mxu1 %v8462_v30  ;;  %v8514_v29 = vld [vmem:[#allocation2 + $0xe08] ss:$16 sps:$4 sm:$0xff]   ;;  %v8519_v30 = vld [vmem:[#allocation2 + $0xdec] ss:$16 sps:$4 sm:$0xff]  }
 0x29e   :  { %5545 = vmatpush2.bf16.msra.mxu0 %v8457_v32  ;;  %v8522_v32 = vld [vmem:[#allocation2 + $0xfec] ss:$16 sps:$4 sm:$0xff]  }
 0x29f   :  { %5586 = vmatpush2.bf16.msra.mxu1 %v8460_v26  ;;  %5546 = vmatprep.subr.bf16.mxu0 %v8465_v24  ;;  %v8517_v26 = vld [vmem:[#allocation2 + $0xde8] ss:$16 sps:$4 sm:$0xff]  }
 0x2a0   :  { %5587 = vmatprep.subr.bf16.mxu1 %v8468_v25  ;;  %v8520_v24 = vld [vmem:[#allocation2 + $0xfe8] ss:$16 sps:$4 sm:$0xff]   ;;  %v8525_v25 = vld [vmem:[#allocation2 + $0xdcc] ss:$16 sps:$4 sm:$0xff]  }
 0x2a2   :  { %5547 = vmatpush2.bf16.msra.mxu0 %v8463_v41  ;;  %v8528_v41 = vld [vmem:[#allocation2 + $0xfcc] ss:$16 sps:$4 sm:$0xff]  }
 0x2a3   :  { %5588 = vmatpush2.bf16.msra.mxu1 %v8466_v42  ;;  %5598 = vmatprep.subr.bf16.mxu0 %v8471_v43  ;;  %v8523_v42 = vld [vmem:[#allocation2 + $0xdc8] ss:$16 sps:$4 sm:$0xff]  }
 0x2a4   :  { %5639 = vmatprep.subr.bf16.mxu1 %v8474_v6  ;;  %v8526_v43 = vld [vmem:[#allocation2 + $0xfc8] ss:$16 sps:$4 sm:$0xff]   ;;  %v8531_v6 = vld [vmem:[#allocation2 + $0xdac] ss:$16 sps:$4 sm:$0xff]  }
 0x2a5   :  { %v5304_v46 = vpop.f32.mrf.mxu0  ;;  %5549 = vmatmul.mubr.bf16.vlgmr.msra.gmra.mxu0 %v9213_v38 }
 0x2a6   :  { %v5345_v31 = vpop.f32.mrf.mxu1  ;;  %5590 = vmatmul.mubr.bf16.vlgmr.msra.gmra.mxu1 %v9217_v39  ;;  %v5305_v48 = vadd.f32 %v5304_v46, %v9345_v20  ;;  %5599 = vmatpush1.bf16.msra.mxu0 %v8469_v7  ;;  %v8534_v7 = vld [vmem:[#allocation2 + $0xfac] ss:$16 sps:$4 sm:$0xff]  }
 0x2a7   :  { %5640 = vmatpush1.bf16.msra.mxu1 %v8472_v27  ;;  %v5306_v33 = vpop.f32.mrf.mxu0  ;;  %5600 = vmatprep.subr.bf16.mxu0 %v8477_v44  ;;  %v8529_v27 = vld [vmem:[#allocation2 + $0xda8] ss:$16 sps:$4 sm:$0xff]   ;;  %v8540_v46 = vld [vmem:[#allocation2 + $0xf8c] ss:$16 sps:$4 sm:$0xff]  }
 0x2a8   :  { %v5347_v49 = vpop.f32.mrf.mxu1  ;;  %5641 = vmatprep.subr.bf16.mxu1 %v8480_v45  ;;  %v9355_v50 = vadd.f32 %v5345_v31, %v5305_v48  ;;  %v5307_v52 = vadd.f32 %v5306_v33, %v9350_v34  ;;  %5630 = vmatprep.mubr.bf16.mxu0 %v9226_v22  ;;  %v8487_v34 = vld [vmem:[#allocation2 + $0xc88] ss:$16 sps:$4 sm:$0xff]   ;;  %v8537_v45 = vld [vmem:[#allocation2 + $0xd8c] ss:$16 sps:$4 sm:$0xff]  }
 0x2a9   :  { %5671 = vmatprep.mubr.bf16.mxu1 %v9230_v23  ;;  %v5308_v38 = vpop.f32.mrf.mxu0  ;;  %v8490_v22 = vld [vmem:[#allocation2 + $0xe88] ss:$16 sps:$4 sm:$0xff]   ;;  %v8495_v23 = vld [vmem:[#allocation2 + $0xc6c] ss:$16 sps:$4 sm:$0xff]  }
 0x2aa   :  { %v5349_v39 = vpop.f32.mrf.mxu1  ;;  %v9360_v20 = vadd.f32 %v5347_v49, %v5307_v52  ;;  %5601 = vmatpush1.bf16.msra.mxu0 %v8475_v36  ;;  %v8532_v44 = vld [vmem:[#allocation2 + $0xfa8] ss:$16 sps:$4 sm:$0xff]   ;;  %v8543_v36 = vld [vmem:[#allocation2 + $0xd6c] ss:$16 sps:$4 sm:$0xff]  }
 0x2ab   :  { %5642 = vmatpush1.bf16.msra.mxu1 %v8478_v37  ;;  %v5309_v56 = vpop.f32.mrf.mxu0  ;;  %5602 = vmatprep.subr.bf16.mxu0 %v8483_v47  ;;  %v8535_v31 = vld [vmem:[#allocation2 + $0xd88] ss:$16 sps:$4 sm:$0xff]   ;;  %v8546_v37 = vld [vmem:[#allocation2 + $0xf6c] ss:$16 sps:$4 sm:$0xff]  }
 0x2ac   :  { %v5350_v57 = vpop.f32.mrf.mxu1  ;;  %5643 = vmatprep.subr.bf16.mxu1 %v8486_v51  ;;  %v8538_v48 = vld [vmem:[#allocation2 + $0xf88] ss:$16 sps:$4 sm:$0xff]   ;;  %v8549_v47 = vld [vmem:[#allocation2 + $0xd4c] ss:$16 sps:$4 sm:$0xff]  }
 0x2ad   :  { %v8541_v33 = vld [vmem:[#allocation2 + $0xd68] ss:$16 sps:$4 sm:$0xff]   ;;  %v8552_v51 = vld [vmem:[#allocation2 + $0xf4c] ss:$16 sps:$4 sm:$0xff]  }
 0x2ae   :  { %5603 = vmatpush1.bf16.msra.mxu0 %v8481_v53  ;;  %v8544_v49 = vld [vmem:[#allocation2 + $0xf68] ss:$16 sps:$4 sm:$0xff]   ;;  %v8555_v39 = vld [vmem:[#allocation2 + $0xd2c] ss:$16 sps:$4 sm:$0xff]  }
 0x2af   :  { %5644 = vmatpush1.bf16.msra.mxu1 %v8484_v55  ;;  %5604 = vmatprep.subr.bf16.mxu0 %v8489_v58  ;;  %v8547_v52 = vld [vmem:[#allocation2 + $0xd48] ss:$16 sps:$4 sm:$0xff]   ;;  %v8558_v53 = vld [vmem:[#allocation2 + $0xf2c] ss:$16 sps:$4 sm:$0xff]  }
 0x2b0   :  { %5645 = vmatprep.subr.bf16.mxu1 %v8492_v62  ;;  %v8550_v38 = vld [vmem:[#allocation2 + $0xf48] ss:$16 sps:$4 sm:$0xff]   ;;  %v8561_v57 = vld [vmem:[#allocation2 + $0xd0c] ss:$16 sps:$4 sm:$0xff]  }
 0x2b1   :  { %v8553_v55 = vld [vmem:[#allocation2 + $0xd28] ss:$16 sps:$4 sm:$0xff]   ;;  %v8564_v58 = vld [vmem:[#allocation2 + $0xf0c] ss:$16 sps:$4 sm:$0xff]  }
 0x2b2   :  { %5605 = vmatpush1.bf16.msra.mxu0 %v8487_v34  ;;  %v8556_v56 = vld [vmem:[#allocation2 + $0xf28] ss:$16 sps:$4 sm:$0xff]  }
 0x2b3   :  { %5646 = vmatpush1.bf16.msra.mxu1 %v8490_v22  ;;  %5606 = vmatprep.subr.bf16.mxu0 %v8495_v23  ;;  %v8559_v62 = vld [vmem:[#allocation2 + $0xd08] ss:$16 sps:$4 sm:$0xff]   ;;  %v926_v22 = vsub.s32 2, %v9236_v54  ;;  %v8567_v23 = vld [vmem:[#allocation2 + $0x10ec] ss:$16 sps:$4 sm:$0xff]  }
 0x2b4   :  { %5647 = vmatprep.subr.bf16.mxu1 %v8498_v35  ;;  %v8562_v34 = vld [vmem:[#allocation2 + $0xf08] ss:$16 sps:$4 sm:$0xff]   ;;  %v8570_v35 = vld [vmem:[#allocation2 + $0x12ec] ss:$16 sps:$4 sm:$0xff]  }
 0x2b6   :  { %5607 = vmatpush1.bf16.msra.mxu0 %v8493_v40  ;;  %v930_v40 = vsub.s32 3, %v9236_v54  ;;  %v8876_v54 = vld [vmem:[#allocation12] sm:$0xff]  }
 0x2b7   :  { %5648 = vmatpush1.bf16.msra.mxu1 %v8496_v8  ;;  %5608 = vmatprep.subr.bf16.mxu0 %v8501_v11  ;;  %v8877_v8 = vld [vmem:[#allocation4] sm:$0xf] }
 0x2b8   :  { %5649 = vmatprep.subr.bf16.mxu1 %v8504_v12  ;;  %v927_v11 = vrot.slane %v8877_v8, %v926_v22  ;;  %v8565_v12 = vld [vmem:[#allocation2 + $0x10e8] ss:$16 sps:$4 sm:$0xff]   ;;  %v8621_v22 = vld [vmem:[#allocation2 + $0x11cc] ss:$16 sps:$4 sm:$0xff]  }
 0x2ba   :  { %5609 = vmatpush1.bf16.msra.mxu0 %v8499_v3  ;;  %v8568_v3 = vld [vmem:[#allocation2 + $0x12e8] ss:$16 sps:$4 sm:$0xff]  }
 0x2bb   :  { %5650 = vmatpush1.bf16.msra.mxu1 %v8502_v18  ;;  %5610 = vmatprep.subr.bf16.mxu0 %v8507_v19  ;;  %v8573_v18 = vld [vmem:[#allocation2 + $0x10cc] ss:$16 sps:$4 sm:$0xff]  }
 0x2bc   :  { %5651 = vmatprep.subr.bf16.mxu1 %v8510_v21  ;;  %v8576_v19 = vld [vmem:[#allocation2 + $0x12cc] ss:$16 sps:$4 sm:$0xff]   ;;  %v931_v21 = vrot.slane %v8877_v8, %v930_v40  ;;  %v8622_v40 = vld [vmem:[#allocation2 + $0x13c8] ss:$16 sps:$4 sm:$0xff]  }
 0x2bd   :  { %v8627_v8 = vld [vmem:[#allocation2 + $0x11ac] ss:$16 sps:$4 sm:$0xff]  }
 0x2be   :  { %5611 = vmatpush1.bf16.msra.mxu0 %v8505_v16 }
 0x2bf   :  { %5652 = vmatpush1.bf16.msra.mxu1 %v8508_v17  ;;  %5612 = vmatprep.subr.bf16.mxu0 %v8513_v28 }
 0x2c0   :  { %5653 = vmatprep.subr.bf16.mxu1 %v8516_v60  ;;  %v8571_v60 = vld [vmem:[#allocation2 + $0x10c8] ss:$16 sps:$4 sm:$0xff]  }
 0x2c2   :  { %5613 = vmatpush1.bf16.msra.mxu0 %v8511_v61  ;;  %v8574_v61 = vld [vmem:[#allocation2 + $0x12c8] ss:$16 sps:$4 sm:$0xff]  }
 0x2c3   :  { %5654 = vmatpush1.bf16.msra.mxu1 %v8514_v29  ;;  %5614 = vmatprep.subr.bf16.mxu0 %v8519_v30 }
 0x2c4   :  { %5655 = vmatprep.subr.bf16.mxu1 %v8522_v32  ;;  %v8579_v32 = vld [vmem:[#allocation2 + $0x10ac] ss:$16 sps:$4 sm:$0xff]  }
 0x2c6   :  { %5615 = vmatpush2.bf16.msra.mxu0 %v8517_v26  ;;  %v8582_v26 = vld [vmem:[#allocation2 + $0x12ac] ss:$16 sps:$4 sm:$0xff]  }
 0x2c7   :  { %5656 = vmatpush2.bf16.msra.mxu1 %v8520_v24  ;;  %5616 = vmatprep.subr.bf16.mxu0 %v8525_v25 }
 0x2c8   :  { %5657 = vmatprep.subr.bf16.mxu1 %v8528_v41 }
 0x2ca   :  { %5617 = vmatpush2.bf16.msra.mxu0 %v8523_v42  ;;  %v8577_v42 = vld [vmem:[#allocation2 + $0x10a8] ss:$16 sps:$4 sm:$0xff]  }
 0x2cb   :  { %5658 = vmatpush2.bf16.msra.mxu1 %v8526_v43  ;;  %5618 = vmatprep.subr.bf16.mxu0 %v8531_v6  ;;  %v8580_v43 = vld [vmem:[#allocation2 + $0x12a8] ss:$16 sps:$4 sm:$0xff]  }
 0x2cc   :  { %5659 = vmatprep.subr.bf16.mxu1 %v8534_v7 }
 0x2ce   :  { %5619 = vmatpush2.bf16.msra.mxu0 %v8529_v27  ;;  %v8585_v27 = vld [vmem:[#allocation2 + $0x108c] ss:$16 sps:$4 sm:$0xff]  }
 0x2cf   :  { %5660 = vmatpush2.bf16.msra.mxu1 %v8532_v44  ;;  %5620 = vmatprep.subr.bf16.mxu0 %v8537_v45  ;;  %v8588_v44 = vld [vmem:[#allocation2 + $0x128c] ss:$16 sps:$4 sm:$0xff]   ;;  %v8583_v45 = vld [vmem:[#allocation2 + $0x1088] ss:$16 sps:$4 sm:$0xff]  }
 0x2d0   :  { %5661 = vmatprep.subr.bf16.mxu1 %v8540_v46  ;;  %v8594_v46 = vld [vmem:[#allocation2 + $0x126c] ss:$16 sps:$4 sm:$0xff]  }
 0x2d2   :  { %5621 = vmatpush2.bf16.msra.mxu0 %v8535_v31  ;;  %v8589_v31 = vld [vmem:[#allocation2 + $0x1068] ss:$16 sps:$4 sm:$0xff]  }
 0x2d3   :  { %5662 = vmatpush2.bf16.msra.mxu1 %v8538_v48  ;;  %5622 = vmatprep.subr.bf16.mxu0 %v8543_v36  ;;  %v8592_v48 = vld [vmem:[#allocation2 + $0x1268] ss:$16 sps:$4 sm:$0xff]   ;;  %v8597_v36 = vld [vmem:[#allocation2 + $0x104c] ss:$16 sps:$4 sm:$0xff]  }
 0x2d4   :  { %5663 = vmatprep.subr.bf16.mxu1 %v8546_v37  ;;  %v8600_v37 = vld [vmem:[#allocation2 + $0x124c] ss:$16 sps:$4 sm:$0xff]  }
 0x2d6   :  { %5623 = vmatpush2.bf16.msra.mxu0 %v8541_v33  ;;  %v8595_v33 = vld [vmem:[#allocation2 + $0x1048] ss:$16 sps:$4 sm:$0xff]  }
 0x2d7   :  { %5664 = vmatpush2.bf16.msra.mxu1 %v8544_v49  ;;  %5624 = vmatprep.subr.bf16.mxu0 %v8549_v47  ;;  %v8598_v49 = vld [vmem:[#allocation2 + $0x1248] ss:$16 sps:$4 sm:$0xff]   ;;  %v8603_v47 = vld [vmem:[#allocation2 + $0x102c] ss:$16 sps:$4 sm:$0xff]  }
 0x2d8   :  { %5665 = vmatprep.subr.bf16.mxu1 %v8552_v51  ;;  %v8606_v51 = vld [vmem:[#allocation2 + $0x122c] ss:$16 sps:$4 sm:$0xff]  }
 0x2da   :  { %5625 = vmatpush2.bf16.msra.mxu0 %v8547_v52  ;;  %v8601_v52 = vld [vmem:[#allocation2 + $0x1028] ss:$16 sps:$4 sm:$0xff]  }
 0x2db   :  { %5666 = vmatpush2.bf16.msra.mxu1 %v8550_v38  ;;  %5626 = vmatprep.subr.bf16.mxu0 %v8555_v39  ;;  %v8604_v38 = vld [vmem:[#allocation2 + $0x1228] ss:$16 sps:$4 sm:$0xff]   ;;  %v8609_v39 = vld [vmem:[#allocation2 + $0x100c] ss:$16 sps:$4 sm:$0xff]  }
 0x2dc   :  { %5667 = vmatprep.subr.bf16.mxu1 %v8558_v53  ;;  %v8612_v53 = vld [vmem:[#allocation2 + $0x120c] ss:$16 sps:$4 sm:$0xff]  }
 0x2de   :  { %5627 = vmatpush2.bf16.msra.mxu0 %v8553_v55  ;;  %v8607_v55 = vld [vmem:[#allocation2 + $0x1008] ss:$16 sps:$4 sm:$0xff]  }
 0x2df   :  { %5668 = vmatpush2.bf16.msra.mxu1 %v8556_v56  ;;  %5628 = vmatprep.subr.bf16.mxu0 %v8561_v57  ;;  %v8610_v56 = vld [vmem:[#allocation2 + $0x1208] ss:$16 sps:$4 sm:$0xff]   ;;  %v8615_v57 = vld [vmem:[#allocation2 + $0x11ec] ss:$16 sps:$4 sm:$0xff]  }
 0x2e0   :  { %5669 = vmatprep.subr.bf16.mxu1 %v8564_v58  ;;  %v8618_v58 = vld [vmem:[#allocation2 + $0x13ec] ss:$16 sps:$4 sm:$0xff]  }
 0x2e2   :  { %5629 = vmatpush2.bf16.msra.mxu0 %v8559_v62  ;;  %v8613_v62 = vld [vmem:[#allocation2 + $0x11e8] ss:$16 sps:$4 sm:$0xff]  }
 0x2e3   :  { %5670 = vmatpush2.bf16.msra.mxu1 %v8562_v34  ;;  %5680 = vmatprep.subr.bf16.mxu0 %v8567_v23  ;;  %v8616_v34 = vld [vmem:[#allocation2 + $0x13e8] ss:$16 sps:$4 sm:$0xff]   ;;  %v8624_v23 = vld [vmem:[#allocation2 + $0x13cc] ss:$16 sps:$4 sm:$0xff]  }
 0x2e4   :  { %5721 = vmatprep.subr.bf16.mxu1 %v8570_v35  ;;  %v8619_v35 = vld [vmem:[#allocation2 + $0x11c8] ss:$16 sps:$4 sm:$0xff]  }
 0x2e5   :  { %v5386_v16 = vpop.f32.mrf.mxu0  ;;  %5631 = vmatmul.mubr.bf16.vlgmr.msra.gmra.mxu0 %v9242_v0 }
 0x2e6   :  { %v5427_v17 = vpop.f32.mrf.mxu1  ;;  %5672 = vmatmul.mubr.bf16.vlgmr.msra.gmra.mxu1 %v9246_v1  ;;  %v5387_v28 = vadd.f32 %v5386_v16, %v927_v11  ;;  %5681 = vmatpush1.bf16.msra.mxu0 %v8565_v12  ;;  %v8630_v11 = vld [vmem:[#allocation2 + $0x13ac] ss:$16 sps:$4 sm:$0xff]   ;;  %v8625_v12 = vld [vmem:[#allocation2 + $0x11a8] ss:$16 sps:$4 sm:$0xff]  }
 0x2e7   :  { %5722 = vmatpush1.bf16.msra.mxu1 %v8568_v3  ;;  %v5388_v29 = vpop.f32.mrf.mxu0  ;;  %5682 = vmatprep.subr.bf16.mxu0 %v8573_v18  ;;  %v8628_v3 = vld [vmem:[#allocation2 + $0x13a8] ss:$16 sps:$4 sm:$0xff]   ;;  %v8633_v18 = vld [vmem:[#allocation2 + $0x118c] ss:$16 sps:$4 sm:$0xff]  }
 0x2e8   :  { %v5429_v30 = vpop.f32.mrf.mxu1  ;;  %5723 = vmatprep.subr.bf16.mxu1 %v8576_v19  ;;  %v9366_v24 = vadd.f32 %v5427_v17, %v5387_v28  ;;  %v5389_v25 = vadd.f32 %v5388_v29, %v931_v21  ;;  %5712 = vmatprep.mubr.bf16.mxu0 %v9264_v9  ;;  %v8586_v9 = vld [vmem:[#allocation2 + $0x1288] ss:$16 sps:$4 sm:$0xff]   ;;  %v8636_v19 = vld [vmem:[#allocation2 + $0x138c] ss:$16 sps:$4 sm:$0xff]  }
 0x2e9   :  { %5753 = vmatprep.mubr.bf16.mxu1 %v9268_v10  ;;  %v5390_v0 = vpop.f32.mrf.mxu0  ;;  %v8591_v10 = vld [vmem:[#allocation2 + $0x106c] ss:$16 sps:$4 sm:$0xff]   ;;  %v8631_v21 = vld [vmem:[#allocation2 + $0x1188] ss:$16 sps:$4 sm:$0xff]  }
 0x2ea   :  { %v5431_v1 = vpop.f32.mrf.mxu1  ;;  %v9370_v41 = vadd.f32 %v5429_v30, %v5389_v25  ;;  %5683 = vmatpush1.bf16.msra.mxu0 %v8571_v60  ;;  %v8634_v16 = vld [vmem:[#allocation2 + $0x1388] ss:$16 sps:$4 sm:$0xff]   ;;  %v8639_v17 = vld [vmem:[#allocation2 + $0x116c] ss:$16 sps:$4 sm:$0xff]  }
 0x2eb   :  { %5724 = vmatpush1.bf16.msra.mxu1 %v8574_v61  ;;  %v5391_v6 = vpop.f32.mrf.mxu0  ;;  %5684 = vmatprep.subr.bf16.mxu0 %v8579_v32  ;;  %v8642_v28 = vld [vmem:[#allocation2 + $0x136c] ss:$16 sps:$4 sm:$0xff]   ;;  %v8637_v60 = vld [vmem:[#allocation2 + $0x1168] ss:$16 sps:$4 sm:$0xff]  }
 0x2ec   :  { %v5432_v7 = vpop.f32.mrf.mxu1  ;;  %5725 = vmatprep.subr.bf16.mxu1 %v8582_v26  ;;  %v8640_v61 = vld [vmem:[#allocation2 + $0x1368] ss:$16 sps:$4 sm:$0xff]   ;;  %v8645_v29 = vld [vmem:[#allocation2 + $0x114c] ss:$16 sps:$4 sm:$0xff]  }
 0x2ed   :  { %v8648_v30 = vld [vmem:[#allocation2 + $0x134c] ss:$16 sps:$4 sm:$0xff]   ;;  %v8643_v32 = vld [vmem:[#allocation2 + $0x1148] ss:$16 sps:$4 sm:$0xff]  }
 0x2ee   :  { %5685 = vmatpush1.bf16.msra.mxu0 %v8577_v42  ;;  %v8646_v26 = vld [vmem:[#allocation2 + $0x1348] ss:$16 sps:$4 sm:$0xff]   ;;  %v8651_v25 = vld [vmem:[#allocation2 + $0x112c] ss:$16 sps:$4 sm:$0xff]  }
 0x2ef   :  { %5726 = vmatpush1.bf16.msra.mxu1 %v8580_v43  ;;  %5686 = vmatprep.subr.bf16.mxu0 %v8585_v27  ;;  %v8654_v0 = vld [vmem:[#allocation2 + $0x132c] ss:$16 sps:$4 sm:$0xff]   ;;  %v8649_v1 = vld [vmem:[#allocation2 + $0x1128] ss:$16 sps:$4 sm:$0xff]  }
 0x2f0   :  { %5727 = vmatprep.subr.bf16.mxu1 %v8588_v44  ;;  %v8652_v42 = vld [vmem:[#allocation2 + $0x1328] ss:$16 sps:$4 sm:$0xff]   ;;  %v8657_v43 = vld [vmem:[#allocation2 + $0x110c] ss:$16 sps:$4 sm:$0xff]  }
 0x2f1   :  { %v8660_v6 = vld [vmem:[#allocation2 + $0x130c] ss:$16 sps:$4 sm:$0xff]   ;;  %v8655_v7 = vld [vmem:[#allocation2 + $0x1108] ss:$16 sps:$4 sm:$0xff]  }
 0x2f2   :  { %5687 = vmatpush1.bf16.msra.mxu0 %v8583_v45  ;;  %v8658_v27 = vld [vmem:[#allocation2 + $0x1308] ss:$16 sps:$4 sm:$0xff]   ;;  %v8663_v44 = vld [vmem:[#allocation2 + $0x14ec] ss:$16 sps:$4 sm:$0xff]  }
 0x2f3   :  { %5728 = vmatpush1.bf16.msra.mxu1 %v8586_v9  ;;  %5688 = vmatprep.subr.bf16.mxu0 %v8591_v10  ;;  %v8666_v45 = vld [vmem:[#allocation2 + $0x16ec] ss:$16 sps:$4 sm:$0xff]   ;;  %v8661_v9 = vld [vmem:[#allocation2 + $0x14e8] ss:$16 sps:$4 sm:$0xff]  }
 0x2f4   :  { %5729 = vmatprep.subr.bf16.mxu1 %v8594_v46  ;;  %v8664_v10 = vld [vmem:[#allocation2 + $0x16e8] ss:$16 sps:$4 sm:$0xff]   ;;  %v8669_v46 = vld [vmem:[#allocation2 + $0x14cc] ss:$16 sps:$4 sm:$0xff]  }
 0x2f6   :  { %5689 = vmatpush1.bf16.msra.mxu0 %v8589_v31  ;;  %v8672_v31 = vld [vmem:[#allocation2 + $0x16cc] ss:$16 sps:$4 sm:$0xff]  }
 0x2f7   :  { %5730 = vmatpush1.bf16.msra.mxu1 %v8592_v48  ;;  %5690 = vmatprep.subr.bf16.mxu0 %v8597_v36 }
 0x2f8   :  { %5731 = vmatprep.subr.bf16.mxu1 %v8600_v37 }
 0x2fa   :  { %5691 = vmatpush1.bf16.msra.mxu0 %v8595_v33  ;;  %v8667_v33 = vld [vmem:[#allocation2 + $0x14c8] ss:$16 sps:$4 sm:$0xff]  }
 0x2fb   :  { %5732 = vmatpush1.bf16.msra.mxu1 %v8598_v49  ;;  %5692 = vmatprep.subr.bf16.mxu0 %v8603_v47  ;;  %v8670_v49 = vld [vmem:[#allocation2 + $0x16c8] ss:$16 sps:$4 sm:$0xff]  }
 0x2fc   :  { %5733 = vmatprep.subr.bf16.mxu1 %v8606_v51 }
 0x2fe   :  { %5693 = vmatpush1.bf16.msra.mxu0 %v8601_v52  ;;  %v8675_v52 = vld [vmem:[#allocation2 + $0x14ac] ss:$16 sps:$4 sm:$0xff]  }
 0x2ff   :  { %5734 = vmatpush1.bf16.msra.mxu1 %v8604_v38  ;;  %5694 = vmatprep.subr.bf16.mxu0 %v8609_v39  ;;  %v8678_v38 = vld [vmem:[#allocation2 + $0x16ac] ss:$16 sps:$4 sm:$0xff]  }
 0x300   :  { %5735 = vmatprep.subr.bf16.mxu1 %v8612_v53 }
 0x302   :  { %5695 = vmatpush1.bf16.msra.mxu0 %v8607_v55  ;;  %v8673_v55 = vld [vmem:[#allocation2 + $0x14a8] ss:$16 sps:$4 sm:$0xff]  }
 0x303   :  { %5736 = vmatpush1.bf16.msra.mxu1 %v8610_v56  ;;  %5696 = vmatprep.subr.bf16.mxu0 %v8615_v57  ;;  %v8676_v56 = vld [vmem:[#allocation2 + $0x16a8] ss:$16 sps:$4 sm:$0xff]  }
 0x304   :  { %5737 = vmatprep.subr.bf16.mxu1 %v8618_v58 }
 0x306   :  { %5697 = vmatpush2.bf16.msra.mxu0 %v8613_v62  ;;  %v8681_v62 = vld [vmem:[#allocation2 + $0x148c] ss:$16 sps:$4 sm:$0xff]  }
 0x307   :  { %5738 = vmatpush2.bf16.msra.mxu1 %v8616_v34  ;;  %5698 = vmatprep.subr.bf16.mxu0 %v8621_v22  ;;  %v8684_v34 = vld [vmem:[#allocation2 + $0x168c] ss:$16 sps:$4 sm:$0xff]  }
 0x308   :  { %5739 = vmatprep.subr.bf16.mxu1 %v8624_v23  ;;  %v8690_v22 = vld [vmem:[#allocation2 + $0x166c] ss:$16 sps:$4 sm:$0xff]   ;;  %v8685_v23 = vld [vmem:[#allocation2 + $0x1468] ss:$16 sps:$4 sm:$0xff]  }
 0x30a   :  { %5699 = vmatpush2.bf16.msra.mxu0 %v8619_v35  ;;  %v8688_v35 = vld [vmem:[#allocation2 + $0x1668] ss:$16 sps:$4 sm:$0xff]  }
 0x30b   :  { %5740 = vmatpush2.bf16.msra.mxu1 %v8622_v40  ;;  %5700 = vmatprep.subr.bf16.mxu0 %v8627_v8  ;;  %v8693_v40 = vld [vmem:[#allocation2 + $0x144c] ss:$16 sps:$4 sm:$0xff]  }
 0x30c   :  { %5741 = vmatprep.subr.bf16.mxu1 %v8630_v11  ;;  %v8696_v8 = vld [vmem:[#allocation2 + $0x164c] ss:$16 sps:$4 sm:$0xff]   ;;  %v8691_v11 = vld [vmem:[#allocation2 + $0x1448] ss:$16 sps:$4 sm:$0xff]  }
 0x30e   :  { %5701 = vmatpush2.bf16.msra.mxu0 %v8625_v12  ;;  %v8694_v12 = vld [vmem:[#allocation2 + $0x1648] ss:$16 sps:$4 sm:$0xff]  }
 0x30f   :  { %5742 = vmatpush2.bf16.msra.mxu1 %v8628_v3  ;;  %5702 = vmatprep.subr.bf16.mxu0 %v8633_v18  ;;  %v8699_v3 = vld [vmem:[#allocation2 + $0x142c] ss:$16 sps:$4 sm:$0xff]  }
 0x310   :  { %5743 = vmatprep.subr.bf16.mxu1 %v8636_v19  ;;  %v8702_v18 = vld [vmem:[#allocation2 + $0x162c] ss:$16 sps:$4 sm:$0xff]   ;;  %v8697_v19 = vld [vmem:[#allocation2 + $0x1428] ss:$16 sps:$4 sm:$0xff]  }
 0x312   :  { %5703 = vmatpush2.bf16.msra.mxu0 %v8631_v21  ;;  %v8700_v21 = vld [vmem:[#allocation2 + $0x1628] ss:$16 sps:$4 sm:$0xff]  }
 0x313   :  { %5744 = vmatpush2.bf16.msra.mxu1 %v8634_v16  ;;  %5704 = vmatprep.subr.bf16.mxu0 %v8639_v17  ;;  %v8705_v16 = vld [vmem:[#allocation2 + $0x140c] ss:$16 sps:$4 sm:$0xff]  }
 0x314   :  { %5745 = vmatprep.subr.bf16.mxu1 %v8642_v28  ;;  %v8708_v17 = vld [vmem:[#allocation2 + $0x160c] ss:$16 sps:$4 sm:$0xff]   ;;  %v8703_v28 = vld [vmem:[#allocation2 + $0x1408] ss:$16 sps:$4 sm:$0xff]  }
 0x316   :  { %5705 = vmatpush2.bf16.msra.mxu0 %v8637_v60  ;;  %v8706_v60 = vld [vmem:[#allocation2 + $0x1608] ss:$16 sps:$4 sm:$0xff]  }
 0x317   :  { %5746 = vmatpush2.bf16.msra.mxu1 %v8640_v61  ;;  %5706 = vmatprep.subr.bf16.mxu0 %v8645_v29  ;;  %v8711_v61 = vld [vmem:[#allocation2 + $0x15ec] ss:$16 sps:$4 sm:$0xff]  }
 0x318   :  { %5747 = vmatprep.subr.bf16.mxu1 %v8648_v30  ;;  %v8714_v29 = vld [vmem:[#allocation2 + $0x17ec] ss:$16 sps:$4 sm:$0xff]   ;;  %v8709_v30 = vld [vmem:[#allocation2 + $0x15e8] ss:$16 sps:$4 sm:$0xff]  }
 0x31a   :  { %5707 = vmatpush2.bf16.msra.mxu0 %v8643_v32  ;;  %v8712_v32 = vld [vmem:[#allocation2 + $0x17e8] ss:$16 sps:$4 sm:$0xff]  }
 0x31b   :  { %5748 = vmatpush2.bf16.msra.mxu1 %v8646_v26  ;;  %5708 = vmatprep.subr.bf16.mxu0 %v8651_v25  ;;  %v8717_v26 = vld [vmem:[#allocation2 + $0x15cc] ss:$16 sps:$4 sm:$0xff]  }
 0x31c   :  { %5749 = vmatprep.subr.bf16.mxu1 %v8654_v0  ;;  %v8720_v25 = vld [vmem:[#allocation2 + $0x17cc] ss:$16 sps:$4 sm:$0xff]   ;;  %v8715_v0 = vld [vmem:[#allocation2 + $0x15c8] ss:$16 sps:$4 sm:$0xff]  }
 0x31e   :  { %5709 = vmatpush2.bf16.msra.mxu0 %v8649_v1  ;;  %v8718_v1 = vld [vmem:[#allocation2 + $0x17c8] ss:$16 sps:$4 sm:$0xff]  }
 0x31f   :  { %5750 = vmatpush2.bf16.msra.mxu1 %v8652_v42  ;;  %5710 = vmatprep.subr.bf16.mxu0 %v8657_v43  ;;  %v8723_v42 = vld [vmem:[#allocation2 + $0x15ac] ss:$16 sps:$4 sm:$0xff]  }
 0x320   :  { %5751 = vmatprep.subr.bf16.mxu1 %v8660_v6  ;;  %v8726_v43 = vld [vmem:[#allocation2 + $0x17ac] ss:$16 sps:$4 sm:$0xff]   ;;  %v8721_v6 = vld [vmem:[#allocation2 + $0x15a8] ss:$16 sps:$4 sm:$0xff]  }
 0x322   :  { %5711 = vmatpush2.bf16.msra.mxu0 %v8655_v7  ;;  %v8724_v7 = vld [vmem:[#allocation2 + $0x17a8] ss:$16 sps:$4 sm:$0xff]  }
 0x323   :  { %5752 = vmatpush2.bf16.msra.mxu1 %v8658_v27  ;;  %5762 = vmatprep.subr.bf16.mxu0 %v8663_v44  ;;  %v8729_v27 = vld [vmem:[#allocation2 + $0x158c] ss:$16 sps:$4 sm:$0xff]  }
 0x324   :  { %5803 = vmatprep.subr.bf16.mxu1 %v8666_v45  ;;  %v8732_v44 = vld [vmem:[#allocation2 + $0x178c] ss:$16 sps:$4 sm:$0xff]   ;;  %v8727_v45 = vld [vmem:[#allocation2 + $0x1588] ss:$16 sps:$4 sm:$0xff]  }
 0x325   :  { %v5468_v48 = vpop.f32.mrf.mxu0  ;;  %5713 = vmatmul.mubr.bf16.vlgmr.msra.gmra.mxu0 %v9290_v4 }
 0x326   :  { %v5509_v36 = vpop.f32.mrf.mxu1  ;;  %5754 = vmatmul.mubr.bf16.vlgmr.msra.gmra.mxu1 %v9294_v5  ;;  %v5469_v37 = vadd.f32 %v5468_v48, %v9366_v24  ;;  %5763 = vmatpush1.bf16.msra.mxu0 %v8661_v9  ;;  %v8730_v9 = vld [vmem:[#allocation2 + $0x1788] ss:$16 sps:$4 sm:$0xff]  }
 0x327   :  { %5804 = vmatpush1.bf16.msra.mxu1 %v8664_v10  ;;  %v5470_v47 = vpop.f32.mrf.mxu0  ;;  %5764 = vmatprep.subr.bf16.mxu0 %v8669_v46  ;;  %v8735_v10 = vld [vmem:[#allocation2 + $0x156c] ss:$16 sps:$4 sm:$0xff]   ;;  %v8736_v48 = vld [vmem:[#allocation2 + $0x1768] ss:$16 sps:$4 sm:$0xff]  }
 0x328   :  { %v5511_v51 = vpop.f32.mrf.mxu1  ;;  %5805 = vmatprep.subr.bf16.mxu1 %v8672_v31  ;;  %v9375_v39 = vadd.f32 %v5509_v36, %v5469_v37  ;;  %v5471_v53 = vadd.f32 %v5470_v47, %v9370_v41  ;;  %5794 = vmatprep.mubr.bf16.mxu0 %v9298_v13  ;;  %v8679_v41 = vld [vmem:[#allocation2 + $0x1488] ss:$16 sps:$4 sm:$0xff]   ;;  %v8738_v46 = vld [vmem:[#allocation2 + $0x176c] ss:$16 sps:$4 sm:$0xff]  }
 0x329   :  { %5835 = vmatprep.mubr.bf16.mxu1 %v9302_v2  ;;  %v5472_v4 = vpop.f32.mrf.mxu0  ;;  %v8682_v13 = vld [vmem:[#allocation2 + $0x1688] ss:$16 sps:$4 sm:$0xff]   ;;  %v8687_v2 = vld [vmem:[#allocation2 + $0x146c] ss:$16 sps:$4 sm:$0xff]  }
 0x32a   :  { %v5513_v5 = vpop.f32.mrf.mxu1  ;;  %v9380_v24 = vadd.f32 %v5511_v51, %v5471_v53  ;;  %5765 = vmatpush1.bf16.msra.mxu0 %v8667_v33  ;;  %v8733_v31 = vld [vmem:[#allocation2 + $0x1568] ss:$16 sps:$4 sm:$0xff]   ;;  %v8741_v36 = vld [vmem:[#allocation2 + $0x154c] ss:$16 sps:$4 sm:$0xff]  }
 0x32b   :  { %5806 = vmatpush1.bf16.msra.mxu1 %v8670_v49  ;;  %v5473_v57 = vpop.f32.mrf.mxu0  ;;  %5766 = vmatprep.subr.bf16.mxu0 %v8675_v52  ;;  %v8744_v37 = vld [vmem:[#allocation2 + $0x174c] ss:$16 sps:$4 sm:$0xff]   ;;  %v8739_v33 = vld [vmem:[#allocation2 + $0x1548] ss:$16 sps:$4 sm:$0xff]  }
 0x32c   :  { %v5514_v58 = vpop.f32.mrf.mxu1  ;;  %5807 = vmatprep.subr.bf16.mxu1 %v8678_v38  ;;  %v8742_v49 = vld [vmem:[#allocation2 + $0x1748] ss:$16 sps:$4 sm:$0xff]   ;;  %v8747_v47 = vld [vmem:[#allocation2 + $0x152c] ss:$16 sps:$4 sm:$0xff]   ;;  %v5845_v57 = vmax.f32 %v9360_v20, 0.0 }
 0x32d   :  { %v8750_v51 = vld [vmem:[#allocation2 + $0x172c] ss:$16 sps:$4 sm:$0xff]   ;;  %v8745_v52 = vld [vmem:[#allocation2 + $0x1528] ss:$16 sps:$4 sm:$0xff]  }
 0x32e   :  { %5767 = vmatpush1.bf16.msra.mxu0 %v8673_v55  ;;  %v8748_v38 = vld [vmem:[#allocation2 + $0x1728] ss:$16 sps:$4 sm:$0xff]   ;;  %v8753_v53 = vld [vmem:[#allocation2 + $0x150c] ss:$16 sps:$4 sm:$0xff]  }
 0x32f   :  { %5808 = vmatpush1.bf16.msra.mxu1 %v8676_v56  ;;  %5768 = vmatprep.subr.bf16.mxu0 %v8681_v62  ;;  %v8756_v4 = vld [vmem:[#allocation2 + $0x170c] ss:$16 sps:$4 sm:$0xff]   ;;  %v8751_v5 = vld [vmem:[#allocation2 + $0x1508] ss:$16 sps:$4 sm:$0xff]  }
 0x330   :  { %5809 = vmatprep.subr.bf16.mxu1 %v8684_v34  ;;  %v8754_v55 = vld [vmem:[#allocation2 + $0x1708] ss:$16 sps:$4 sm:$0xff]   ;;  %v8757_v58 = vld [vmem:[#allocation6 + $0x70] ss:$8 sps:$4 sm:$0xff]   ;;  %v5849_v34 = vpack.c.bf16 %v5845_v57, %v5845_v57 }
 0x331   :  { %v8759_v56 = vld [vmem:[#allocation6 + $0x74] ss:$8 sps:$4 sm:$0xff]   ;;  %v8762_v62 = vld [vmem:[#allocation6 + $0x64] ss:$8 sps:$4 sm:$0xff]   ;;  %v8835_v57 = vld [vmem:[#allocation6 + $0x1d0] ss:$8 sps:$4 sm:$0xff]  }
 0x332   :  { %5769 = vmatpush1.bf16.msra.mxu0 %v8679_v41  ;;  %v8765_v20 = vld [vmem:[#allocation6 + $0x54] ss:$8 sps:$4 sm:$0xff]  }
 0x333   :  { %5810 = vmatpush1.bf16.msra.mxu1 %v8682_v13  ;;  %5770 = vmatprep.subr.bf16.mxu0 %v8687_v2 }
 0x334   :  { %5811 = vmatprep.subr.bf16.mxu1 %v8690_v22  ;;  %v8760_v22 = vld [vmem:[#allocation6 + $0x60] ss:$8 sps:$4 sm:$0xff]  }
 0x336   :  { %5771 = vmatpush1.bf16.msra.mxu0 %v8685_v23 }
 0x337   :  { %5812 = vmatpush1.bf16.msra.mxu1 %v8688_v35  ;;  %5772 = vmatprep.subr.bf16.mxu0 %v8693_v40 }
 0x338   :  { %5813 = vmatprep.subr.bf16.mxu1 %v8696_v8 }
 0x33a   :  { %5773 = vmatpush1.bf16.msra.mxu0 %v8691_v11 }
 0x33b   :  { %5814 = vmatpush1.bf16.msra.mxu1 %v8694_v12  ;;  %5774 = vmatprep.subr.bf16.mxu0 %v8699_v3 }
 0x33c   :  { %5815 = vmatprep.subr.bf16.mxu1 %v8702_v18 }
 0x33e   :  { %5775 = vmatpush1.bf16.msra.mxu0 %v8697_v19  ;;  %v8805_v19 = vld [vmem:[#allocation6 + $0x170] ss:$8 sps:$4 sm:$0xff]  }
 0x33f   :  { %5816 = vmatpush1.bf16.msra.mxu1 %v8700_v21  ;;  %5776 = vmatprep.subr.bf16.mxu0 %v8705_v16  ;;  %v8807_v21 = vld [vmem:[#allocation6 + $0x174] ss:$8 sps:$4 sm:$0xff]   ;;  %v8810_v16 = vld [vmem:[#allocation6 + $0x164] ss:$8 sps:$4 sm:$0xff]  }
 0x340   :  { %5817 = vmatprep.subr.bf16.mxu1 %v8708_v17  ;;  %v8766_v17 = vld [vmem:[#allocation6 + $0x40] ss:$8 sps:$4 sm:$0xff]  }
 0x342   :  { %5777 = vmatpush1.bf16.msra.mxu0 %v8703_v28  ;;  %v8808_v28 = vld [vmem:[#allocation6 + $0x160] ss:$8 sps:$4 sm:$0xff]  }
 0x343   :  { %5818 = vmatpush1.bf16.msra.mxu1 %v8706_v60  ;;  %5778 = vmatprep.subr.bf16.mxu0 %v8711_v61  ;;  %v8813_v60 = vld [vmem:[#allocation6 + $0x154] ss:$8 sps:$4 sm:$0xff]   ;;  %v8769_v61 = vld [vmem:[#allocation6 + $0x30] ss:$8 sps:$4 sm:$0xff]  }
 0x344   :  { %5819 = vmatprep.subr.bf16.mxu1 %v8714_v29  ;;  %v8811_v29 = vld [vmem:[#allocation6 + $0x150] ss:$8 sps:$4 sm:$0xff]  }
 0x346   :  { %5779 = vmatpush2.bf16.msra.mxu0 %v8709_v30  ;;  %v8774_v30 = vld [vmem:[#allocation6 + $0x24] ss:$8 sps:$4 sm:$0xff]  }
 0x347   :  { %5820 = vmatpush2.bf16.msra.mxu1 %v8712_v32  ;;  %5780 = vmatprep.subr.bf16.mxu0 %v8717_v26  ;;  %v8816_v32 = vld [vmem:[#allocation6 + $0x144] ss:$8 sps:$4 sm:$0xff]   ;;  %v8772_v26 = vld [vmem:[#allocation6 + $0x20] ss:$8 sps:$4 sm:$0xff]  }
 0x348   :  { %5821 = vmatprep.subr.bf16.mxu1 %v8720_v25  ;;  %v8814_v25 = vld [vmem:[#allocation6 + $0x140] ss:$8 sps:$4 sm:$0xff]  }
 0x34a   :  { %5781 = vmatpush2.bf16.msra.mxu0 %v8715_v0  ;;  %v8777_v0 = vld [vmem:[#allocation6 + $0x14] ss:$8 sps:$4 sm:$0xff]  }
 0x34b   :  { %5822 = vmatpush2.bf16.msra.mxu1 %v8718_v1  ;;  %5782 = vmatprep.subr.bf16.mxu0 %v8723_v42  ;;  %v8819_v1 = vld [vmem:[#allocation6 + $0x134] ss:$8 sps:$4 sm:$0xff]   ;;  %v8775_v42 = vld [vmem:[#allocation6 + $0x10] ss:$8 sps:$4 sm:$0xff]  }
 0x34c   :  { %5823 = vmatprep.subr.bf16.mxu1 %v8726_v43  ;;  %v8817_v43 = vld [vmem:[#allocation6 + $0x130] ss:$8 sps:$4 sm:$0xff]  }
 0x34e   :  { %5783 = vmatpush2.bf16.msra.mxu0 %v8721_v6  ;;  %v8780_v6 = vld [vmem:[#allocation6 + $0x4] ss:$8 sps:$4 sm:$0xff]  }
 0x34f   :  { %5824 = vmatpush2.bf16.msra.mxu1 %v8724_v7  ;;  %5784 = vmatprep.subr.bf16.mxu0 %v8729_v27  ;;  %v8822_v7 = vld [vmem:[#allocation6 + $0x124] ss:$8 sps:$4 sm:$0xff]   ;;  %v8778_v27 = vld [vmem:[#allocation6] ss:$8 sps:$4 sm:$0xff]  }
 0x350   :  { %5825 = vmatprep.subr.bf16.mxu1 %v8732_v44  ;;  %v8820_v44 = vld [vmem:[#allocation6 + $0x120] ss:$8 sps:$4 sm:$0xff]  }
 0x352   :  { %5785 = vmatpush2.bf16.msra.mxu0 %v8727_v45  ;;  %v8783_v45 = vld [vmem:[#allocation6 + $0xf4] ss:$8 sps:$4 sm:$0xff]  }
 0x353   :  { %5826 = vmatpush2.bf16.msra.mxu1 %v8730_v9  ;;  %5786 = vmatprep.subr.bf16.mxu0 %v8735_v10  ;;  %v8825_v9 = vld [vmem:[#allocation6 + $0x114] ss:$8 sps:$4 sm:$0xff]   ;;  %v8781_v10 = vld [vmem:[#allocation6 + $0xf0] ss:$8 sps:$4 sm:$0xff]  }
 0x354   :  { %5827 = vmatprep.subr.bf16.mxu1 %v8738_v46  ;;  %v8823_v46 = vld [vmem:[#allocation6 + $0x110] ss:$8 sps:$4 sm:$0xff]  }
 0x356   :  { %5787 = vmatpush2.bf16.msra.mxu0 %v8733_v31  ;;  %v8786_v31 = vld [vmem:[#allocation6 + $0xe4] ss:$8 sps:$4 sm:$0xff]  }
 0x357   :  { %5828 = vmatpush2.bf16.msra.mxu1 %v8736_v48  ;;  %5788 = vmatprep.subr.bf16.mxu0 %v8741_v36  ;;  %v8828_v48 = vld [vmem:[#allocation6 + $0x104] ss:$8 sps:$4 sm:$0xff]   ;;  %v8784_v36 = vld [vmem:[#allocation6 + $0xe0] ss:$8 sps:$4 sm:$0xff]  }
 0x358   :  { %5829 = vmatprep.subr.bf16.mxu1 %v8744_v37  ;;  %v8826_v37 = vld [vmem:[#allocation6 + $0x100] ss:$8 sps:$4 sm:$0xff]  }
 0x35a   :  { %5789 = vmatpush2.bf16.msra.mxu0 %v8739_v33  ;;  %v8789_v33 = vld [vmem:[#allocation6 + $0xd4] ss:$8 sps:$4 sm:$0xff]  }
 0x35b   :  { %5830 = vmatpush2.bf16.msra.mxu1 %v8742_v49  ;;  %5790 = vmatprep.subr.bf16.mxu0 %v8747_v47  ;;  %v8831_v49 = vld [vmem:[#allocation6 + $0x1f4] ss:$8 sps:$4 sm:$0xff]   ;;  %v8787_v47 = vld [vmem:[#allocation6 + $0xd0] ss:$8 sps:$4 sm:$0xff]  }
 0x35c   :  { %5831 = vmatprep.subr.bf16.mxu1 %v8750_v51  ;;  %v8829_v51 = vld [vmem:[#allocation6 + $0x1f0] ss:$8 sps:$4 sm:$0xff]  }
 0x35e   :  { %5791 = vmatpush2.bf16.msra.mxu0 %v8745_v52  ;;  %v8792_v52 = vld [vmem:[#allocation6 + $0xc4] ss:$8 sps:$4 sm:$0xff]  }
 0x35f   :  { %5832 = vmatpush2.bf16.msra.mxu1 %v8748_v38  ;;  %5792 = vmatprep.subr.bf16.mxu0 %v8753_v53  ;;  %v8834_v38 = vld [vmem:[#allocation6 + $0x1e4] ss:$8 sps:$4 sm:$0xff]   ;;  %v8790_v53 = vld [vmem:[#allocation6 + $0xc0] ss:$8 sps:$4 sm:$0xff]  }
 0x360   :  { %5833 = vmatprep.subr.bf16.mxu1 %v8756_v4  ;;  %v8832_v4 = vld [vmem:[#allocation6 + $0x1e0] ss:$8 sps:$4 sm:$0xff]  }
 0x362   :  { %5793 = vmatpush2.bf16.msra.mxu0 %v8751_v5  ;;  %v8795_v5 = vld [vmem:[#allocation6 + $0xb4] ss:$8 sps:$4 sm:$0xff]  }
 0x363   :  { %5834 = vmatpush2.bf16.msra.mxu1 %v8754_v55  ;;  %6248 = vmatprep.subr.bf16.mxu0 %v8759_v56  ;;  %v8837_v55 = vld [vmem:[#allocation6 + $0x1d4] ss:$8 sps:$4 sm:$0xff]   ;;  %v8793_v56 = vld [vmem:[#allocation6 + $0xb0] ss:$8 sps:$4 sm:$0xff]  }
 0x364   :  { %6289 = vmatprep.subr.bf16.mxu1 %v8807_v21 }
 0x365   :  { %v5550_v41 = vpop.f32.mrf.mxu0  ;;  %5795 = vmatmul.mubr.bf16.vlgmr.msra.gmra.mxu0 %v9316_v14  ;;  %v8763_v14 = vld [vmem:[#allocation6 + $0x50] ss:$8 sps:$4 sm:$0xff]  }
 0x366   :  { %v5591_v13 = vpop.f32.mrf.mxu1  ;;  %5836 = vmatmul.mubr.bf16.vlgmr.msra.gmra.mxu1 %v9320_v15  ;;  %v5551_v2 = vadd.f32 %v5550_v41, %v9375_v39  ;;  %6249 = vmatpush1.bf16.msra.mxu0 %v8757_v58  ;;  %v8768_v39 = vld [vmem:[#allocation6 + $0x44] ss:$8 sps:$4 sm:$0xff]   ;;  %v8838_v41 = vld [vmem:[#allocation6 + $0x1c0] ss:$8 sps:$4 sm:$0xff]  }
 0x367   :  { %6280 = vmatprep.mubr.bf16.mxu0 %v5849_v34  ;;  %v5552_v23 = vpop.f32.mrf.mxu0  ;;  %6250 = vmatprep.subr.bf16.mxu0 %v8762_v62  ;;  %v8798_v58 = vld [vmem:[#allocation6 + $0xa4] ss:$8 sps:$4 sm:$0xff]   ;;  %v8796_v34 = vld [vmem:[#allocation6 + $0xa0] ss:$8 sps:$4 sm:$0xff]  }
 0x368   :  { %v5593_v35 = vpop.f32.mrf.mxu1  ;;  %v9386_v40 = vadd.f32 %v5591_v13, %v5551_v2  ;;  %v5553_v8 = vadd.f32 %v5552_v23, %v9380_v24  ;;  %6290 = vmatpush1.bf16.msra.mxu1 %v8805_v19  ;;  %v8771_v24 = vld [vmem:[#allocation6 + $0x34] ss:$8 sps:$4 sm:$0xff]   ;;  %v8840_v62 = vld [vmem:[#allocation6 + $0x1c4] ss:$8 sps:$4 sm:$0xff]   ;;  %v8841_v23 = vld [vmem:[#allocation6 + $0x1b0] ss:$8 sps:$4 sm:$0xff]  }
 0x369   :  { %v5554_v11 = vpop.f32.mrf.mxu0  ;;  %6291 = vmatprep.subr.bf16.mxu1 %v8810_v16  ;;  %v8801_v13 = vld [vmem:[#allocation6 + $0x94] ss:$8 sps:$4 sm:$0xff]  }
 0x36a   :  { %v5595_v12 = vpop.f32.mrf.mxu1  ;;  %v9389_v3 = vadd.f32 %v5593_v35, %v5553_v8  ;;  %6251 = vmatpush1.bf16.msra.mxu0 %v8760_v22  ;;  %v8843_v2 = vld [vmem:[#allocation6 + $0x1b4] ss:$8 sps:$4 sm:$0xff]   ;;  %v8799_v22 = vld [vmem:[#allocation6 + $0x90] ss:$8 sps:$4 sm:$0xff]   ;;  %v8804_v35 = vld [vmem:[#allocation6 + $0x84] ss:$8 sps:$4 sm:$0xff]  }
 0x36b   :  { %v5555_v15 = vpop.f32.mrf.mxu0  ;;  %6252 = vmatprep.subr.bf16.mxu0 %v8765_v20  ;;  %v8802_v20 = vld [vmem:[#allocation6 + $0x80] ss:$8 sps:$4 sm:$0xff]   ;;  %v5844_v8 = vmax.f32 %v9355_v50, 0.0  ;;  %v8846_v12 = vld [vmem:[#allocation6 + $0x1a4] ss:$8 sps:$4 sm:$0xff]  }
 0x36c   :  { %v5596_v18 = vpop.f32.mrf.mxu1  ;;  %6292 = vmatpush1.bf16.msra.mxu1 %v8808_v28  ;;  %v8849_v16 = vld [vmem:[#allocation6 + $0x194] ss:$8 sps:$4 sm:$0xff]  }
 0x36d   :  { %6293 = vmatprep.subr.bf16.mxu1 %v8813_v60  ;;  %v5848_v11 = vpack.c.bf16 %v5844_v8, %v5844_v8 }
 0x36e   :  { %6253 = vmatpush1.bf16.msra.mxu0 %v8763_v14  ;;  %v8844_v14 = vld [vmem:[#allocation6 + $0x1a0] ss:$8 sps:$4 sm:$0xff]  }
 0x36f   :  { %6254 = vmatprep.subr.bf16.mxu0 %v8768_v39 }
 0x370   :  { %6294 = vmatpush1.bf16.msra.mxu1 %v8811_v29 }
 0x371   :  { %6295 = vmatprep.subr.bf16.mxu1 %v8816_v32  ;;  %v8852_v32 = vld [vmem:[#allocation6 + $0x184] ss:$8 sps:$4 sm:$0xff]  }
 0x372   :  { %6255 = vmatpush1.bf16.msra.mxu0 %v8766_v17 }
 0x373   :  { %6256 = vmatprep.subr.bf16.mxu0 %v8771_v24  ;;  %v8847_v24 = vld [vmem:[#allocation6 + $0x190] ss:$8 sps:$4 sm:$0xff]  }
 0x374   :  { %6296 = vmatpush1.bf16.msra.mxu1 %v8814_v25 }
 0x375   :  { %6297 = vmatprep.subr.bf16.mxu1 %v8819_v1 }
 0x376   :  { %6257 = vmatpush1.bf16.msra.mxu0 %v8769_v61 }
 0x377   :  { %6258 = vmatprep.subr.bf16.mxu0 %v8774_v30 }
 0x378   :  { %6298 = vmatpush1.bf16.msra.mxu1 %v8817_v43 }
 0x379   :  { %6299 = vmatprep.subr.bf16.mxu1 %v8822_v7 }
 0x37a   :  { %6259 = vmatpush1.bf16.msra.mxu0 %v8772_v26  ;;  %v8850_v26 = vld [vmem:[#allocation6 + $0x180] ss:$8 sps:$4 sm:$0xff]  }
 0x37b   :  { %6260 = vmatprep.subr.bf16.mxu0 %v8777_v0 }
 0x37c   :  { %6300 = vmatpush1.bf16.msra.mxu1 %v8820_v44  ;;  %v8853_v44 = vld [vmem:[#allocation9 + $0x78] sm:$0xff]  }
 0x37d   :  { %6301 = vmatprep.subr.bf16.mxu1 %v8825_v9  ;;  %v8855_v9 = vld [vmem:[#allocation9 + $0x70] sm:$0xff]  }
 0x37e   :  { %6261 = vmatpush1.bf16.msra.mxu0 %v8775_v42 }
 0x37f   :  { %6262 = vmatprep.subr.bf16.mxu0 %v8780_v6 }
 0x380   :  { %6302 = vmatpush1.bf16.msra.mxu1 %v8823_v46  ;;  %v8857_v46 = vld [vmem:[#allocation9 + $0x68] sm:$0xff]  }
 0x381   :  { %6303 = vmatprep.subr.bf16.mxu1 %v8828_v48  ;;  %v8859_v48 = vld [vmem:[#allocation9 + $0x60] sm:$0xff]  }
 0x382   :  { %6263 = vmatpush1.bf16.msra.mxu0 %v8778_v27 }
 0x383   :  { %6264 = vmatprep.subr.bf16.mxu0 %v8783_v45  ;;  %v8854_v45 = vld [vmem:[#allocation9 + $0x38] sm:$0xff]  }
 0x384   :  { %6304 = vmatpush1.bf16.msra.mxu1 %v8826_v37  ;;  %v8861_v37 = vld [vmem:[#allocation9 + $0x58] sm:$0xff]  }
 0x385   :  { %6305 = vmatprep.subr.bf16.mxu1 %v8831_v49  ;;  %v8863_v49 = vld [vmem:[#allocation9 + $0x50] sm:$0xff]  }
 0x386   :  { %6265 = vmatpush2.bf16.msra.mxu0 %v8781_v10  ;;  %v8856_v10 = vld [vmem:[#allocation9 + $0x30] sm:$0xff]  }
 0x387   :  { %6266 = vmatprep.subr.bf16.mxu0 %v8786_v31  ;;  %v8858_v31 = vld [vmem:[#allocation9 + $0x28] sm:$0xff]  }
 0x388   :  { %6306 = vmatpush2.bf16.msra.mxu1 %v8829_v51 }
 0x389   :  { %6307 = vmatprep.subr.bf16.mxu1 %v8834_v38 }
 0x38a   :  { %6267 = vmatpush2.bf16.msra.mxu0 %v8784_v36  ;;  %v8860_v36 = vld [vmem:[#allocation9 + $0x20] sm:$0xff]  }
 0x38b   :  { %6268 = vmatprep.subr.bf16.mxu0 %v8789_v33  ;;  %v8862_v33 = vld [vmem:[#allocation9 + $0x18] sm:$0xff]  }
 0x38c   :  { %6308 = vmatpush2.bf16.msra.mxu1 %v8832_v4 }
 0x38d   :  { %6309 = vmatprep.subr.bf16.mxu1 %v8837_v55 }
 0x38e   :  { %6269 = vmatpush2.bf16.msra.mxu0 %v8787_v47  ;;  %v8864_v47 = vld [vmem:[#allocation9 + $0x10] sm:$0xff]  }
 0x38f   :  { %6270 = vmatprep.subr.bf16.mxu0 %v8792_v52 }
 0x390   :  { %6310 = vmatpush2.bf16.msra.mxu1 %v8835_v57 }
 0x391   :  { %6311 = vmatprep.subr.bf16.mxu1 %v8840_v62 }
 0x392   :  { %6271 = vmatpush2.bf16.msra.mxu0 %v8790_v53 }
 0x393   :  { %6272 = vmatprep.subr.bf16.mxu0 %v8795_v5 }
 0x394   :  { %6312 = vmatpush2.bf16.msra.mxu1 %v8838_v41 }
 0x395   :  { %6313 = vmatprep.subr.bf16.mxu1 %v8843_v2 }
 0x396   :  { %6273 = vmatpush2.bf16.msra.mxu0 %v8793_v56 }
 0x397   :  { %6274 = vmatprep.subr.bf16.mxu0 %v8798_v58 }
 0x398   :  { %6314 = vmatpush2.bf16.msra.mxu1 %v8841_v23 }
 0x399   :  { %6315 = vmatprep.subr.bf16.mxu1 %v8846_v12 }
 0x39a   :  { %6275 = vmatpush2.bf16.msra.mxu0 %v8796_v34 }
 0x39b   :  { %6276 = vmatprep.subr.bf16.mxu0 %v8801_v13 }
 0x39c   :  { %6316 = vmatpush2.bf16.msra.mxu1 %v8844_v14  ;;  %v8865_v14 = vld [vmem:[#allocation9 + $0x48] sm:$0xff]  }
 0x39d   :  { %6317 = vmatprep.subr.bf16.mxu1 %v8849_v16  ;;  %v8870_v16 = vld [vmem:[#allocation12 + $0x30] sm:$0xff]  }
 0x39e   :  { %6277 = vmatpush2.bf16.msra.mxu0 %v8799_v22 }
 0x39f   :  { %6278 = vmatprep.subr.bf16.mxu0 %v8804_v35 }
 0x3a0   :  { %6318 = vmatpush2.bf16.msra.mxu1 %v8847_v24  ;;  %v8873_v24 = vld [vmem:[#allocation12 + $0x18] sm:$0xff]  }
 0x3a1   :  { %6319 = vmatprep.subr.bf16.mxu1 %v8852_v32 }
 0x3a2   :  { %6279 = vmatpush2.bf16.msra.mxu0 %v8802_v20 }
 0x3a3   :  { %7514 = vmatprep.subr.bf16.mxu0 %v8853_v44 }
 0x3a4   :  { %6320 = vmatpush2.bf16.msra.mxu1 %v8850_v26 }
 0x3a5   :  { %v5632_v15 = vpop.f32.mrf.mxu0  ;;  %6281 = vmatmul.mubr.bf16.vlgmr.msra.gmra.mxu0 %v5848_v11 }
 0x3a6   :  { %v5673_v18 = vpop.f32.mrf.mxu1  ;;  %v5633_v39 = vadd.f32 %v5632_v15, %v9386_v40  ;;  %7515 = vmatpush3.bf16.msra.mxu0 %v8854_v45  ;;  %v8866_v15 = vld [vmem:[#allocation9 + $0x8] sm:$0xff]  }
 0x3a7   :  { %v5634_v19 = vpop.f32.mrf.mxu0  ;;  %7516 = vmatprep.subr.bf16.mxu0 %v8855_v9 }
 0x3a8   :  { %v5675_v21 = vpop.f32.mrf.mxu1  ;;  %v5674_v17 = vadd.f32 %v5673_v18, %v5633_v39  ;;  %v5635_v28 = vadd.f32 %v5634_v19, %v9389_v3  ;;  %v8867_v18 = vld [vmem:[#allocation9 + $0x40] sm:$0xff]  }
 0x3a9   :  { %v5636_v50 = vpop.f32.mrf.mxu0  ;;  %v8868_v39 = vld [vmem:[#allocation9] sm:$0xff]  }
 0x3aa   :  { %v5677_v60 = vpop.f32.mrf.mxu1  ;;  %v5676_v61 = vadd.f32 %v5675_v21, %v5635_v28  ;;  %7517 = vmatpush3.bf16.msra.mxu0 %v8856_v10  ;;  %v8869_v19 = vld [vmem:[#allocation12 + $0x38] sm:$0xff]   ;;  %v9062_v21 = vmov 0.0   ;;  %v8872_v28 = vld [vmem:[#allocation12 + $0x20] sm:$0xff]  }
 0x3ab   :  { %v5637_v29 = vpop.f32.mrf.mxu0  ;;  %7518 = vmatprep.subr.bf16.mxu0 %v8857_v46  ;;  %7545 = vmatprep.subr.bf16.mxu1 %v9062_v21  ;;  %v5916_v50 = vld [vmem:[#allocation7] sm:$0x3] }
 0x3ac   :  { %v5678_v30 = vpop.f32.mrf.mxu1  ;;  %v5921_v60 = vrot.slane %v5916_v50, %v918_v59  ;;  %v8875_v59 = vld [vmem:[#allocation12 + $0x8] sm:$0xff]  }
 0x3ae   :  { %7519 = vmatpush3.bf16.msra.mxu0 %v8858_v31 }
 0x3af   :  { %7520 = vmatprep.subr.bf16.mxu0 %v8859_v48 }
 0x3b2   :  { %7521 = vmatpush3.bf16.msra.mxu0 %v8860_v36  ;;  %v7505_v36 = vld [vmem:[#allocation13] ss:$0 sm:$0xff] }
 0x3b3   :  { %7522 = vmatprep.subr.bf16.mxu0 %v8861_v37 }
 0x3b6   :  { %7523 = vmatpush3.bf16.msra.mxu0 %v8862_v33 }
 0x3b7   :  { %7524 = vmatprep.subr.bf16.mxu0 %v8863_v49 }
 0x3ba   :  { %7525 = vmatpush3.bf16.msra.mxu0 %v8864_v47 }
 0x3bb   :  { %7526 = vmatprep.subr.bf16.mxu0 %v8865_v14 }
 0x3be   :  { %7527 = vmatpush3.bf16.msra.mxu0 %v8866_v15 }
 0x3bf   :  { %7528 = vmatprep.subr.bf16.mxu0 %v8867_v18 }
 0x3c2   :  { %7529 = vmatpush3.bf16.msra.mxu0 %v8868_v39 }
 0x3e5   :  { %v5714_v40 = vpop.f32.mrf.mxu0 }
 0x3e6   :  { %v5755_v25 = vpop.f32.mrf.mxu1  ;;  %v5715_v0 = vadd.f32 %v5714_v40, %v5674_v17  ;;  %v8871_v17 = vld [vmem:[#allocation12 + $0x28] sm:$0xff]  }
 0x3e7   :  { %v5716_v1 = vpop.f32.mrf.mxu0 }
 0x3e8   :  { %v5757_v42 = vpop.f32.mrf.mxu1  ;;  %v5756_v43 = vadd.f32 %v5755_v25, %v5715_v0  ;;  %v5717_v51 = vadd.f32 %v5716_v1, %v5676_v61  ;;  %v5925_v61 = vrot.slane %v5916_v50, %v922_v63 }
 0x3e9   :  { %v5718_v6 = vpop.f32.mrf.mxu0 }
 0x3ea   :  { %v5759_v3 = vpop.f32.mrf.mxu1  ;;  %v5758_v53 = vadd.f32 %v5757_v42, %v5717_v51 }
 0x3eb   :  { %v5719_v7 = vpop.f32.mrf.mxu0 }
 0x3ec   :  { %v5760_v27 = vpop.f32.mrf.mxu1  ;;  %v8874_v7 = vld [vmem:[#allocation12 + $0x10] sm:$0xff]  }
 0x3ed   :  { %v7488_v27 = vld [vmem:[#allocation10] ss:$0 sm:$0xff] }
 0x425   :  { %v5796_v52 = vpop.f32.mrf.mxu0 }
 0x426   :  { %v5837_v38 = vpop.f32.mrf.mxu1  ;;  %v5797_v4 = vadd.f32 %v5796_v52, %v5756_v43 }
 0x427   :  { %v5798_v5 = vpop.f32.mrf.mxu0 }
 0x428   :  { %v5839_v55 = vpop.f32.mrf.mxu1  ;;  %v5838_v56 = vadd.f32 %v5837_v38, %v5797_v4  ;;  %v5799_v57 = vadd.f32 %v5798_v5, %v5758_v53 }
 0x429   :  { %v5800_v58 = vpop.f32.mrf.mxu0 }
 0x42a   :  { %v5841_v62 = vpop.f32.mrf.mxu1  ;;  %v5840_v34 = vadd.f32 %v5839_v55, %v5799_v57  ;;  %v5846_v41 = vmax.f32 %v5838_v56, 0.0 }
 0x42b   :  { %v5801_v13 = vpop.f32.mrf.mxu0 }
 0x42c   :  { %v5842_v2 = vpop.f32.mrf.mxu1  ;;  %v5847_v22 = vmax.f32 %v5840_v34, 0.0  ;;  %v5850_v35 = vpack.c.bf16 %v5846_v41, %v5846_v41 }
 0x42e   :  { %v5851_v23 = vpack.c.bf16 %v5847_v22, %v5847_v22 }
 0x430   :  { %6321 = vmatprep.mubr.bf16.mxu1 %v5851_v23 }
 0x431   :  { %6322 = vmatmul.mubr.bf16.vlgmr.msra.gmra.mxu1 %v5850_v35 }
 0x432   :  { %7546 = vmatpush3.bf16.msra.mxu1 %v8869_v19  ;;  %7561 = vmatprep.mubr.msk.bf16.mxu1 %vm9063_vm0, %v9062_v21 }
 0x433   :  { %7547 = vmatprep.subr.bf16.mxu1 %v9062_v21 }
 0x436   :  { %7548 = vmatpush3.bf16.msra.mxu1 %v8870_v16 }
 0x437   :  { %7549 = vmatprep.subr.bf16.mxu1 %v9062_v21 }
 0x43a   :  { %7550 = vmatpush3.bf16.msra.mxu1 %v8871_v17 }
 0x43b   :  { %7551 = vmatprep.subr.bf16.mxu1 %v9062_v21 }
 0x43e   :  { %7552 = vmatpush3.bf16.msra.mxu1 %v8872_v28 }
 0x43f   :  { %7553 = vmatprep.subr.bf16.mxu1 %v9062_v21 }
 0x442   :  { %7554 = vmatpush3.bf16.msra.mxu1 %v8873_v24 }
 0x443   :  { %7555 = vmatprep.subr.bf16.mxu1 %v9062_v21 }
 0x446   :  { %7556 = vmatpush3.bf16.msra.mxu1 %v8874_v7 }
 0x447   :  { %7557 = vmatprep.subr.bf16.mxu1 %v9062_v21 }
 0x44a   :  { %7558 = vmatpush3.bf16.msra.mxu1 %v8875_v59 }
 0x44b   :  { %7559 = vmatprep.subr.bf16.mxu1 %v9062_v21 }
 0x44e   :  { %7560 = vmatpush3.bf16.msra.mxu1 %v8876_v54 }
 0x465   :  { %v6282_v20 = vpop.f32.mrf.mxu0 }
 0x466   :  { %v6283_v29 = vadd.f32 %v6282_v20, %v5921_v60 }
 0x467   :  { %v6284_v8 = vpop.f32.mrf.mxu0 }
 0x468   :  { %v6285_v32 = vadd.f32 %v6284_v8, %v5925_v61 }
 0x469   :  { %v6286_v11 = vpop.f32.mrf.mxu0 }
 0x46b   :  { %v6287_v12 = vpop.f32.mrf.mxu0 }
 0x4f1   :  { %v6323_v30 = vpop.f32.mrf.mxu1 }
 0x4f2   :  { %v6324_v26 = vadd.f32 %v6323_v30, %v6283_v29 }
 0x4f3   :  { %v6325_v40 = vpop.f32.mrf.mxu1 }
 0x4f4   :  { %v6326_v25 = vadd.f32 %v6325_v40, %v6285_v32  ;;  %v6330_v0 = vmax.f32 %v6324_v26, 0.0 }
 0x4f5   :  { %v6327_v1 = vpop.f32.mrf.mxu1 }
 0x4f6   :  { %v6331_v42 = vmax.f32 %v6326_v25, 0.0  ;;  %v6332_v3 = vpack.c.bf16 %v6330_v0, %v6330_v0 }
 0x4f7   :  { %v6328_v43 = vpop.f32.mrf.mxu1 }
 0x4f8   :  { %v6333_v6 = vpack.c.bf16 %v6331_v42, %v6331_v42 }
 0x4fa   :  { %6501 = vmatprep.mubr.bf16.mxu0 %v6333_v6 }
 0x4fb   :  { %6502 = vmatmul.mubr.bf16.vlgmr.msra.gmra.mxu0 %v6332_v3 }
 0x5bb   :  { %v7530_v63 = vpop.f32.mrf.mxu0 }
 0x5bd   :  { %v7531_v44 = vpop.f32.mrf.mxu0 }
 0x5be   :  { %v7532_v45 = vadd.f32 %v7531_v44, %v7530_v63 }
 0x5bf   :  { %v7533_v9 = vpop.f32.mrf.mxu0 }
 0x5c0   :  { %v6504_v10 = vadd.f32 %v7532_v45, %v7488_v27 }
 0x5c1   :  { %v7534_v46 = vpop.f32.mrf.mxu0 }
 0x5c2   :  { %v6509_v31 = vmax.f32 %v6504_v10, 0.0 }
 0x5c4   :  { %v6510_v48 = vpack.c.bf16 %v6509_v31, %v6509_v31 }
 0x5c6   :  { %7562 = vmatmul.mubr.bf16.vlgmr.msra.gmra.mxu1 %v6510_v48 }
 0x686   :  { %v6616_v37 = vpop.f32.mrf.mxu1 }
 0x687   :  { %v6617_v33 = vadd.f32 %v7505_v36, %v6616_v37 }
 0x688   :  { %v7563_v49 = vpop.f32.mrf.mxu1 }
 0x689   :  { %6622 = vst [vmem:[%s9410_s9] sm:$0xff] %v6617_v33 }
 0x68a   :  { %v6619_v47 = vpop.f32.mrf.mxu1 }
 0x68c   :  { %v7564_v51 = vpop.f32.mrf.mxu1 }
 0x68d   :  { %6627 = vsyncpa [#allocation3], 1 }
 0x68e   :  { %6628 = vsyncpa [#allocation5], 1 }
 0x68f   :  { %6629 = vsyncpa [#allocation8], 1 }
 0x690   :  { %6630 = vsyncpa [#allocation11], 1 }
 0x691   :  { %6631 = vsyncpa [#allocation14], 1 }

</bundles_post_ra>
